<compile_context>
chip_gen: v7x
topology: tpu7x:2x2x1
jax: 0.10.0
libtpu: 0.0.40
codegen_flags: <defaults>
</compile_context>

<pallas_src>
import functools

import numpy as np
import jax
import jax.numpy as jnp
from jax.experimental import pallas as pl
from jax.experimental.pallas import tpu as pltpu


TB_MAX = 32  # images per grid step (multiple of 8)


def _round_up(n, m):
    return ((n + m - 1) // m) * m


# ----------------------------- the fused kernel -----------------------------

def _lucida_kernel(tb,
                   x_ref, g1_ref, c1b_ref, g2_ref, c2b_ref,
                   cs1_ref, cs2_ref, rs2_ref,
                   wfc1_ref, bfc1_ref, wfc2_ref, bfc2_ref, wfc3_ref, bfc3_ref,
                   out_ref, pool1_scr):
    f32 = jnp.float32
    bf16 = jnp.bfloat16

    def dot(a, b):
        # bf16 operands on the MXU, f32 accumulation.
        return jnp.dot(a.astype(bf16), b.astype(bf16),
                       preferred_element_type=f32)

    x = x_ref[...]                       # (tb*32, 32) f32
    r1 = tb * 32 - 4                     # conv1 row space (junk rows never selected)
    r2 = tb * 16 - 2                     # conv2 row space

    # ---- conv1 (1 -> 6, 5x5, valid): 5 banded row-tap matmuls, K=32, N=168.
    acc1 = dot(x[0:r1, :], g1_ref[0])
    for di in range(1, 5):
        acc1 = acc1 + dot(x[di:di + r1, :], g1_ref[di])
    conv1 = jnp.maximum(acc1 + c1b_ref[...], 0.0)            # (r1, 168) f32

    # ---- pool1 columns: channel-fused block-diagonal even/odd selectors.
    cm1 = jnp.maximum(dot(conv1, cs1_ref[0]),
                      dot(conv1, cs1_ref[1]))                # (r1, 84) f32

    # ---- pool1 rows: stride-2 sublane reads of a VMEM scratch instead of an
    #      O(tb^2) block-diagonal selector matmul.  Tail rows are zeroed so
    #      uninitialized VMEM can never leak into downstream matmuls.
    pool1_scr[0:r1, :] = cm1
    pool1_scr[r1:, :] = jnp.zeros((4, 84), f32)
    p1 = jnp.maximum(pool1_scr[pl.ds(0, tb * 16, stride=2), :],
                     pool1_scr[pl.ds(1, tb * 16, stride=2), :])  # (tb*16, 84)

    # ---- conv2 (6 -> 16, 3x3, valid): 3 channel-fused banded matmuls, K=84.
    acc2 = dot(p1[0:r2, :], g2_ref[0])
    for di in range(1, 3):
        acc2 = acc2 + dot(p1[di:di + r2, :], g2_ref[di])
    conv2 = jnp.maximum(acc2 + c2b_ref[...], 0.0)            # (r2, 192) f32

    # ---- pool2: fused column selectors + small h-major row selectors.
    cm2 = jnp.maximum(dot(conv2, cs2_ref[0]),
                      dot(conv2, cs2_ref[1]))                # (r2, 96) f32
    p2 = jnp.maximum(dot(rs2_ref[0], cm2),
                     dot(rs2_ref[1], cm2))                   # (tb*6, 96), row = h*tb + b

    # ---- fc1: 6 matmuls (tb, 96) x (96, 128); the weight is pre-packed to
    #      (h, c*6+w) order so the h-major slices of p2 are static.
    h1 = dot(p2[0:tb, :], wfc1_ref[0])
    for h in range(1, 6):
        h1 = h1 + dot(p2[h * tb:(h + 1) * tb, :], wfc1_ref[h])
    h1 = jnp.maximum(h1 + bfc1_ref[...], 0.0)                # (tb, 128) f32

    # ---- fc2 / fc3 / softmax (128-lane dense; fc3 pad bias = -1e30).
    h2 = jnp.maximum(dot(h1, wfc2_ref[...]) + bfc2_ref[...], 0.0)
    logits = dot(h2, wfc3_ref[...]) + bfc3_ref[...]
    m = jnp.max(logits, axis=1, keepdims=True)
    e = jnp.exp(logits - m)
    out_ref[...] = e / jnp.sum(e, axis=1, keepdims=True)


# ----------------------- trace-time constant preparation --------------------

def _prepare_constants(params, tb):
    f32, bf16 = jnp.float32, jnp.bfloat16
    w1 = params["w_conv1"].astype(f32)               # (6, 1, 5, 5)
    b1 = params["b_conv1"].astype(f32)               # (6,)
    w2 = params["w_conv2"].astype(f32)               # (16, 6, 3, 3)
    b2 = params["b_conv2"].astype(f32)               # (16,)

    # conv1 banded weights: g1[di, ow+dj, c*28+ow] = w1[c, 0, di, dj]
    di, c, ow, dj = np.meshgrid(np.arange(5), np.arange(6), np.arange(28),
                                np.arange(5), indexing="ij")
    g1 = (jnp.zeros((5, 32, 168), f32)
          .at[di, ow + dj, c * 28 + ow].set(w1[c, 0, di, dj])).astype(bf16)
    c1b = jnp.repeat(b1, 28)[None, :]                # (1, 168) f32

    # conv2 banded weights (channels fused): g2[di, ci*14+ow+dj, co*12+ow]
    co, ci, di, ow, dj = np.meshgrid(np.arange(16), np.arange(6), np.arange(3),
                                     np.arange(12), np.arange(3), indexing="ij")
    g2 = (jnp.zeros((3, 84, 192), f32)
          .at[di, ci * 14 + ow + dj, co * 12 + ow].set(w2[co, ci, di, dj])
          ).astype(bf16)
    c2b = jnp.repeat(b2, 12)[None, :]                # (1, 192) f32

    # Block-diagonal even/odd column-pool selectors (all channels fused).
    c, j = np.meshgrid(np.arange(6), np.arange(14), indexing="ij")
    cs1 = (jnp.zeros((2, 168, 84), f32)
           .at[0, c * 28 + 2 * j, c * 14 + j].set(1.0)
           .at[1, c * 28 + 2 * j + 1, c * 14 + j].set(1.0)).astype(bf16)
    c, j = np.meshgrid(np.arange(16), np.arange(6), indexing="ij")
    cs2 = (jnp.zeros((2, 192, 96), f32)
           .at[0, c * 12 + 2 * j, c * 6 + j].set(1.0)
           .at[1, c * 12 + 2 * j + 1, c * 6 + j].set(1.0)).astype(bf16)

    # Small h-major even/odd row selectors for pool2 (output row = h*tb + b).
    h, b = np.meshgrid(np.arange(6), np.arange(tb), indexing="ij")
    rs2 = (jnp.zeros((2, tb * 6, tb * 16 - 2), f32)
           .at[0, h * tb + b, b * 16 + 2 * h].set(1.0)
           .at[1, h * tb + b, b * 16 + 2 * h + 1].set(1.0)).astype(bf16)

    # fc1 weight repacked from torch (c, h, w) flatten order to (h, c*6+w),
    # padded to 128 output lanes.
    wfc1 = params["w_fc1"].astype(f32).reshape(16, 6, 6, 120)
    wfc1 = jnp.transpose(wfc1, (1, 0, 2, 3)).reshape(6, 96, 120)
    wfc1 = jnp.pad(wfc1, ((0, 0), (0, 0), (0, 8))).astype(bf16)     # (6, 96, 128)
    bfc1 = jnp.pad(params["b_fc1"].astype(f32), (0, 8))[None, :]    # (1, 128)

    wfc2 = jnp.pad(params["w_fc2"].astype(f32), ((0, 8), (0, 44))).astype(bf16)
    bfc2 = jnp.pad(params["b_fc2"].astype(f32), (0, 44))[None, :]
    wfc3 = jnp.pad(params["w_fc3"].astype(f32), ((0, 44), (0, 118))).astype(bf16)
    bfc3 = jnp.full((1, 128), -1e30, f32).at[0, :10].set(params["b_fc3"].astype(f32))

    return (g1, c1b, g2, c2b, cs1, cs2, rs2,
            wfc1, bfc1, wfc2, bfc2, wfc3, bfc3)


# ------------------------------- forward ------------------------------------

def lucida_forward(params, x, *, tb_max=TB_MAX):
    """x: (B, 1, 32, 32) float32 NCHW -> (B, 10) softmax probabilities."""
    B = x.shape[0]
    x = x.astype(jnp.float32).reshape(B, 32, 32)
    tb = min(_round_up(tb_max, 8), _round_up(B, 8))   # multiple of 8, <= tb_max
    b_pad = _round_up(B, tb)
    if b_pad != B:
        x = jnp.pad(x, ((0, b_pad - B), (0, 0), (0, 0)))
    x2d = x.reshape(b_pad * 32, 32)                   # metadata-only reshape

    consts = _prepare_constants(params, tb)

    def full_spec(shape):
        nd = len(shape)
        return pl.BlockSpec(shape, lambda i, _nd=nd: (0,) * _nd)

    in_specs = ([pl.BlockSpec((tb * 32, 32), lambda i: (i, 0))]
                + [full_spec(c.shape) for c in consts])
    out_specs = pl.BlockSpec((tb, 128), lambda i: (i, 0))

    out = pl.pallas_call(
        functools.partial(_lucida_kernel, tb),
        out_shape=jax.ShapeDtypeStruct((b_pad, 128), jnp.float32),
        grid_spec=pltpu.PrefetchScalarGridSpec(
            num_scalar_prefetch=0,
            grid=(b_pad // tb,),
            in_specs=in_specs,
            out_specs=out_specs,
            scratch_shapes=[pltpu.VMEM((tb * 32, 84), jnp.float32)],
        ),
        compiler_params=pltpu.CompilerParams(
            dimension_semantics=("parallel",),
        ),
    )(x2d, *consts)
    return out[:B, :10]


# --------------------------- plain-JAX reference ----------------------------

def lucida_reference(params, x):
    dn = ("NCHW", "OIHW", "NCHW")
    y = jax.lax.conv_general_dilated(x, params["w_conv1"], (1, 1), "VALID",
                                     dimension_numbers=dn)
    y = jax.nn.relu(y + params["b_conv1"][None, :, None, None])
    y = jax.lax.reduce_window(y, -jnp.inf, jax.lax.max, (1, 1, 2, 2),
                              (1, 1, 2, 2), "VALID")
    y = jax.lax.conv_general_dilated(y, params["w_conv2"], (1, 1), "VALID",
                                     dimension_numbers=dn)
    y = jax.nn.relu(y + params["b_conv2"][None, :, None, None])
    y = jax.lax.reduce_window(y, -jnp.inf, jax.lax.max, (1, 1, 2, 2),
                              (1, 1, 2, 2), "VALID")
    y = y.reshape(y.shape[0], -1)                    # NCHW flatten == torch .view
    y = jax.nn.relu(y @ params["w_fc1"] + params["b_fc1"])
    y = jax.nn.relu(y @ params["w_fc2"] + params["b_fc2"])
    return jax.nn.softmax(y @ params["w_fc3"] + params["b_fc3"], axis=1)


# ------------------------------- parameters ---------------------------------

def init_params(key):
    ks = jax.random.split(key, 10)

    def uni(k, shape, fan_in):
        bound = 1.0 / (fan_in ** 0.5)
        return jax.random.uniform(k, shape, jnp.float32, -bound, bound)

    return {
        "w_conv1": uni(ks[0], (6, 1, 5, 5), 1 * 5 * 5),
        "b_conv1": uni(ks[1], (6,), 1 * 5 * 5),
        "w_conv2": uni(ks[2], (16, 6, 3, 3), 6 * 3 * 3),
        "b_conv2": uni(ks[3], (16,), 6 * 3 * 3),
        "w_fc1": uni(ks[4], (576, 120), 576),   # stored (in, out)
        "b_fc1": uni(ks[5], (120,), 576),
        "w_fc2": uni(ks[6], (120, 84), 120),
        "b_fc2": uni(ks[7], (84,), 120),
        "w_fc3": uni(ks[8], (84, 10), 84),
        "b_fc3": uni(ks[9], (10,), 84),
    }


if __name__ == "__main__":
    key = jax.random.PRNGKey(0)
    k_params, k_x = jax.random.split(key)
    params = init_params(k_params)
    # Input must be (B, 1, 32, 32) so that 16*6*6 = 576 matches fc1.
    x = jax.random.normal(k_x, (2, 1, 32, 32), dtype=jnp.float32)

    fwd = jax.jit(lucida_forward)
    out = jax.block_until_ready(fwd(params, x))

    assert out.shape == (2, 10), out.shape
    # exact division -> softmax rows sum to 1 within f32 rounding
    assert bool(jnp.all(jnp.abs(jnp.sum(out, axis=1) - 1.0) < 1e-3)), jnp.sum(out, axis=1)
    # cross-check against a plain-JAX f32 reference (bf16 MXU inputs -> loose tol)
    ref = lucida_reference(params, x)
    assert bool(jnp.all(jnp.abs(out - ref) < 3e-2)), jnp.max(jnp.abs(out - ref))
    print("KERNEL_OK")
</pallas_src>

<mosaic_0001>
module attributes {stable_mosaic.version = 11 : i64} {
  func.func @_lucida_kernel(%arg0: i32, %arg1: memref<256x32xf32, #tpu.memory_space<vmem>>, %arg2: memref<5x32x168xbf16, #tpu.memory_space<vmem>>, %arg3: memref<1x168xf32, #tpu.memory_space<vmem>>, %arg4: memref<3x84x192xbf16, #tpu.memory_space<vmem>>, %arg5: memref<1x192xf32, #tpu.memory_space<vmem>>, %arg6: memref<2x168x84xbf16, #tpu.memory_space<vmem>>, %arg7: memref<2x192x96xbf16, #tpu.memory_space<vmem>>, %arg8: memref<2x48x126xbf16, #tpu.memory_space<vmem>>, %arg9: memref<6x96x128xbf16, #tpu.memory_space<vmem>>, %arg10: memref<1x128xf32, #tpu.memory_space<vmem>>, %arg11: memref<128x128xbf16, #tpu.memory_space<vmem>>, %arg12: memref<1x128xf32, #tpu.memory_space<vmem>>, %arg13: memref<128x128xbf16, #tpu.memory_space<vmem>>, %arg14: memref<1x128xf32, #tpu.memory_space<vmem>>, %arg15: memref<8x128xf32, #tpu.memory_space<vmem>>, %arg16: memref<256x84xf32, #tpu.memory_space<vmem>>) attributes {dimension_semantics = [#tpu.dimension_semantics<parallel>], iteration_bounds = array<i64: 1>, scalar_prefetch = 0 : i64, scratch_operands = 1 : i64, tpu.core_type = #tpu.core_type<tc>, window_params = [{transform_indices = @transform_0, window_bounds = array<i64: 256, 32>}, {pipeline_mode = #tpu.pipeline_mode<synchronous>, transform_indices = @transform_1, window_bounds = array<i64: 5, 32, 168>}, {pipeline_mode = #tpu.pipeline_mode<synchronous>, transform_indices = @transform_2, window_bounds = array<i64: 1, 168>}, {pipeline_mode = #tpu.pipeline_mode<synchronous>, transform_indices = @transform_3, window_bounds = array<i64: 3, 84, 192>}, {pipeline_mode = #tpu.pipeline_mode<synchronous>, transform_indices = @transform_4, window_bounds = array<i64: 1, 192>}, {pipeline_mode = #tpu.pipeline_mode<synchronous>, transform_indices = @transform_5, window_bounds = array<i64: 2, 168, 84>}, {pipeline_mode = #tpu.pipeline_mode<synchronous>, transform_indices = @transform_6, window_bounds = array<i64: 2, 192, 96>}, {pipeline_mode = #tpu.pipeline_mode<synchronous>, transform_indices = @transform_7, window_bounds = array<i64: 2, 48, 126>}, {pipeline_mode = #tpu.pipeline_mode<synchronous>, transform_indices = @transform_8, window_bounds = array<i64: 6, 96, 128>}, {pipeline_mode = #tpu.pipeline_mode<synchronous>, transform_indices = @transform_9, window_bounds = array<i64: 1, 128>}, {pipeline_mode = #tpu.pipeline_mode<synchronous>, transform_indices = @transform_10, window_bounds = array<i64: 128, 128>}, {pipeline_mode = #tpu.pipeline_mode<synchronous>, transform_indices = @transform_11, window_bounds = array<i64: 1, 128>}, {pipeline_mode = #tpu.pipeline_mode<synchronous>, transform_indices = @transform_12, window_bounds = array<i64: 128, 128>}, {pipeline_mode = #tpu.pipeline_mode<synchronous>, transform_indices = @transform_13, window_bounds = array<i64: 1, 128>}, {transform_indices = @transform_14, window_bounds = array<i64: 8, 128>}]} {
    %c0 = arith.constant 0 : index
    %c0_0 = arith.constant 0 : index
    %0 = vector.load %arg1[%c0, %c0_0] : memref<256x32xf32, #tpu.memory_space<vmem>>, vector<256x32xf32>
    %1 = vector.extract_strided_slice %0 {offsets = [0, 0], sizes = [252, 32], strides = [1, 1]} : vector<256x32xf32> to vector<252x32xf32>
    %c0_1 = arith.constant 0 : index
    %c0_2 = arith.constant 0 : index
    %c0_3 = arith.constant 0 : index
    %2 = vector.load %arg2[%c0_1, %c0_2, %c0_3] : memref<5x32x168xbf16, #tpu.memory_space<vmem>>, vector<1x32x168xbf16>
    %3 = vector.shape_cast %2 : vector<1x32x168xbf16> to vector<32x168xbf16>
    %4 = arith.truncf %1 : vector<252x32xf32> to vector<252x32xbf16>
    %cst = arith.constant dense<0.000000e+00> : vector<252x168xf32>
    %5 = tpu.matmul %4, %3, %cst {dimension_numbers = #tpu.dot_dimension_numbers<[1], [0], [0], [1], [0, 0, 1, 1], [], []>} : vector<252x32xbf16>, vector<32x168xbf16>, vector<252x168xf32> -> vector<252x168xf32>
    %6 = vector.extract_strided_slice %0 {offsets = [1, 0], sizes = [252, 32], strides = [1, 1]} : vector<256x32xf32> to vector<252x32xf32>
    %c1 = arith.constant 1 : index
    %c0_4 = arith.constant 0 : index
    %c0_5 = arith.constant 0 : index
    %7 = vector.load %arg2[%c1, %c0_4, %c0_5] : memref<5x32x168xbf16, #tpu.memory_space<vmem>>, vector<1x32x168xbf16>
    %8 = vector.shape_cast %7 : vector<1x32x168xbf16> to vector<32x168xbf16>
    %9 = arith.truncf %6 : vector<252x32xf32> to vector<252x32xbf16>
    %cst_6 = arith.constant dense<0.000000e+00> : vector<252x168xf32>
    %10 = tpu.matmul %9, %8, %cst_6 {dimension_numbers = #tpu.dot_dimension_numbers<[1], [0], [0], [1], [0, 0, 1, 1], [], []>} : vector<252x32xbf16>, vector<32x168xbf16>, vector<252x168xf32> -> vector<252x168xf32>
    %11 = arith.addf %5, %10 : vector<252x168xf32>
    %12 = vector.extract_strided_slice %0 {offsets = [2, 0], sizes = [252, 32], strides = [1, 1]} : vector<256x32xf32> to vector<252x32xf32>
    %c2 = arith.constant 2 : index
    %c0_7 = arith.constant 0 : index
    %c0_8 = arith.constant 0 : index
    %13 = vector.load %arg2[%c2, %c0_7, %c0_8] : memref<5x32x168xbf16, #tpu.memory_space<vmem>>, vector<1x32x168xbf16>
    %14 = vector.shape_cast %13 : vector<1x32x168xbf16> to vector<32x168xbf16>
    %15 = arith.truncf %12 : vector<252x32xf32> to vector<252x32xbf16>
    %cst_9 = arith.constant dense<0.000000e+00> : vector<252x168xf32>
    %16 = tpu.matmul %15, %14, %cst_9 {dimension_numbers = #tpu.dot_dimension_numbers<[1], [0], [0], [1], [0, 0, 1, 1], [], []>} : vector<252x32xbf16>, vector<32x168xbf16>, vector<252x168xf32> -> vector<252x168xf32>
    %17 = arith.addf %11, %16 : vector<252x168xf32>
    %18 = vector.extract_strided_slice %0 {offsets = [3, 0], sizes = [252, 32], strides = [1, 1]} : vector<256x32xf32> to vector<252x32xf32>
    %c3 = arith.constant 3 : index
    %c0_10 = arith.constant 0 : index
    %c0_11 = arith.constant 0 : index
    %19 = vector.load %arg2[%c3, %c0_10, %c0_11] : memref<5x32x168xbf16, #tpu.memory_space<vmem>>, vector<1x32x168xbf16>
    %20 = vector.shape_cast %19 : vector<1x32x168xbf16> to vector<32x168xbf16>
    %21 = arith.truncf %18 : vector<252x32xf32> to vector<252x32xbf16>
    %cst_12 = arith.constant dense<0.000000e+00> : vector<252x168xf32>
    %22 = tpu.matmul %21, %20, %cst_12 {dimension_numbers = #tpu.dot_dimension_numbers<[1], [0], [0], [1], [0, 0, 1, 1], [], []>} : vector<252x32xbf16>, vector<32x168xbf16>, vector<252x168xf32> -> vector<252x168xf32>
    %23 = arith.addf %17, %22 : vector<252x168xf32>
    %24 = vector.extract_strided_slice %0 {offsets = [4, 0], sizes = [252, 32], strides = [1, 1]} : vector<256x32xf32> to vector<252x32xf32>
    %c4 = arith.constant 4 : index
    %c0_13 = arith.constant 0 : index
    %c0_14 = arith.constant 0 : index
    %25 = vector.load %arg2[%c4, %c0_13, %c0_14] : memref<5x32x168xbf16, #tpu.memory_space<vmem>>, vector<1x32x168xbf16>
    %26 = vector.shape_cast %25 : vector<1x32x168xbf16> to vector<32x168xbf16>
    %27 = arith.truncf %24 : vector<252x32xf32> to vector<252x32xbf16>
    %cst_15 = arith.constant dense<0.000000e+00> : vector<252x168xf32>
    %28 = tpu.matmul %27, %26, %cst_15 {dimension_numbers = #tpu.dot_dimension_numbers<[1], [0], [0], [1], [0, 0, 1, 1], [], []>} : vector<252x32xbf16>, vector<32x168xbf16>, vector<252x168xf32> -> vector<252x168xf32>
    %29 = arith.addf %23, %28 : vector<252x168xf32>
    %c0_16 = arith.constant 0 : index
    %c0_17 = arith.constant 0 : index
    %30 = vector.load %arg3[%c0_16, %c0_17] : memref<1x168xf32, #tpu.memory_space<vmem>>, vector<1x168xf32>
    %31 = vector.broadcast %30 : vector<1x168xf32> to vector<252x168xf32>
    %32 = arith.addf %29, %31 : vector<252x168xf32>
    %cst_18 = arith.constant 0.000000e+00 : f32
    %33 = vector.broadcast %cst_18 : f32 to vector<252x168xf32>
    %34 = arith.maximumf %32, %33 : vector<252x168xf32>
    %c0_19 = arith.constant 0 : index
    %c0_20 = arith.constant 0 : index
    %c0_21 = arith.constant 0 : index
    %35 = vector.load %arg6[%c0_19, %c0_20, %c0_21] : memref<2x168x84xbf16, #tpu.memory_space<vmem>>, vector<1x168x84xbf16>
    %36 = vector.shape_cast %35 : vector<1x168x84xbf16> to vector<168x84xbf16>
    %37 = arith.truncf %34 : vector<252x168xf32> to vector<252x168xbf16>
    %cst_22 = arith.constant dense<0.000000e+00> : vector<252x84xf32>
    %38 = tpu.matmul %37, %36, %cst_22 {dimension_numbers = #tpu.dot_dimension_numbers<[1], [0], [0], [1], [0, 0, 1, 1], [], []>} : vector<252x168xbf16>, vector<168x84xbf16>, vector<252x84xf32> -> vector<252x84xf32>
    %c1_23 = arith.constant 1 : index
    %c0_24 = arith.constant 0 : index
    %c0_25 = arith.constant 0 : index
    %39 = vector.load %arg6[%c1_23, %c0_24, %c0_25] : memref<2x168x84xbf16, #tpu.memory_space<vmem>>, vector<1x168x84xbf16>
    %40 = vector.shape_cast %39 : vector<1x168x84xbf16> to vector<168x84xbf16>
    %41 = arith.truncf %34 : vector<252x168xf32> to vector<252x168xbf16>
    %cst_26 = arith.constant dense<0.000000e+00> : vector<252x84xf32>
    %42 = tpu.matmul %41, %40, %cst_26 {dimension_numbers = #tpu.dot_dimension_numbers<[1], [0], [0], [1], [0, 0, 1, 1], [], []>} : vector<252x168xbf16>, vector<168x84xbf16>, vector<252x84xf32> -> vector<252x84xf32>
    %43 = arith.maximumf %38, %42 : vector<252x84xf32>
    %c0_27 = arith.constant 0 : index
    %c0_28 = arith.constant 0 : index
    %44 = vector.load %arg16[%c0_27, %c0_28] : memref<256x84xf32, #tpu.memory_space<vmem>>, vector<252x84xf32>
    tpu.vector_store %arg16[%c0_27, %c0_28], %43 {strides = array<i32>} : memref<256x84xf32, #tpu.memory_space<vmem>>, vector<252x84xf32>,
    %cst_29 = arith.constant 0.000000e+00 : f32
    %45 = vector.broadcast %cst_29 : f32 to vector<4x84xf32>
    %c252 = arith.constant 252 : index
    %c0_30 = arith.constant 0 : index
    %46 = vector.load %arg16[%c252, %c0_30] : memref<256x84xf32, #tpu.memory_space<vmem>>, vector<4x84xf32>
    tpu.vector_store %arg16[%c252, %c0_30], %45 {strides = array<i32>} : memref<256x84xf32, #tpu.memory_space<vmem>>, vector<4x84xf32>,
    %c0_31 = arith.constant 0 : index
    %c0_32 = arith.constant 0 : index
    %47 = tpu.strided_load %arg16[%c0_31, %c0_32] {strides = array<i32: 2, 1>} : memref<256x84xf32, #tpu.memory_space<vmem>>, vector<128x84xf32>
    %c1_33 = arith.constant 1 : index
    %c0_34 = arith.constant 0 : index
    %48 = tpu.strided_load %arg16[%c1_33, %c0_34] {strides = array<i32: 2, 1>} : memref<256x84xf32, #tpu.memory_space<vmem>>, vector<128x84xf32>
    %49 = arith.maximumf %47, %48 : vector<128x84xf32>
    %50 = vector.extract_strided_slice %49 {offsets = [0, 0], sizes = [126, 84], strides = [1, 1]} : vector<128x84xf32> to vector<126x84xf32>
    %c0_35 = arith.constant 0 : index
    %c0_36 = arith.constant 0 : index
    %c0_37 = arith.constant 0 : index
    %51 = vector.load %arg4[%c0_35, %c0_36, %c0_37] : memref<3x84x192xbf16, #tpu.memory_space<vmem>>, vector<1x84x192xbf16>
    %52 = vector.shape_cast %51 : vector<1x84x192xbf16> to vector<84x192xbf16>
    %53 = arith.truncf %50 : vector<126x84xf32> to vector<126x84xbf16>
    %cst_38 = arith.constant dense<0.000000e+00> : vector<126x192xf32>
    %54 = tpu.matmul %53, %52, %cst_38 {dimension_numbers = #tpu.dot_dimension_numbers<[1], [0], [0], [1], [0, 0, 1, 1], [], []>} : vector<126x84xbf16>, vector<84x192xbf16>, vector<126x192xf32> -> vector<126x192xf32>
    %55 = vector.extract_strided_slice %49 {offsets = [1, 0], sizes = [126, 84], strides = [1, 1]} : vector<128x84xf32> to vector<126x84xf32>
    %c1_39 = arith.constant 1 : index
    %c0_40 = arith.constant 0 : index
    %c0_41 = arith.constant 0 : index
    %56 = vector.load %arg4[%c1_39, %c0_40, %c0_41] : memref<3x84x192xbf16, #tpu.memory_space<vmem>>, vector<1x84x192xbf16>
    %57 = vector.shape_cast %56 : vector<1x84x192xbf16> to vector<84x192xbf16>
    %58 = arith.truncf %55 : vector<126x84xf32> to vector<126x84xbf16>
    %cst_42 = arith.constant dense<0.000000e+00> : vector<126x192xf32>
    %59 = tpu.matmul %58, %57, %cst_42 {dimension_numbers = #tpu.dot_dimension_numbers<[1], [0], [0], [1], [0, 0, 1, 1], [], []>} : vector<126x84xbf16>, vector<84x192xbf16>, vector<126x192xf32> -> vector<126x192xf32>
    %60 = arith.addf %54, %59 : vector<126x192xf32>
    %61 = vector.extract_strided_slice %49 {offsets = [2, 0], sizes = [126, 84], strides = [1, 1]} : vector<128x84xf32> to vector<126x84xf32>
    %c2_43 = arith.constant 2 : index
    %c0_44 = arith.constant 0 : index
    %c0_45 = arith.constant 0 : index
    %62 = vector.load %arg4[%c2_43, %c0_44, %c0_45] : memref<3x84x192xbf16, #tpu.memory_space<vmem>>, vector<1x84x192xbf16>
    %63 = vector.shape_cast %62 : vector<1x84x192xbf16> to vector<84x192xbf16>
    %64 = arith.truncf %61 : vector<126x84xf32> to vector<126x84xbf16>
    %cst_46 = arith.constant dense<0.000000e+00> : vector<126x192xf32>
    %65 = tpu.matmul %64, %63, %cst_46 {dimension_numbers = #tpu.dot_dimension_numbers<[1], [0], [0], [1], [0, 0, 1, 1], [], []>} : vector<126x84xbf16>, vector<84x192xbf16>, vector<126x192xf32> -> vector<126x192xf32>
    %66 = arith.addf %60, %65 : vector<126x192xf32>
    %c0_47 = arith.constant 0 : index
    %c0_48 = arith.constant 0 : index
    %67 = vector.load %arg5[%c0_47, %c0_48] : memref<1x192xf32, #tpu.memory_space<vmem>>, vector<1x192xf32>
    %68 = vector.broadcast %67 : vector<1x192xf32> to vector<126x192xf32>
    %69 = arith.addf %66, %68 : vector<126x192xf32>
    %cst_49 = arith.constant 0.000000e+00 : f32
    %70 = vector.broadcast %cst_49 : f32 to vector<126x192xf32>
    %71 = arith.maximumf %69, %70 : vector<126x192xf32>
    %c0_50 = arith.constant 0 : index
    %c0_51 = arith.constant 0 : index
    %c0_52 = arith.constant 0 : index
    %72 = vector.load %arg7[%c0_50, %c0_51, %c0_52] : memref<2x192x96xbf16, #tpu.memory_space<vmem>>, vector<1x192x96xbf16>
    %73 = vector.shape_cast %72 : vector<1x192x96xbf16> to vector<192x96xbf16>
    %74 = arith.truncf %71 : vector<126x192xf32> to vector<126x192xbf16>
    %cst_53 = arith.constant dense<0.000000e+00> : vector<126x96xf32>
    %75 = tpu.matmul %74, %73, %cst_53 {dimension_numbers = #tpu.dot_dimension_numbers<[1], [0], [0], [1], [0, 0, 1, 1], [], []>} : vector<126x192xbf16>, vector<192x96xbf16>, vector<126x96xf32> -> vector<126x96xf32>
    %c1_54 = arith.constant 1 : index
    %c0_55 = arith.constant 0 : index
    %c0_56 = arith.constant 0 : index
    %76 = vector.load %arg7[%c1_54, %c0_55, %c0_56] : memref<2x192x96xbf16, #tpu.memory_space<vmem>>, vector<1x192x96xbf16>
    %77 = vector.shape_cast %76 : vector<1x192x96xbf16> to vector<192x96xbf16>
    %78 = arith.truncf %71 : vector<126x192xf32> to vector<126x192xbf16>
    %cst_57 = arith.constant dense<0.000000e+00> : vector<126x96xf32>
    %79 = tpu.matmul %78, %77, %cst_57 {dimension_numbers = #tpu.dot_dimension_numbers<[1], [0], [0], [1], [0, 0, 1, 1], [], []>} : vector<126x192xbf16>, vector<192x96xbf16>, vector<126x96xf32> -> vector<126x96xf32>
    %80 = arith.maximumf %75, %79 : vector<126x96xf32>
    %c0_58 = arith.constant 0 : index
    %c0_59 = arith.constant 0 : index
    %c0_60 = arith.constant 0 : index
    %81 = vector.load %arg8[%c0_58, %c0_59, %c0_60] : memref<2x48x126xbf16, #tpu.memory_space<vmem>>, vector<1x48x126xbf16>
    %82 = vector.shape_cast %81 : vector<1x48x126xbf16> to vector<48x126xbf16>
    %83 = arith.truncf %80 : vector<126x96xf32> to vector<126x96xbf16>
    %cst_61 = arith.constant dense<0.000000e+00> : vector<48x96xf32>
    %84 = tpu.matmul %82, %83, %cst_61 {dimension_numbers = #tpu.dot_dimension_numbers<[1], [0], [0], [1], [0, 0, 1, 1], [], []>} : vector<48x126xbf16>, vector<126x96xbf16>, vector<48x96xf32> -> vector<48x96xf32>
    %c1_62 = arith.constant 1 : index
    %c0_63 = arith.constant 0 : index
    %c0_64 = arith.constant 0 : index
    %85 = vector.load %arg8[%c1_62, %c0_63, %c0_64] : memref<2x48x126xbf16, #tpu.memory_space<vmem>>, vector<1x48x126xbf16>
    %86 = vector.shape_cast %85 : vector<1x48x126xbf16> to vector<48x126xbf16>
    %87 = arith.truncf %80 : vector<126x96xf32> to vector<126x96xbf16>
    %cst_65 = arith.constant dense<0.000000e+00> : vector<48x96xf32>
    %88 = tpu.matmul %86, %87, %cst_65 {dimension_numbers = #tpu.dot_dimension_numbers<[1], [0], [0], [1], [0, 0, 1, 1], [], []>} : vector<48x126xbf16>, vector<126x96xbf16>, vector<48x96xf32> -> vector<48x96xf32>
    %89 = arith.maximumf %84, %88 : vector<48x96xf32>
    %90 = vector.extract_strided_slice %89 {offsets = [0, 0], sizes = [8, 96], strides = [1, 1]} : vector<48x96xf32> to vector<8x96xf32>
    %c0_66 = arith.constant 0 : index
    %c0_67 = arith.constant 0 : index
    %c0_68 = arith.constant 0 : index
    %91 = vector.load %arg9[%c0_66, %c0_67, %c0_68] : memref<6x96x128xbf16, #tpu.memory_space<vmem>>, vector<1x96x128xbf16>
    %92 = vector.shape_cast %91 : vector<1x96x128xbf16> to vector<96x128xbf16>
    %93 = arith.truncf %90 : vector<8x96xf32> to vector<8x96xbf16>
    %cst_69 = arith.constant dense<0.000000e+00> : vector<8x128xf32>
    %94 = tpu.matmul %93, %92, %cst_69 {dimension_numbers = #tpu.dot_dimension_numbers<[1], [0], [0], [1], [0, 0, 1, 1], [], []>} : vector<8x96xbf16>, vector<96x128xbf16>, vector<8x128xf32> -> vector<8x128xf32>
    %95 = vector.extract_strided_slice %89 {offsets = [8, 0], sizes = [8, 96], strides = [1, 1]} : vector<48x96xf32> to vector<8x96xf32>
    %c1_70 = arith.constant 1 : index
    %c0_71 = arith.constant 0 : index
    %c0_72 = arith.constant 0 : index
    %96 = vector.load %arg9[%c1_70, %c0_71, %c0_72] : memref<6x96x128xbf16, #tpu.memory_space<vmem>>, vector<1x96x128xbf16>
    %97 = vector.shape_cast %96 : vector<1x96x128xbf16> to vector<96x128xbf16>
    %98 = arith.truncf %95 : vector<8x96xf32> to vector<8x96xbf16>
    %cst_73 = arith.constant dense<0.000000e+00> : vector<8x128xf32>
    %99 = tpu.matmul %98, %97, %cst_73 {dimension_numbers = #tpu.dot_dimension_numbers<[1], [0], [0], [1], [0, 0, 1, 1], [], []>} : vector<8x96xbf16>, vector<96x128xbf16>, vector<8x128xf32> -> vector<8x128xf32>
    %100 = arith.addf %94, %99 : vector<8x128xf32>
    %101 = vector.extract_strided_slice %89 {offsets = [16, 0], sizes = [8, 96], strides = [1, 1]} : vector<48x96xf32> to vector<8x96xf32>
    %c2_74 = arith.constant 2 : index
    %c0_75 = arith.constant 0 : index
    %c0_76 = arith.constant 0 : index
    %102 = vector.load %arg9[%c2_74, %c0_75, %c0_76] : memref<6x96x128xbf16, #tpu.memory_space<vmem>>, vector<1x96x128xbf16>
    %103 = vector.shape_cast %102 : vector<1x96x128xbf16> to vector<96x128xbf16>
    %104 = arith.truncf %101 : vector<8x96xf32> to vector<8x96xbf16>
    %cst_77 = arith.constant dense<0.000000e+00> : vector<8x128xf32>
    %105 = tpu.matmul %104, %103, %cst_77 {dimension_numbers = #tpu.dot_dimension_numbers<[1], [0], [0], [1], [0, 0, 1, 1], [], []>} : vector<8x96xbf16>, vector<96x128xbf16>, vector<8x128xf32> -> vector<8x128xf32>
    %106 = arith.addf %100, %105 : vector<8x128xf32>
    %107 = vector.extract_strided_slice %89 {offsets = [24, 0], sizes = [8, 96], strides = [1, 1]} : vector<48x96xf32> to vector<8x96xf32>
    %c3_78 = arith.constant 3 : index
    %c0_79 = arith.constant 0 : index
    %c0_80 = arith.constant 0 : index
    %108 = vector.load %arg9[%c3_78, %c0_79, %c0_80] : memref<6x96x128xbf16, #tpu.memory_space<vmem>>, vector<1x96x128xbf16>
    %109 = vector.shape_cast %108 : vector<1x96x128xbf16> to vector<96x128xbf16>
    %110 = arith.truncf %107 : vector<8x96xf32> to vector<8x96xbf16>
    %cst_81 = arith.constant dense<0.000000e+00> : vector<8x128xf32>
    %111 = tpu.matmul %110, %109, %cst_81 {dimension_numbers = #tpu.dot_dimension_numbers<[1], [0], [0], [1], [0, 0, 1, 1], [], []>} : vector<8x96xbf16>, vector<96x128xbf16>, vector<8x128xf32> -> vector<8x128xf32>
    %112 = arith.addf %106, %111 : vector<8x128xf32>
    %113 = vector.extract_strided_slice %89 {offsets = [32, 0], sizes = [8, 96], strides = [1, 1]} : vector<48x96xf32> to vector<8x96xf32>
    %c4_82 = arith.constant 4 : index
    %c0_83 = arith.constant 0 : index
    %c0_84 = arith.constant 0 : index
    %114 = vector.load %arg9[%c4_82, %c0_83, %c0_84] : memref<6x96x128xbf16, #tpu.memory_space<vmem>>, vector<1x96x128xbf16>
    %115 = vector.shape_cast %114 : vector<1x96x128xbf16> to vector<96x128xbf16>
    %116 = arith.truncf %113 : vector<8x96xf32> to vector<8x96xbf16>
    %cst_85 = arith.constant dense<0.000000e+00> : vector<8x128xf32>
    %117 = tpu.matmul %116, %115, %cst_85 {dimension_numbers = #tpu.dot_dimension_numbers<[1], [0], [0], [1], [0, 0, 1, 1], [], []>} : vector<8x96xbf16>, vector<96x128xbf16>, vector<8x128xf32> -> vector<8x128xf32>
    %118 = arith.addf %112, %117 : vector<8x128xf32>
    %119 = vector.extract_strided_slice %89 {offsets = [40, 0], sizes = [8, 96], strides = [1, 1]} : vector<48x96xf32> to vector<8x96xf32>
    %c5 = arith.constant 5 : index
    %c0_86 = arith.constant 0 : index
    %c0_87 = arith.constant 0 : index
    %120 = vector.load %arg9[%c5, %c0_86, %c0_87] : memref<6x96x128xbf16, #tpu.memory_space<vmem>>, vector<1x96x128xbf16>
    %121 = vector.shape_cast %120 : vector<1x96x128xbf16> to vector<96x128xbf16>
    %122 = arith.truncf %119 : vector<8x96xf32> to vector<8x96xbf16>
    %cst_88 = arith.constant dense<0.000000e+00> : vector<8x128xf32>
    %123 = tpu.matmul %122, %121, %cst_88 {dimension_numbers = #tpu.dot_dimension_numbers<[1], [0], [0], [1], [0, 0, 1, 1], [], []>} : vector<8x96xbf16>, vector<96x128xbf16>, vector<8x128xf32> -> vector<8x128xf32>
    %124 = arith.addf %118, %123 : vector<8x128xf32>
    %c0_89 = arith.constant 0 : index
    %c0_90 = arith.constant 0 : index
    %125 = vector.load %arg10[%c0_89, %c0_90] : memref<1x128xf32, #tpu.memory_space<vmem>>, vector<1x128xf32>
    %126 = vector.broadcast %125 : vector<1x128xf32> to vector<8x128xf32>
    %127 = arith.addf %124, %126 : vector<8x128xf32>
    %cst_91 = arith.constant 0.000000e+00 : f32
    %128 = vector.broadcast %cst_91 : f32 to vector<8x128xf32>
    %129 = arith.maximumf %127, %128 : vector<8x128xf32>
    %c0_92 = arith.constant 0 : index
    %c0_93 = arith.constant 0 : index
    %130 = vector.load %arg11[%c0_92, %c0_93] : memref<128x128xbf16, #tpu.memory_space<vmem>>, vector<128x128xbf16>
    %131 = arith.truncf %129 : vector<8x128xf32> to vector<8x128xbf16>
    %cst_94 = arith.constant dense<0.000000e+00> : vector<8x128xf32>
    %132 = tpu.matmul %131, %130, %cst_94 {dimension_numbers = #tpu.dot_dimension_numbers<[1], [0], [0], [1], [0, 0, 1, 1], [], []>} : vector<8x128xbf16>, vector<128x128xbf16>, vector<8x128xf32> -> vector<8x128xf32>
    %c0_95 = arith.constant 0 : index
    %c0_96 = arith.constant 0 : index
    %133 = vector.load %arg12[%c0_95, %c0_96] : memref<1x128xf32, #tpu.memory_space<vmem>>, vector<1x128xf32>
    %134 = vector.broadcast %133 : vector<1x128xf32> to vector<8x128xf32>
    %135 = arith.addf %132, %134 : vector<8x128xf32>
    %cst_97 = arith.constant 0.000000e+00 : f32
    %136 = vector.broadcast %cst_97 : f32 to vector<8x128xf32>
    %137 = arith.maximumf %135, %136 : vector<8x128xf32>
    %c0_98 = arith.constant 0 : index
    %c0_99 = arith.constant 0 : index
    %138 = vector.load %arg13[%c0_98, %c0_99] : memref<128x128xbf16, #tpu.memory_space<vmem>>, vector<128x128xbf16>
    %139 = arith.truncf %137 : vector<8x128xf32> to vector<8x128xbf16>
    %cst_100 = arith.constant dense<0.000000e+00> : vector<8x128xf32>
    %140 = tpu.matmul %139, %138, %cst_100 {dimension_numbers = #tpu.dot_dimension_numbers<[1], [0], [0], [1], [0, 0, 1, 1], [], []>} : vector<8x128xbf16>, vector<128x128xbf16>, vector<8x128xf32> -> vector<8x128xf32>
    %c0_101 = arith.constant 0 : index
    %c0_102 = arith.constant 0 : index
    %141 = vector.load %arg14[%c0_101, %c0_102] : memref<1x128xf32, #tpu.memory_space<vmem>>, vector<1x128xf32>
    %142 = vector.broadcast %141 : vector<1x128xf32> to vector<8x128xf32>
    %143 = arith.addf %140, %142 : vector<8x128xf32>
    %cst_103 = arith.constant dense<0xFF800000> : vector<8xf32>
    %144 = vector.multi_reduction <maximumf>, %143, %cst_103 [1] : vector<8x128xf32> to vector<8xf32>
    %145 = vector.shape_cast %144 : vector<8xf32> to vector<8x1xf32>
    %146 = vector.broadcast %145 : vector<8x1xf32> to vector<8x128xf32>
    %147 = arith.subf %143, %146 : vector<8x128xf32>
    %148 = math.exp %147 : vector<8x128xf32>
    %cst_104 = arith.constant dense<0.000000e+00> : vector<8xf32>
    %149 = vector.multi_reduction <add>, %148, %cst_104 [1] : vector<8x128xf32> to vector<8xf32>
    %150 = vector.shape_cast %149 : vector<8xf32> to vector<8x1xf32>
    %151 = vector.broadcast %150 : vector<8x1xf32> to vector<8x128xf32>
    %152 = arith.divf %148, %151 : vector<8x128xf32>
    %c0_105 = arith.constant 0 : index
    %c0_106 = arith.constant 0 : index
    %153 = vector.load %arg15[%c0_105, %c0_106] : memref<8x128xf32, #tpu.memory_space<vmem>>, vector<8x128xf32>
    tpu.vector_store %arg15[%c0_105, %c0_106], %152 {strides = array<i32>} : memref<8x128xf32, #tpu.memory_space<vmem>>, vector<8x128xf32>,
    return
  }
  func.func @transform_0(%arg0: i32) -> (i32, i32) {
    %c0_i32 = arith.constant 0 : i32
    %c0_i32_0 = arith.constant 0 : i32
    return %arg0, %c0_i32 : i32, i32
  }
  func.func @transform_1(%arg0: i32) -> (i32, i32, i32) {
    %c0_i32 = arith.constant 0 : i32
    %c0_i32_0 = arith.constant 0 : i32
    %c0_i32_1 = arith.constant 0 : i32
    %c0_i32_2 = arith.constant 0 : i32
    return %c0_i32, %c0_i32_0, %c0_i32_1 : i32, i32, i32
  }
  func.func @transform_2(%arg0: i32) -> (i32, i32) {
    %c0_i32 = arith.constant 0 : i32
    %c0_i32_0 = arith.constant 0 : i32
    %c0_i32_1 = arith.constant 0 : i32
    return %c0_i32, %c0_i32_0 : i32, i32
  }
  func.func @transform_3(%arg0: i32) -> (i32, i32, i32) {
    %c0_i32 = arith.constant 0 : i32
    %c0_i32_0 = arith.constant 0 : i32
    %c0_i32_1 = arith.constant 0 : i32
    %c0_i32_2 = arith.constant 0 : i32
    return %c0_i32, %c0_i32_0, %c0_i32_1 : i32, i32, i32
  }
  func.func @transform_4(%arg0: i32) -> (i32, i32) {
    %c0_i32 = arith.constant 0 : i32
    %c0_i32_0 = arith.constant 0 : i32
    %c0_i32_1 = arith.constant 0 : i32
    return %c0_i32, %c0_i32_0 : i32, i32
  }
  func.func @transform_5(%arg0: i32) -> (i32, i32, i32) {
    %c0_i32 = arith.constant 0 : i32
    %c0_i32_0 = arith.constant 0 : i32
    %c0_i32_1 = arith.constant 0 : i32
    %c0_i32_2 = arith.constant 0 : i32
    return %c0_i32, %c0_i32_0, %c0_i32_1 : i32, i32, i32
  }
  func.func @transform_6(%arg0: i32) -> (i32, i32, i32) {
    %c0_i32 = arith.constant 0 : i32
    %c0_i32_0 = arith.constant 0 : i32
    %c0_i32_1 = arith.constant 0 : i32
    %c0_i32_2 = arith.constant 0 : i32
    return %c0_i32, %c0_i32_0, %c0_i32_1 : i32, i32, i32
  }
  func.func @transform_7(%arg0: i32) -> (i32, i32, i32) {
    %c0_i32 = arith.constant 0 : i32
    %c0_i32_0 = arith.constant 0 : i32
    %c0_i32_1 = arith.constant 0 : i32
    %c0_i32_2 = arith.constant 0 : i32
    return %c0_i32, %c0_i32_0, %c0_i32_1 : i32, i32, i32
  }
  func.func @transform_8(%arg0: i32) -> (i32, i32, i32) {
    %c0_i32 = arith.constant 0 : i32
    %c0_i32_0 = arith.constant 0 : i32
    %c0_i32_1 = arith.constant 0 : i32
    %c0_i32_2 = arith.constant 0 : i32
    return %c0_i32, %c0_i32_0, %c0_i32_1 : i32, i32, i32
  }
  func.func @transform_9(%arg0: i32) -> (i32, i32) {
    %c0_i32 = arith.constant 0 : i32
    %c0_i32_0 = arith.constant 0 : i32
    %c0_i32_1 = arith.constant 0 : i32
    return %c0_i32, %c0_i32_0 : i32, i32
  }
  func.func @transform_10(%arg0: i32) -> (i32, i32) {
    %c0_i32 = arith.constant 0 : i32
    %c0_i32_0 = arith.constant 0 : i32
    %c0_i32_1 = arith.constant 0 : i32
    return %c0_i32, %c0_i32_0 : i32, i32
  }
  func.func @transform_11(%arg0: i32) -> (i32, i32) {
    %c0_i32 = arith.constant 0 : i32
    %c0_i32_0 = arith.constant 0 : i32
    %c0_i32_1 = arith.constant 0 : i32
    return %c0_i32, %c0_i32_0 : i32, i32
  }
  func.func @transform_12(%arg0: i32) -> (i32, i32) {
    %c0_i32 = arith.constant 0 : i32
    %c0_i32_0 = arith.constant 0 : i32
    %c0_i32_1 = arith.constant 0 : i32
    return %c0_i32, %c0_i32_0 : i32, i32
  }
  func.func @transform_13(%arg0: i32) -> (i32, i32) {
    %c0_i32 = arith.constant 0 : i32
    %c0_i32_0 = arith.constant 0 : i32
    %c0_i32_1 = arith.constant 0 : i32
    return %c0_i32, %c0_i32_0 : i32, i32
  }
  func.func @transform_14(%arg0: i32) -> (i32, i32) {
    %c0_i32 = arith.constant 0 : i32
    %c0_i32_0 = arith.constant 0 : i32
    return %arg0, %c0_i32 : i32, i32
  }
}

</mosaic_0001>

<bundles_post_ra>
// kernel: lucida_forward.1
= control target key start
LH: loop header
LB: loop body
LE: loop exit
PB: predicated region body
PF: predicated region fallthrough
CT: control target
= control target key end

     0   :  { %v6276_v1 = vmov 0   ;;  %vm105_vm0 = vsmask.f32 7424  ;;  %vm253_vm1 = vcmask 261120   ;;  %vm1123_vm2 = vsmask.f32 6400  ;;  %s8169_s1 = inlined_call_operand.vmem [shape: bf16[5,32,168], index: 1, kind: input, shape index: {}]   ;;  %s8170_s0 = inlined_call_operand.vmem [shape: f32[256,32], index: 0, kind: input, shape index: {}]   ;;  %s8171_s5 = inlined_call_operand.vmem [shape: bf16[2,168,84], index: 5, kind: input, shape index: {}]   ;;  %s8172_s2 = inlined_call_operand.vmem [shape: f32[1,168], index: 2, kind: input, shape index: {}]   ;;  %s8173_s3 = inlined_call_operand.vmem [shape: bf16[3,84,192], index: 3, kind: input, shape index: {}]   ;;  %s8174_s6 = inlined_call_operand.vmem [shape: bf16[2,192,96], index: 6, kind: input, shape index: {}]   ;;  %s8175_s4 = inlined_call_operand.vmem [shape: f32[1,192], index: 4, kind: input, shape index: {}]   ;;  %s8176_s7 = inlined_call_operand.vmem [shape: bf16[2,48,126], index: 7, kind: input, shape index: {}]   ;;  %s8177_s8 = inlined_call_operand.vmem [shape: bf16[6,96,128], index: 8, kind: input, shape index: {}]   ;;  %s8178_s10 = inlined_call_operand.vmem [shape: bf16[128,128], index: 10, kind: input, shape index: {}]   ;;  %s8179_s12 = inlined_call_operand.vmem [shape: bf16[128,128], index: 12, kind: input, shape index: {}]   ;;  %s8180_s9 = inlined_call_operand.vmem [shape: f32[1,128], index: 9, kind: input, shape index: {}]   ;;  %s8181_s11 = inlined_call_operand.vmem [shape: f32[1,128], index: 11, kind: input, shape index: {}]   ;;  %s8182_s13 = inlined_call_operand.vmem [shape: f32[1,128], index: 13, kind: input, shape index: {}]   ;;  %s8183_s14 = inlined_call_operand.vmem [shape: f32[8,128], index: 14, kind: output, shape index: {}]  }
   0x1   :  { %v6087_v0 = vld [vmem:[%s8169_s1 + $0x24] ss:$8 sps:$4 sm:$0xff]   ;;  %334 = vmatprep.mubr.bf16.mxu0 %v6276_v1  ;;  %2183 = vmatprep.subr.bf16.mxu1 %v6276_v1  ;;  %v6089_v2 = vld [vmem:[%s8169_s1 + $0x20] ss:$8 sps:$4 sm:$0xff]   ;;  %v6090_v3 = vld [vmem:[%s8169_s1 + $0x34] ss:$8 sps:$4 sm:$0xff]  }
   0x2   :  { %302 = vmatprep.subr.bf16.mxu0 %v6087_v0  ;;  %v6092_v4 = vld [vmem:[%s8169_s1 + $0x30] ss:$8 sps:$4 sm:$0xff]   ;;  %v48_v5 = vld [vmem:[%s8170_s0] sm:$0xff]  ;;  %v49_v6 = vld [vmem:[%s8170_s0 + $0x8] sm:$0xff]  ;;  %vm761_vm3 = vcmask 1046528   ;;  %vm1517_vm4 = vcmask 1045504  }
   0x3   :  { %303 = vmatpush1.bf16.msra.mxu0 %v6089_v2  ;;  %v50_v7 = vld [vmem:[%s8170_s0 + $0x10] sm:$0xff]  ;;  %v51_v8 = vld [vmem:[%s8170_s0 + $0x18] sm:$0xff]  ;;  %v6380_v9 = vpack.c.bf16 %v49_v6, %v48_v5  ;;  %v52_v11 = vld [vmem:[%s8170_s0 + $0x20] sm:$0xff]  ;;  %vm2179_vm5 = vcmask 1043456   ;;  %vm2130_vm6 = vcmask 326656   ;;  %vm2912_vm7 = vcmask 1041408  }
   0x4   :  { %304 = vmatprep.subr.bf16.mxu0 %v6090_v3  ;;  %v6382_v10 = vpack.c.bf16 %v51_v8, %v50_v7  ;;  %v53_v12 = vld [vmem:[%s8170_s0 + $0x28] sm:$0xff]  ;;  %v54_v22 = vld [vmem:[%s8170_s0 + $0x30] sm:$0xff]  ;;  %v55_v23 = vld [vmem:[%s8170_s0 + $0x38] sm:$0xff]  ;;  %vm2657_vm8 = vcmask 683008   ;;  %vm2625_vm9 = vcmask 687104   ;;  %vm3675_vm10 = vcmask 523264  }
   0x5   :  { %v107_v13 = vshrl.u32 %v6380_v9, 16  ;;  %v109_v14 = vshll.u32 %v6380_v9, 16  ;;  %v6393_v16 = vpack.c.bf16 %v53_v12, %v52_v11  ;;  %v6093_v24 = vld [vmem:[%s8169_s1] ss:$8 sps:$4 sm:$0xff]   ;;  %v6095_v25 = vld [vmem:[%s8169_s1 + $0x4] ss:$8 sps:$4 sm:$0xff]   ;;  %v6422_v29 = vpack.c.bf16 %v55_v23, %v54_v22 }
   0x6   :  { %v114_v15 = vshll.u32 %v6382_v10, 16  ;;  %v118_v20 = vshrl.u32 %v6382_v10, 16  ;;  %v56_v30 = vld [vmem:[%s8170_s0 + $0x40] sm:$0xff]  ;;  %v57_v31 = vld [vmem:[%s8170_s0 + $0x48] sm:$0xff]  ;;  %v6096_v32 = vld [vmem:[%s8169_s1 + $0x10] ss:$8 sps:$4 sm:$0xff]  }
   0x7   :  { %305 = vmatpush1.bf16.msra.mxu0 %v6092_v4  ;;  %v111_v17 = vrot.slane %v109_v14, 1  ;;  %v122_v21 = vshll.u32 %v6393_v16, 16  ;;  %v6098_v33 = vld [vmem:[%s8169_s1 + $0x14] ss:$8 sps:$4 sm:$0xff]   ;;  %v126_v35 = vshrl.u32 %v6393_v16, 16  ;;  %v130_v36 = vshll.u32 %v6422_v29, 16 }
   0x8   :  { %v116_v18 = vrot.slane %v114_v15, 1  ;;  %547 = vmatprep.subr.bf16.mxu0 %v6095_v25  ;;  %v6445_v39 = vpack.c.bf16 %v57_v31, %v56_v30  ;;  %v134_v41 = vshrl.u32 %v6422_v29, 16  ;;  %v58_v43 = vld [vmem:[%s8170_s0 + $0x50] sm:$0xff]  ;;  %v59_v44 = vld [vmem:[%s8170_s0 + $0x58] sm:$0xff]  ;;  %v60_v51 = vld [vmem:[%s8170_s0 + $0x60] sm:$0xff]  ;;  %vm6278_vm11 = vmmov 0  }
   0x9   :  { %v112_v19 = vor.u32 %v111_v17, %v107_v13  ;;  %v124_v28 = vrot.slane %v122_v21, 1  ;;  %v132_v38 = vrot.slane %v130_v36, 1  ;;  %v6462_v47 = vpack.c.bf16 %v59_v44, %v58_v43  ;;  %v61_v52 = vld [vmem:[%s8170_s0 + $0x68] sm:$0xff]  ;;  %v62_v59 = vld [vmem:[%s8170_s0 + $0x70] sm:$0xff]  ;;  %v63_v60 = vld [vmem:[%s8170_s0 + $0x78] sm:$0xff] }
   0xa   :  { %v120_v27 = vor.u32 %v118_v20, %v116_v18  ;;  %v138_v42 = vshll.u32 %v6445_v39, 16  ;;  %v142_v49 = vshrl.u32 %v6445_v39, 16  ;;  %v6479_v55 = vpack.c.bf16 %v61_v52, %v60_v51  ;;  %v64_v4 = vld [vmem:[%s8170_s0 + $0x80] sm:$0xff]  ;;  %v65_v5 = vld [vmem:[%s8170_s0 + $0x88] sm:$0xff]  ;;  %v71_v43 = vld [vmem:[%s8170_s0 + $0xb8] sm:$0xff] }
   0xb   :  { %v117_v26 = vsel %vm105_vm0, %v112_v19, %v116_v18  ;;  %v128_v37 = vor.u32 %v126_v35, %v124_v28  ;;  %v136_v45 = vor.u32 %v134_v41, %v132_v38  ;;  %v146_v50 = vshll.u32 %v6462_v47, 16  ;;  %v66_v18 = vld [vmem:[%s8170_s0 + $0x90] sm:$0xff]  ;;  %v67_v19 = vld [vmem:[%s8170_s0 + $0x98] sm:$0xff]  ;;  %v69_v30 = vld [vmem:[%s8170_s0 + $0xa8] sm:$0xff] }
   0xc   :  { %5019 = vmatmul.mubr.msk.bf16.vlgmr.msra.gmra.mrb[0].mxu0 %vm253_vm1, %v117_v26  ;;  %v125_v34 = vsel %vm105_vm0, %v120_v27, %v124_v28  ;;  %v140_v46 = vrot.slane %v138_v42, 1  ;;  %v150_v57 = vshrl.u32 %v6462_v47, 16  ;;  %v154_v58 = vshll.u32 %v6479_v55, 16  ;;  %v68_v28 = vld [vmem:[%s8170_s0 + $0xa0] sm:$0xff] }
   0xd   :  { %344 = vmatprep.mubr.bf16.mxu0 %v6276_v1  ;;  %548 = vmatpush1.bf16.msra.mxu0 %v6093_v24  ;;  %v133_v40 = vsel %vm105_vm0, %v128_v37, %v132_v38  ;;  %v148_v54 = vrot.slane %v146_v50, 1  ;;  %v6496_v63 = vpack.c.bf16 %v63_v60, %v62_v59  ;;  %v158_v2 = vshrl.u32 %v6479_v55, 16  ;;  %v6101_v44 = vld [vmem:[%s8169_s1 + $0x44] ss:$8 sps:$4 sm:$0xff]  }
   0xe   :  { %549 = vmatprep.subr.bf16.mxu0 %v6098_v33  ;;  %v141_v48 = vsel %vm105_vm0, %v136_v45, %v140_v46  ;;  %v144_v53 = vor.u32 %v142_v49, %v140_v46  ;;  %v156_v62 = vrot.slane %v154_v58, 1  ;;  %v6513_v8 = vpack.c.bf16 %v65_v5, %v64_v4  ;;  %v74_v5 = vld [vmem:[%s8170_s0 + $0xd0] sm:$0xff] }
   0xf   :  { %v152_v61 = vor.u32 %v150_v57, %v148_v54  ;;  %v162_v3 = vshll.u32 %v6496_v63, 16  ;;  %v166_v12 = vshrl.u32 %v6496_v63, 16  ;;  %v6530_v24 = vpack.c.bf16 %v67_v19, %v66_v18 }
  0x10   :  { %v149_v56 = vsel %vm105_vm0, %v144_v53, %v148_v54  ;;  %v160_v6 = vor.u32 %v158_v2, %v156_v62  ;;  %v170_v17 = vshll.u32 %v6513_v8, 16  ;;  %v174_v26 = vshrl.u32 %v6513_v8, 16  ;;  %v72_v54 = vld [vmem:[%s8170_s0 + $0xc0] sm:$0xff] }
  0x11   :  { %550 = vmatpush1.bf16.msra.mxu0 %v6096_v32  ;;  %v157_v0 = vsel %vm105_vm0, %v152_v61, %v156_v62  ;;  %v164_v7 = vrot.slane %v162_v3, 1  ;;  %v178_v27 = vshll.u32 %v6530_v24, 16  ;;  %v6547_v33 = vpack.c.bf16 %v69_v30, %v68_v28  ;;  %v77_v28 = vld [vmem:[%s8170_s0 + $0xe8] sm:$0xff] }
  0x12   :  { %v172_v23 = vrot.slane %v170_v17, 1  ;;  %v182_v37 = vshrl.u32 %v6530_v24, 16  ;;  %861 = vmatprep.subr.bf16.mxu0 %v6101_v44  ;;  %v78_v44 = vld [vmem:[%s8170_s0 + $0xf0] sm:$0xff]  ;;  %vm4036_vm12 = vcmask 1031168   ;;  %vm4264_vm13 = vcmask 785408  }
  0x13   :  { %v165_v11 = vsel %vm105_vm0, %v160_v6, %v164_v7  ;;  %v168_v22 = vor.u32 %v166_v12, %v164_v7  ;;  %v180_v32 = vrot.slane %v178_v27, 1  ;;  %v186_v38 = vshll.u32 %v6547_v33, 16  ;;  %v75_v6 = vld [vmem:[%s8170_s0 + $0xd8] sm:$0xff] }
  0x14   :  { %5020 = vmatmul.mubr.msk.bf16.gmra.mrb[4].mxu0 %vm253_vm1, %v125_v34  ;;  %v176_v31 = vor.u32 %v174_v26, %v172_v23  ;;  %v190_v52 = vshrl.u32 %v6547_v33, 16  ;;  %v6601_v18 = vpack.c.bf16 %v75_v6, %v74_v5 }
  0x15   :  { %354 = vmatprep.mubr.bf16.mxu0 %v6276_v1  ;;  %v173_v25 = vsel %vm105_vm0, %v168_v22, %v172_v23  ;;  %v184_v45 = vor.u32 %v182_v37, %v180_v32  ;;  %v188_v46 = vrot.slane %v186_v38, 1 }
  0x16   :  { %v181_v34 = vsel %vm105_vm0, %v176_v31, %v180_v32  ;;  %v210_v23 = vshll.u32 %v6601_v18, 16 }
  0x17   :  { %v189_v51 = vsel %vm105_vm0, %v184_v45, %v188_v46  ;;  %v192_v59 = vor.u32 %v190_v52, %v188_v46  ;;  %v79_v45 = vld [vmem:[%s8170_s0 + $0xf8] sm:$0xff] }
  0x18   :  { %v212_v31 = vrot.slane %v210_v23, 1 }
  0x1c   :  { %5021 = vmatmul.mubr.msk.bf16.gmra.mrb[8].mxu0 %vm253_vm1, %v133_v40  ;;  %v70_v40 = vld [vmem:[%s8170_s0 + $0xb0] sm:$0xff] }
  0x1d   :  { %364 = vmatprep.mubr.bf16.mxu0 %v6276_v1 }
  0x24   :  { %5022 = vmatmul.mubr.msk.bf16.gmra.mrb[12].mxu0 %vm253_vm1, %v141_v48  ;;  %v6567_v48 = vpack.c.bf16 %v71_v43, %v70_v40  ;;  %v214_v40 = vshrl.u32 %v6601_v18, 16 }
  0x25   :  { %374 = vmatprep.mubr.bf16.mxu0 %v6276_v1 }
  0x26   :  { %v194_v53 = vshll.u32 %v6567_v48, 16  ;;  %v216_v46 = vor.u32 %v214_v40, %v212_v31 }
  0x28   :  { %v196_v60 = vrot.slane %v194_v53, 1 }
  0x2a   :  { %v197_v62 = vsel %vm105_vm0, %v192_v59, %v196_v60 }
  0x2c   :  { %5023 = vmatmul.mubr.msk.bf16.gmra.mrb[16].mxu0 %vm253_vm1, %v149_v56  ;;  %v73_v56 = vld [vmem:[%s8170_s0 + $0xc8] sm:$0xff] }
  0x2d   :  { %384 = vmatprep.mubr.bf16.mxu0 %v6276_v1  ;;  %v6584_v61 = vpack.c.bf16 %v73_v56, %v72_v54  ;;  %v6635_v54 = vpack.c.bf16 %v79_v45, %v78_v44  ;;  %v1128_v44 = vrot.slane %v114_v15, 2  ;;  %v1127_v45 = vrot.slane %v118_v20, 1  ;;  %v6105_v20 = vld [vmem:[%s8169_s1 + $0x60] ss:$8 sps:$4 sm:$0xff]  }
  0x2f   :  { %v202_v4 = vshll.u32 %v6584_v61, 16  ;;  %v206_v22 = vshrl.u32 %v6584_v61, 16 }
  0x34   :  { %5024 = vmatmul.mubr.msk.bf16.gmra.mrb[20].mxu0 %vm253_vm1, %v157_v0  ;;  %v198_v0 = vshrl.u32 %v6567_v48, 16 }
  0x35   :  { %394 = vmatprep.mubr.bf16.mxu0 %v6276_v1 }
  0x36   :  { %v200_v7 = vor.u32 %v198_v0, %v196_v60  ;;  %v226_v60 = vshll.u32 %v6635_v54, 16 }
  0x38   :  { %v228_v5 = vrot.slane %v226_v60, 1 }
  0x3c   :  { %5025 = vmatmul.mubr.msk.bf16.gmra.mrb[24].mxu0 %vm253_vm1, %v165_v11  ;;  %v204_v11 = vrot.slane %v202_v4, 1 }
  0x3d   :  { %404 = vmatprep.mubr.bf16.mxu0 %v6276_v1 }
  0x3e   :  { %v205_v19 = vsel %vm105_vm0, %v200_v7, %v204_v11  ;;  %v208_v30 = vor.u32 %v206_v22, %v204_v11  ;;  %v230_v7 = vshrl.u32 %v6635_v54, 16 }
  0x40   :  { %v232_v11 = vor.u32 %v230_v7, %v228_v5 }
  0x44   :  { %5026 = vmatmul.mubr.msk.bf16.gmra.mrb[28].mxu0 %vm253_vm1, %v173_v25  ;;  %v76_v25 = vld [vmem:[%s8170_s0 + $0xe0] sm:$0xff] }
  0x45   :  { %414 = vmatprep.mubr.bf16.mxu0 %v6276_v1  ;;  %v6618_v32 = vpack.c.bf16 %v77_v28, %v76_v25  ;;  %v6104_v25 = vld [vmem:[%s8169_s1 + $0x54] ss:$8 sps:$4 sm:$0xff]   ;;  %v6102_v28 = vld [vmem:[%s8169_s1 + $0x50] ss:$8 sps:$4 sm:$0xff]  }
  0x47   :  { %v218_v43 = vshll.u32 %v6618_v32, 16  ;;  %v222_v59 = vshrl.u32 %v6618_v32, 16 }
  0x4c   :  { %5027 = vmatmul.mubr.msk.bf16.gmra.mrb[32].mxu0 %vm253_vm1, %v181_v34  ;;  %v213_v34 = vsel %vm105_vm0, %v208_v30, %v212_v31  ;;  %v6107_v30 = vld [vmem:[%s8169_s1 + $0x64] ss:$8 sps:$4 sm:$0xff]   ;;  %v1124_v31 = vrot.slane %v107_v13, 1 }
  0x4d   :  { %424 = vmatprep.mubr.bf16.mxu0 %v6276_v1 }
  0x54   :  { %5028 = vmatmul.mubr.msk.bf16.gmra.mrb[36].mxu0 %vm253_vm1, %v189_v51  ;;  %v220_v51 = vrot.slane %v218_v43, 1 }
  0x55   :  { %434 = vmatprep.mubr.bf16.mxu0 %v6276_v1 }
  0x56   :  { %v221_v56 = vsel %vm105_vm0, %v216_v46, %v220_v51  ;;  %v762_v46 = vrot.slane %v6380_v9, 1 }
  0x5c   :  { %5029 = vmatmul.mubr.msk.bf16.gmra.mrb[40].mxu0 %vm253_vm1, %v197_v62  ;;  %v224_v62 = vor.u32 %v222_v59, %v220_v51  ;;  %v763_v51 = vrot.slane %v6382_v10, 1 }
  0x5d   :  { %444 = vmatprep.mubr.bf16.mxu0 %v6276_v1 }
  0x5e   :  { %v229_v6 = vsel %vm105_vm0, %v224_v62, %v228_v5  ;;  %v764_v15 = vsel %vm761_vm3, %v762_v46, %v763_v51  ;;  %v6110_v62 = vld [vmem:[%s8169_s1 + $0x74] ss:$8 sps:$4 sm:$0xff]   ;;  %v765_v5 = vrot.slane %v6393_v16, 1  ;;  %v775_v46 = vrot.slane %v6496_v63, 1 }
  0x64   :  { %5030 = vmatmul.mubr.msk.bf16.gmra.mrb[44].mxu0 %vm253_vm1, %v205_v19  ;;  %v6099_v19 = vld [vmem:[%s8169_s1 + $0x40] ss:$8 sps:$4 sm:$0xff]  }
  0x65   :  { %454 = vmatprep.mubr.bf16.mxu0 %v6276_v1 }
  0x6c   :  { %5031 = vmatmul.mubr.msk.bf16.gmra.mrb[48].mxu0 %vm253_vm1, %v213_v34  ;;  %v1125_v34 = vrot.slane %v109_v14, 2 }
  0x6d   :  { %464 = vmatprep.mubr.bf16.mxu0 %v6276_v1 }
  0x6e   :  { %v1126_v13 = vor.u32 %v1125_v34, %v1124_v31  ;;  %v771_v31 = vrot.slane %v6462_v47, 1 }
  0x74   :  { %5032 = vmatmul.mubr.msk.bf16.gmra.mrb[52].mxu0 %vm253_vm1, %v221_v56  ;;  %v6724_v56 = vor.u32 %v1128_v44, %v1127_v45  ;;  %v773_v44 = vrot.slane %v6479_v55, 1 }
  0x75   :  { %474 = vmatprep.mubr.bf16.mxu0 %v6276_v1 }
  0x76   :  { %v6728_v14 = vsel %vm1123_vm2, %v1126_v13, %v6724_v56  ;;  %v774_v45 = vsel %vm761_vm3, %v771_v31, %v773_v44  ;;  %v777_v13 = vrot.slane %v6513_v8, 1 }
  0x7c   :  { %5033 = vmatmul.mubr.msk.bf16.gmra.mrb[56].mxu0 %vm253_vm1, %v229_v6  ;;  %v6108_v6 = vld [vmem:[%s8169_s1 + $0x70] ss:$8 sps:$4 sm:$0xff]  }
  0x7d   :  { %484 = vmatprep.mubr.bf16.mxu0 %v6276_v1 }
  0x84   :  { %5034 = vmatmul.mubr.msk.bf16.gmra.mrb[60].mxu0 %vm253_vm1, %v232_v11  ;;  %v766_v11 = vsel %vm761_vm3, %v763_v51, %v765_v5  ;;  %v776_v51 = vsel %vm761_vm3, %v773_v44, %v775_v46  ;;  %v789_v44 = vrot.slane %v6618_v32, 1 }
  0x85   :  { %579 = vmatprep.mubr.bf16.mxu0 %v6276_v1 }
  0x8c   :  { %5039 = vmatmul.mubr.msk.bf16.vlgmr.msra.gmra.mrb[0].mxu0 %vm253_vm1, %v6380_v9 }
  0x8d   :  { %589 = vmatprep.mubr.bf16.mxu0 %v6276_v1  ;;  %862 = vmatpush1.bf16.msra.mxu0 %v6099_v19  ;;  %v767_v19 = vrot.slane %v6422_v29, 1 }
  0x8e   :  { %863 = vmatprep.subr.bf16.mxu0 %v6104_v25 }
  0x8f   :  { %v768_v25 = vsel %vm761_vm3, %v765_v5, %v767_v19  ;;  %v6113_v5 = vld [vmem:[%s8169_s1 + $0x84] ss:$8 sps:$4 sm:$0xff]  }
  0x91   :  { %864 = vmatpush1.bf16.msra.mxu0 %v6102_v28  ;;  %v769_v28 = vrot.slane %v6445_v39, 1 }
  0x92   :  { %1255 = vmatprep.subr.bf16.mxu0 %v6107_v30 }
  0x93   :  { %v770_v30 = vsel %vm761_vm3, %v767_v19, %v769_v28  ;;  %v772_v34 = vsel %vm761_vm3, %v769_v28, %v771_v31  ;;  %v783_v19 = vrot.slane %v6567_v48, 1  ;;  %v785_v28 = vrot.slane %v6584_v61, 1 }
  0x94   :  { %5040 = vmatmul.mubr.msk.bf16.gmra.mrb[4].mxu0 %vm253_vm1, %v6382_v10  ;;  %v787_v31 = vrot.slane %v6601_v18, 1 }
  0x95   :  { %599 = vmatprep.mubr.bf16.mxu0 %v6276_v1 }
  0x9c   :  { %5041 = vmatmul.mubr.msk.bf16.gmra.mrb[8].mxu0 %vm253_vm1, %v6393_v16 }
  0x9d   :  { %609 = vmatprep.mubr.bf16.mxu0 %v6276_v1 }
  0xa4   :  { %5042 = vmatmul.mubr.msk.bf16.gmra.mrb[12].mxu0 %vm253_vm1, %v6422_v29 }
  0xa5   :  { %619 = vmatprep.mubr.bf16.mxu0 %v6276_v1 }
  0xac   :  { %5043 = vmatmul.mubr.msk.bf16.gmra.mrb[16].mxu0 %vm253_vm1, %v6445_v39 }
  0xad   :  { %629 = vmatprep.mubr.bf16.mxu0 %v6276_v1 }
  0xb4   :  { %5044 = vmatmul.mubr.msk.bf16.gmra.mrb[20].mxu0 %vm253_vm1, %v6462_v47 }
  0xb5   :  { %639 = vmatprep.mubr.bf16.mxu0 %v6276_v1 }
  0xbc   :  { %5045 = vmatmul.mubr.msk.bf16.gmra.mrb[24].mxu0 %vm253_vm1, %v6479_v55 }
  0xbd   :  { %649 = vmatprep.mubr.bf16.mxu0 %v6276_v1 }
  0xc4   :  { %5046 = vmatmul.mubr.msk.bf16.gmra.mrb[28].mxu0 %vm253_vm1, %v6496_v63 }
  0xc5   :  { %659 = vmatprep.mubr.bf16.mxu0 %v6276_v1 }
  0xcc   :  { %5047 = vmatmul.mubr.msk.bf16.gmra.mrb[32].mxu0 %vm253_vm1, %v6513_v8 }
  0xcd   :  { %669 = vmatprep.mubr.bf16.mxu0 %v6276_v1 }
  0xd4   :  { %5048 = vmatmul.mubr.msk.bf16.gmra.mrb[36].mxu0 %vm253_vm1, %v6530_v24 }
  0xd5   :  { %679 = vmatprep.mubr.bf16.mxu0 %v6276_v1 }
  0xdc   :  { %5049 = vmatmul.mubr.msk.bf16.gmra.mrb[40].mxu0 %vm253_vm1, %v6547_v33 }
  0xdd   :  { %689 = vmatprep.mubr.bf16.mxu0 %v6276_v1 }
  0xe4   :  { %5050 = vmatmul.mubr.msk.bf16.gmra.mrb[44].mxu0 %vm253_vm1, %v6567_v48 }
  0xe5   :  { %699 = vmatprep.mubr.bf16.mxu0 %v6276_v1 }
  0xec   :  { %5051 = vmatmul.mubr.msk.bf16.gmra.mrb[48].mxu0 %vm253_vm1, %v6584_v61 }
  0xed   :  { %709 = vmatprep.mubr.bf16.mxu0 %v6276_v1 }
  0xf4   :  { %5052 = vmatmul.mubr.msk.bf16.gmra.mrb[52].mxu0 %vm253_vm1, %v6601_v18 }
  0xf5   :  { %719 = vmatprep.mubr.bf16.mxu0 %v6276_v1 }
  0xfc   :  { %5053 = vmatmul.mubr.msk.bf16.gmra.mrb[56].mxu0 %vm253_vm1, %v6618_v32 }
  0xfd   :  { %729 = vmatprep.mubr.bf16.mxu0 %v6276_v1 }
 0x104   :  { %5054 = vmatmul.mubr.msk.bf16.gmra.mrb[60].mxu0 %vm253_vm1, %v6635_v54 }
 0x105   :  { %893 = vmatprep.mubr.bf16.mxu0 %v6276_v1 }
 0x10c   :  { %5063 = vmatmul.mubr.msk.bf16.vlgmr.msra.gmra.mrb[0].mxu0 %vm253_vm1, %v764_v15  ;;  %v778_v15 = vsel %vm761_vm3, %v775_v46, %v777_v13  ;;  %v791_v46 = vrot.slane %v6635_v54, 1 }
 0x10d   :  { %903 = vmatprep.mubr.bf16.mxu0 %v6276_v1  ;;  %1256 = vmatpush1.bf16.msra.mxu0 %v6105_v20  ;;  %v779_v20 = vrot.slane %v6530_v24, 1 }
 0x10e   :  { %1257 = vmatprep.subr.bf16.mxu0 %v6110_v62 }
 0x10f   :  { %v780_v62 = vsel %vm761_vm3, %v777_v13, %v779_v20  ;;  %v1131_v13 = vrot.slane %v126_v35, 1  ;;  %v6114_v35 = vld [vmem:[%s8169_s1 + $0x90] ss:$8 sps:$4 sm:$0xff]  }
 0x111   :  { %1258 = vmatpush1.bf16.msra.mxu0 %v6108_v6  ;;  %v781_v6 = vrot.slane %v6547_v33, 1 }
 0x112   :  { %1617 = vmatprep.subr.bf16.mxu0 %v6113_v5 }
 0x114   :  { %5064 = vmatmul.mubr.msk.bf16.gmra.mrb[4].mxu0 %vm253_vm1, %v766_v11  ;;  %v782_v11 = vsel %vm761_vm3, %v779_v20, %v781_v6  ;;  %v6111_v20 = vld [vmem:[%s8169_s1 + $0x80] ss:$8 sps:$4 sm:$0xff]  }
 0x115   :  { %913 = vmatprep.mubr.bf16.mxu0 %v6276_v1 }
 0x11c   :  { %5065 = vmatmul.mubr.msk.bf16.gmra.mrb[8].mxu0 %vm253_vm1, %v768_v25  ;;  %v784_v25 = vsel %vm761_vm3, %v781_v6, %v783_v19  ;;  %v1135_v6 = vrot.slane %v134_v41, 1 }
 0x11d   :  { %923 = vmatprep.mubr.bf16.mxu0 %v6276_v1 }
 0x124   :  { %5066 = vmatmul.mubr.msk.bf16.gmra.mrb[12].mxu0 %vm253_vm1, %v770_v30  ;;  %v786_v30 = vsel %vm761_vm3, %v783_v19, %v785_v28 }
 0x125   :  { %933 = vmatprep.mubr.bf16.mxu0 %v6276_v1 }
 0x12c   :  { %5067 = vmatmul.mubr.msk.bf16.gmra.mrb[16].mxu0 %vm253_vm1, %v772_v34  ;;  %v788_v34 = vsel %vm761_vm3, %v785_v28, %v787_v31  ;;  %v1143_v28 = vrot.slane %v150_v57, 1 }
 0x12d   :  { %943 = vmatprep.mubr.bf16.mxu0 %v6276_v1 }
 0x134   :  { %5068 = vmatmul.mubr.msk.bf16.gmra.mrb[20].mxu0 %vm253_vm1, %v774_v45  ;;  %v790_v45 = vsel %vm761_vm3, %v787_v31, %v789_v44  ;;  %v1147_v31 = vrot.slane %v158_v2, 1 }
 0x135   :  { %953 = vmatprep.mubr.bf16.mxu0 %v6276_v1 }
 0x13c   :  { %5069 = vmatmul.mubr.msk.bf16.gmra.mrb[24].mxu0 %vm253_vm1, %v776_v51  ;;  %v792_v51 = vsel %vm761_vm3, %v789_v44, %v791_v46  ;;  %v1151_v44 = vrot.slane %v166_v12, 1 }
 0x13d   :  { %963 = vmatprep.mubr.bf16.mxu0 %v6276_v1 }
 0x144   :  { %5070 = vmatmul.mubr.msk.bf16.gmra.mrb[28].mxu0 %vm253_vm1, %v778_v15  ;;  %v1132_v15 = vrot.slane %v122_v21, 2 }
 0x145   :  { %973 = vmatprep.mubr.bf16.mxu0 %v6276_v1 }
 0x146   :  { %v1133_v5 = vor.u32 %v1132_v15, %v1131_v13  ;;  %v1159_v13 = vrot.slane %v182_v37, 1  ;;  %v1160_v15 = vrot.slane %v178_v27, 2 }
 0x148   :  { %v1134_v21 = vsel %vm1123_vm2, %v6724_v56, %v1133_v5  ;;  %v1140_v56 = vrot.slane %v138_v42, 2 }
 0x14c   :  { %5071 = vmatmul.mubr.msk.bf16.gmra.mrb[32].mxu0 %vm253_vm1, %v780_v62  ;;  %v6116_v62 = vld [vmem:[%s8169_s1 + $0x94] ss:$8 sps:$4 sm:$0xff]  }
 0x14d   :  { %983 = vmatprep.mubr.bf16.mxu0 %v6276_v1 }
 0x154   :  { %5072 = vmatmul.mubr.msk.bf16.gmra.mrb[36].mxu0 %vm253_vm1, %v782_v11  ;;  %v1136_v11 = vrot.slane %v130_v36, 2 }
 0x155   :  { %993 = vmatprep.mubr.bf16.mxu0 %v6276_v1 }
 0x15c   :  { %5073 = vmatmul.mubr.msk.bf16.gmra.mrb[40].mxu0 %vm253_vm1, %v784_v25  ;;  %v1139_v25 = vrot.slane %v142_v49, 1 }
 0x15d   :  { %1003 = vmatprep.mubr.bf16.mxu0 %v6276_v1 }
 0x15e   :  { %v1141_v41 = vor.u32 %v1140_v56, %v1139_v25  ;;  %v1180_v25 = vrot.slane %v218_v43, 2  ;;  %v1183_v56 = vrot.slane %v230_v7, 1  ;;  %v1519_v7 = vrot.slane %v6382_v10, 2 }
 0x15f   :  { %v1521_v10 = vrot.slane %v6393_v16, 2  ;;  %v1523_v16 = vrot.slane %v6422_v29, 2  ;;  %v1525_v29 = vrot.slane %v6445_v39, 2 }
 0x164   :  { %5074 = vmatmul.mubr.msk.bf16.gmra.mrb[44].mxu0 %vm253_vm1, %v786_v30  ;;  %v1144_v30 = vrot.slane %v146_v50, 2 }
 0x165   :  { %1013 = vmatprep.mubr.bf16.mxu0 %v6276_v1 }
 0x166   :  { %v1145_v49 = vor.u32 %v1144_v30, %v1143_v28  ;;  %v6118_v28 = vld [vmem:[%s8171_s5 + $0x8] sm:$0xff]  }
 0x168   :  { %v1146_v42 = vsel %vm1123_vm2, %v1141_v41, %v1145_v49 }
 0x16c   :  { %5075 = vmatmul.mubr.msk.bf16.gmra.mrb[48].mxu0 %vm253_vm1, %v788_v34  ;;  %v1148_v34 = vrot.slane %v154_v58, 2 }
 0x16d   :  { %1023 = vmatprep.mubr.bf16.mxu0 %v6276_v1 }
 0x16e   :  { %v1149_v57 = vor.u32 %v1148_v34, %v1147_v31  ;;  %v6121_v31 = vld [vmem:[%s8171_s5 + $0x20] sm:$0xff]   ;;  %v6122_v34 = vld [vmem:[%s8171_s5 + $0x28] sm:$0xff]  }
 0x170   :  { %v1150_v50 = vsel %vm1123_vm2, %v1145_v49, %v1149_v57  ;;  %v6120_v49 = vld [vmem:[%s8171_s5 + $0x18] sm:$0xff]  }
 0x174   :  { %5076 = vmatmul.mubr.msk.bf16.gmra.mrb[52].mxu0 %vm253_vm1, %v790_v45  ;;  %v1152_v45 = vrot.slane %v162_v3, 2 }
 0x175   :  { %1033 = vmatprep.mubr.bf16.mxu0 %v6276_v1 }
 0x176   :  { %v1153_v2 = vor.u32 %v1152_v45, %v1151_v44  ;;  %v6124_v44 = vld [vmem:[%s8171_s5 + $0x38] sm:$0xff]   ;;  %v1526_v45 = vsel %vm1517_vm4, %v1523_v16, %v1525_v29 }
 0x178   :  { %v1154_v58 = vsel %vm1123_vm2, %v1149_v57, %v1153_v2  ;;  %v1524_v57 = vsel %vm1517_vm4, %v1521_v10, %v1523_v16  ;;  %v6129_v16 = vld [vmem:[%s8171_s5 + $0x5c] sm:$0xff]  }
 0x17c   :  { %5077 = vmatmul.mubr.msk.bf16.gmra.mrb[56].mxu0 %vm253_vm1, %v792_v51  ;;  %v1156_v51 = vrot.slane %v170_v17, 2 }
 0x17d   :  { %1043 = vmatprep.mubr.bf16.mxu0 %v6276_v1 }
 0x184   :  { %5078 = vmatmul.mubr.msk.bf16.gmra.mrb[60].mxu0 %vm253_vm1, %v791_v46  ;;  %v1155_v46 = vrot.slane %v174_v26, 1  ;;  %v1161_v26 = vor.u32 %v1160_v15, %v1159_v13 }
 0x185   :  { %1287 = vmatprep.mubr.bf16.mxu0 %v6276_v1 }
 0x186   :  { %v1157_v12 = vor.u32 %v1156_v51, %v1155_v46  ;;  %v1531_v51 = vrot.slane %v6496_v63, 2  ;;  %v1537_v63 = vrot.slane %v6547_v33, 2  ;;  %v6125_v33 = vld [vmem:[%s8171_s5 + $0x40] sm:$0xff]  }
 0x188   :  { %v1158_v3 = vsel %vm1123_vm2, %v1153_v2, %v1157_v12  ;;  %v1162_v17 = vsel %vm1123_vm2, %v1157_v12, %v1161_v26  ;;  %v1527_v2 = vrot.slane %v6462_v47, 2  ;;  %v1533_v47 = vrot.slane %v6513_v8, 2 }
 0x189   :  { %v1539_v8 = vrot.slane %v6567_v48, 2  ;;  %v6126_v48 = vld [vmem:[%s8171_s5 + $0x48] sm:$0xff]  }
 0x18a   :  { %v1528_v39 = vsel %vm1517_vm4, %v1525_v29, %v1527_v2 }
 0x18c   :  { %5087 = vmatmul.mubr.msk.bf16.vlgmr.msra.gmra.mrb[0].mxu0 %vm253_vm1, %v6728_v14  ;;  %v1137_v14 = vor.u32 %v1136_v11, %v1135_v6  ;;  %v1172_v6 = vrot.slane %v202_v4, 2  ;;  %v1175_v11 = vrot.slane %v214_v40, 1 }
 0x18d   :  { %1297 = vmatprep.mubr.bf16.mxu0 %v6276_v1  ;;  %1618 = vmatpush1.bf16.msra.mxu0 %v6111_v20  ;;  %v1163_v20 = vrot.slane %v190_v52, 1 }
 0x18e   :  { %1619 = vmatprep.subr.bf16.mxu0 %v6116_v62  ;;  %v1138_v19 = vsel %vm1123_vm2, %v1133_v5, %v1137_v14  ;;  %v1142_v36 = vsel %vm1123_vm2, %v1137_v14, %v1141_v41  ;;  %v1164_v62 = vrot.slane %v186_v38, 2  ;;  %v1167_v5 = vrot.slane %v198_v0, 1 }
 0x18f   :  { %v1176_v14 = vrot.slane %v210_v23, 2  ;;  %v1184_v41 = vrot.slane %v226_v60, 2  ;;  %v6117_v60 = vld [vmem:[%s8171_s5] sm:$0xff]  }
 0x190   :  { %v1165_v37 = vor.u32 %v1164_v62, %v1163_v20  ;;  %2184 = vmatpush1.bf16.msra.mxu1 %v6117_v60  ;;  %v1543_v20 = vrot.slane %v6601_v18, 2  ;;  %v1547_v18 = vrot.slane %v6635_v54, 2  ;;  %v6128_v60 = vld [vmem:[%s8171_s5 + $0x54] sm:$0xff]  }
 0x191   :  { %1620 = vmatpush1.bf16.msra.mxu0 %v6114_v35  ;;  %v1168_v35 = vrot.slane %v194_v53, 2  ;;  %2185 = vmatprep.subr.bf16.mxu1 %v6276_v1 }
 0x192   :  { %v1166_v27 = vsel %vm1123_vm2, %v1161_v26, %v1165_v37  ;;  %v1540_v26 = vsel %vm1517_vm4, %v1537_v63, %v1539_v8 }
 0x193   :  { %v1169_v52 = vor.u32 %v1168_v35, %v1167_v5 }
 0x194   :  { %5088 = vmatmul.mubr.msk.bf16.gmra.mrb[4].mxu0 %vm253_vm1, %v1134_v21  ;;  %v1171_v21 = vrot.slane %v206_v22, 1  ;;  %v1177_v22 = vor.u32 %v1176_v14, %v1175_v11  ;;  %2186 = vmatpush1.bf16.msra.mxu1 %v6118_v28 }
 0x195   :  { %1307 = vmatprep.mubr.bf16.mxu0 %v6276_v1  ;;  %v1170_v38 = vsel %vm1123_vm2, %v1165_v37, %v1169_v52  ;;  %2187 = vmatprep.subr.bf16.mxu1 %v6276_v1 }
 0x196   :  { %v1173_v0 = vor.u32 %v1172_v6, %v1171_v21  ;;  %v1874_v21 = vld [vmem:[%s8172_s2] sm:$0x3] }
 0x198   :  { %v1174_v53 = vsel %vm1123_vm2, %v1169_v52, %v1173_v0  ;;  %v1178_v4 = vsel %vm1123_vm2, %v1173_v0, %v1177_v22  ;;  %v1876_v52 = vlaneseq }
 0x19c   :  { %5089 = vmatmul.mubr.msk.bf16.gmra.mrb[8].mxu0 %vm253_vm1, %v1138_v19  ;;  %v1179_v19 = vrot.slane %v222_v59, 1  ;;  %v1185_v59 = vor.u32 %v1184_v41, %v1183_v56 }
 0x19d   :  { %1317 = vmatprep.mubr.bf16.mxu0 %v6276_v1 }
 0x19e   :  { %v1181_v40 = vor.u32 %v1180_v25, %v1179_v19 }
 0x1a0   :  { %v1182_v23 = vsel %vm1123_vm2, %v1177_v22, %v1181_v40  ;;  %v1186_v43 = vsel %vm1123_vm2, %v1181_v40, %v1185_v59 }
 0x1a4   :  { %5090 = vmatmul.mubr.msk.bf16.gmra.mrb[12].mxu0 %vm253_vm1, %v1142_v36  ;;  %v1518_v36 = vrot.slane %v6380_v9, 2  ;;  %v6119_v9 = vld [vmem:[%s8171_s5 + $0x10] sm:$0xff]  }
 0x1a5   :  { %1327 = vmatprep.mubr.bf16.mxu0 %v6276_v1  ;;  %2188 = vmatpush1.bf16.msra.mxu1 %v6119_v9 }
 0x1a6   :  { %v1520_v30 = vsel %vm1517_vm4, %v1518_v36, %v1519_v7  ;;  %2189 = vmatprep.subr.bf16.mxu1 %v6276_v1 }
 0x1a9   :  { %2190 = vmatpush1.bf16.msra.mxu1 %v6120_v49 }
 0x1aa   :  { %2191 = vmatprep.subr.bf16.mxu1 %v6276_v1 }
 0x1ac   :  { %5091 = vmatmul.mubr.msk.bf16.gmra.mrb[16].mxu0 %vm253_vm1, %v1146_v42  ;;  %v1522_v42 = vsel %vm1517_vm4, %v1519_v7, %v1521_v10 }
 0x1ad   :  { %1337 = vmatprep.mubr.bf16.mxu0 %v6276_v1  ;;  %2192 = vmatpush1.bf16.msra.mxu1 %v6121_v31 }
 0x1ae   :  { %2193 = vmatprep.subr.bf16.mxu1 %v6276_v1 }
 0x1b1   :  { %2194 = vmatpush1.bf16.msra.mxu1 %v6122_v34 }
 0x1b2   :  { %2195 = vmatprep.subr.bf16.mxu1 %v6276_v1 }
 0x1b4   :  { %5092 = vmatmul.mubr.msk.bf16.gmra.mrb[20].mxu0 %vm253_vm1, %v1150_v50  ;;  %v6123_v50 = vld [vmem:[%s8171_s5 + $0x30] sm:$0xff]  }
 0x1b5   :  { %1347 = vmatprep.mubr.bf16.mxu0 %v6276_v1  ;;  %2196 = vmatpush1.bf16.msra.mxu1 %v6123_v50 }
 0x1b6   :  { %2197 = vmatprep.subr.bf16.mxu1 %v6276_v1 }
 0x1b9   :  { %2198 = vmatpush1.bf16.msra.mxu1 %v6124_v44 }
 0x1ba   :  { %2199 = vmatprep.subr.bf16.mxu1 %v6276_v1 }
 0x1bc   :  { %5093 = vmatmul.mubr.msk.bf16.gmra.mrb[24].mxu0 %vm253_vm1, %v1154_v58  ;;  %v1529_v58 = vrot.slane %v6479_v55, 2  ;;  %v1535_v55 = vrot.slane %v6530_v24, 2  ;;  %v1541_v24 = vrot.slane %v6584_v61, 2  ;;  %v6127_v61 = vld [vmem:[%s8171_s5 + $0x50] ss:$0 sps:$4 sm:$0xff]  }
 0x1bd   :  { %1357 = vmatprep.mubr.bf16.mxu0 %v6276_v1  ;;  %2200 = vmatpush1.bf16.msra.mxu1 %v6125_v33  ;;  %v2181_v62 = vsel %vm2179_vm5, %v6127_v61, 0 }
 0x1be   :  { %v1530_v46 = vsel %vm1517_vm4, %v1527_v2, %v1529_v58  ;;  %v1532_v12 = vsel %vm1517_vm4, %v1529_v58, %v1531_v51  ;;  %v1536_v13 = vsel %vm1517_vm4, %v1533_v47, %v1535_v55  ;;  %v1538_v15 = vsel %vm1517_vm4, %v1535_v55, %v1537_v63  ;;  %2201 = vmatprep.subr.bf16.mxu1 %v6276_v1 }
 0x1bf   :  { %v1544_v37 = vsel %vm1517_vm4, %v1541_v24, %v1543_v20 }
 0x1c1   :  { %2202 = vmatpush1.bf16.msra.mxu1 %v6126_v48  ;;  %v6132_v48 = vld [vmem:[%s8171_s5 + $0x74] sm:$0xff]  }
 0x1c2   :  { %2203 = vmatprep.subr.bf16.mxu1 %v6276_v1 }
 0x1c4   :  { %5094 = vmatmul.mubr.msk.bf16.gmra.mrb[28].mxu0 %vm253_vm1, %v1158_v3  ;;  %v1534_v3 = vsel %vm1517_vm4, %v1531_v51, %v1533_v47 }
 0x1c5   :  { %1367 = vmatprep.mubr.bf16.mxu0 %v6276_v1  ;;  %2204 = vmatpush1.bf16.msra.mxu1 %v2181_v62 }
 0x1c6   :  { %2432 = vmatprep.subr.bf16.mxu1 %v6276_v1 }
 0x1cc   :  { %5095 = vmatmul.mubr.msk.bf16.gmra.mrb[32].mxu0 %vm253_vm1, %v1162_v17  ;;  %v1542_v17 = vsel %vm1517_vm4, %v1539_v8, %v1541_v24 }
 0x1cd   :  { %1377 = vmatprep.mubr.bf16.mxu0 %v6276_v1 }
 0x1d4   :  { %5096 = vmatmul.mubr.msk.bf16.gmra.mrb[36].mxu0 %vm253_vm1, %v1166_v27  ;;  %v1545_v27 = vrot.slane %v6618_v32, 2 }
 0x1d5   :  { %1387 = vmatprep.mubr.bf16.mxu0 %v6276_v1 }
 0x1d6   :  { %v1546_v5 = vsel %vm1517_vm4, %v1543_v20, %v1545_v27  ;;  %v1548_v35 = vsel %vm1517_vm4, %v1545_v27, %v1547_v18 }
 0x1dc   :  { %5097 = vmatmul.mubr.msk.bf16.gmra.mrb[40].mxu0 %vm253_vm1, %v1170_v38  ;;  %v7023_v38 = vshrl.u32 %v1876_v52, 7 }
 0x1dd   :  { %1397 = vmatprep.mubr.bf16.mxu0 %v6276_v1 }
 0x1de   :  { %v1878_v32 = vsub.s32 0, %v7023_v38  ;;  %v1882_v6 = vsub.s32 1, %v7023_v38 }
 0x1e0   :  { %v7032_v54 = vrot.slane %v1874_v21, %v1878_v32  ;;  %v7036_v0 = vrot.slane %v1874_v21, %v1882_v6 }
 0x1e4   :  { %5098 = vmatmul.mubr.msk.bf16.gmra.mrb[44].mxu0 %vm253_vm1, %v1174_v53 }
 0x1e5   :  { %1407 = vmatprep.mubr.bf16.mxu0 %v6276_v1 }
 0x1ec   :  { %5099 = vmatmul.mubr.msk.bf16.gmra.mrb[48].mxu0 %vm253_vm1, %v1178_v4 }
 0x1ed   :  { %1417 = vmatprep.mubr.bf16.mxu0 %v6276_v1 }
 0x1f4   :  { %5100 = vmatmul.mubr.msk.bf16.gmra.mrb[52].mxu0 %vm253_vm1, %v1182_v23 }
 0x1f5   :  { %1427 = vmatprep.mubr.bf16.mxu0 %v6276_v1 }
 0x1fc   :  { %5101 = vmatmul.mubr.msk.bf16.gmra.mrb[56].mxu0 %vm253_vm1, %v1186_v43 }
 0x1fd   :  { %1437 = vmatprep.mubr.bf16.mxu0 %v6276_v1 }
 0x204   :  { %5102 = vmatmul.mubr.msk.bf16.gmra.mrb[60].mxu0 %vm253_vm1, %v1185_v59 }
 0x205   :  { %1649 = vmatprep.mubr.bf16.mxu0 %v6276_v1 }
 0x20c   :  { %5111 = vmatmul.mubr.msk.bf16.vlgmr.msra.gmra.mrb[0].mxu0 %vm253_vm1, %v1520_v30 }
 0x20d   :  { %1659 = vmatprep.mubr.bf16.mxu0 %v6276_v1 }
 0x214   :  { %5112 = vmatmul.mubr.msk.bf16.gmra.mrb[4].mxu0 %vm253_vm1, %v1522_v42 }
 0x215   :  { %1669 = vmatprep.mubr.bf16.mxu0 %v6276_v1 }
 0x21c   :  { %5113 = vmatmul.mubr.msk.bf16.gmra.mrb[8].mxu0 %vm253_vm1, %v1524_v57 }
 0x21d   :  { %1679 = vmatprep.mubr.bf16.mxu0 %v6276_v1 }
 0x224   :  { %5114 = vmatmul.mubr.msk.bf16.gmra.mrb[12].mxu0 %vm253_vm1, %v1526_v45 }
 0x225   :  { %1689 = vmatprep.mubr.bf16.mxu0 %v6276_v1 }
 0x22c   :  { %5115 = vmatmul.mubr.msk.bf16.gmra.mrb[16].mxu0 %vm253_vm1, %v1528_v39  ;;  %v6130_v39 = vld [vmem:[%s8171_s5 + $0x64] sm:$0xff]  }
 0x22d   :  { %1699 = vmatprep.mubr.bf16.mxu0 %v6276_v1 }
 0x234   :  { %5116 = vmatmul.mubr.msk.bf16.gmra.mrb[20].mxu0 %vm253_vm1, %v1530_v46 }
 0x235   :  { %1709 = vmatprep.mubr.bf16.mxu0 %v6276_v1 }
 0x23c   :  { %5117 = vmatmul.mubr.msk.bf16.gmra.mrb[24].mxu0 %vm253_vm1, %v1532_v12 }
 0x23d   :  { %1719 = vmatprep.mubr.bf16.mxu0 %v6276_v1 }
 0x244   :  { %5118 = vmatmul.mubr.msk.bf16.gmra.mrb[28].mxu0 %vm253_vm1, %v1534_v3 }
 0x245   :  { %1729 = vmatprep.mubr.bf16.mxu0 %v6276_v1 }
 0x24c   :  { %5119 = vmatmul.mubr.msk.bf16.gmra.mrb[32].mxu0 %vm253_vm1, %v1536_v13  ;;  %v6131_v13 = vld [vmem:[%s8171_s5 + $0x6c] sm:$0xff]  }
 0x24d   :  { %1739 = vmatprep.mubr.bf16.mxu0 %v6276_v1 }
 0x254   :  { %5120 = vmatmul.mubr.msk.bf16.gmra.mrb[36].mxu0 %vm253_vm1, %v1538_v15 }
 0x255   :  { %1749 = vmatprep.mubr.bf16.mxu0 %v6276_v1 }
 0x25c   :  { %5121 = vmatmul.mubr.msk.bf16.gmra.mrb[40].mxu0 %vm253_vm1, %v1540_v26 }
 0x25d   :  { %1759 = vmatprep.mubr.bf16.mxu0 %v6276_v1 }
 0x264   :  { %5122 = vmatmul.mubr.msk.bf16.gmra.mrb[44].mxu0 %vm253_vm1, %v1542_v17 }
 0x265   :  { %1769 = vmatprep.mubr.bf16.mxu0 %v6276_v1 }
 0x26c   :  { %5123 = vmatmul.mubr.msk.bf16.gmra.mrb[48].mxu0 %vm253_vm1, %v1544_v37 }
 0x26d   :  { %1779 = vmatprep.mubr.bf16.mxu0 %v6276_v1 }
 0x274   :  { %5124 = vmatmul.mubr.msk.bf16.gmra.mrb[52].mxu0 %vm253_vm1, %v1546_v5 }
 0x275   :  { %1789 = vmatprep.mubr.bf16.mxu0 %v6276_v1 }
 0x27c   :  { %5125 = vmatmul.mubr.msk.bf16.gmra.mrb[56].mxu0 %vm253_vm1, %v1548_v35  ;;  %v6133_v35 = vld [vmem:[%s8171_s5 + $0x7c] sm:$0xff]  }
 0x27d   :  { %1799 = vmatprep.mubr.bf16.mxu0 %v6276_v1 }
 0x284   :  { %5126 = vmatmul.mubr.msk.bf16.gmra.mrb[60].mxu0 %vm253_vm1, %v1547_v18 }
 0x2df   :  { %v1651_v53 = vpop.f32.mrb[0].mxu0 }
 0x2e0   :  { %v1886_v11 = vadd.f32 %v7032_v54, %v1651_v53  ;;  %v1653_v14 = vpop.f32.mrb[1].mxu0 }
 0x2e1   :  { %v1887_v22 = vadd.f32 %v7036_v0, %v1653_v14  ;;  %v1655_v4 = vpop.f32.mrb[2].mxu0 }
 0x2e2   :  { %v1888_v19 = vadd.f32 %v7032_v54, %v1655_v4  ;;  %v1657_v25 = vpop.f32.mrb[3].mxu0  ;;  %v1950_v23 = vmax.f32 %v1886_v11, 0.0 }
 0x2e3   :  { %v1889_v40 = vadd.f32 %v7036_v0, %v1657_v25  ;;  %v1951_v41 = vmax.f32 %v1887_v22, 0.0 }
 0x2e4   :  { %v1952_v56 = vmax.f32 %v1888_v19, 0.0  ;;  %v6134_v19 = vld [vmem:[%s8171_s5 + $0x84] sm:$0xff]  }
 0x2e5   :  { %v1953_v59 = vmax.f32 %v1889_v40, 0.0 }
 0x2e6   :  { %v7042_v43 = vpack.c.bf16 %v1952_v56, %v1950_v23 }
 0x2e7   :  { %v1661_v36 = vpop.f32.mrb[4].mxu0  ;;  %v7044_v7 = vpack.c.bf16 %v1953_v59, %v1951_v41 }
 0x2e8   :  { %v1890_v28 = vadd.f32 %v7032_v54, %v1661_v36  ;;  %v1663_v30 = vpop.f32.mrb[5].mxu0 }
 0x2e9   :  { %v1891_v9 = vadd.f32 %v7036_v0, %v1663_v30  ;;  %v1665_v10 = vpop.f32.mrb[6].mxu0  ;;  %5138 = vmatprep.mubr.msk.bf16.mxu1 %vm2130_vm6, %v7044_v7 }
 0x2ea   :  { %v1892_v49 = vadd.f32 %v7032_v54, %v1665_v10  ;;  %v1667_v42 = vpop.f32.mrb[7].mxu0  ;;  %2216 = vmatmul.mubr.bf16.vlgmr.msra.gmra.mrb[0].mxu1 %v7042_v43  ;;  %v1954_v34 = vmax.f32 %v1890_v28, 0.0 }
 0x2eb   :  { %v1893_v31 = vadd.f32 %v7036_v0, %v1667_v42  ;;  %2433 = vmatpush1.bf16.msra.mxu1 %v6128_v60  ;;  %v1955_v50 = vmax.f32 %v1891_v9, 0.0  ;;  %v6135_v60 = vld [vmem:[%s8171_s5 + $0x8c] sm:$0xff]  }
 0x2ec   :  { %v1956_v57 = vmax.f32 %v1892_v49, 0.0  ;;  %2434 = vmatprep.subr.bf16.mxu1 %v6276_v1 }
 0x2ed   :  { %v1957_v29 = vmax.f32 %v1893_v31, 0.0 }
 0x2ee   :  { %v7060_v44 = vpack.c.bf16 %v1956_v57, %v1954_v34 }
 0x2ef   :  { %v7062_v45 = vpack.c.bf16 %v1957_v29, %v1955_v50  ;;  %v1671_v2 = vpop.f32.mrb[8].mxu0  ;;  %2435 = vmatpush1.bf16.msra.mxu1 %v6129_v16  ;;  %v6136_v16 = vld [vmem:[%s8171_s5 + $0x94] sm:$0xff]  }
 0x2f0   :  { %v1894_v58 = vadd.f32 %v7032_v54, %v1671_v2  ;;  %v1673_v46 = vpop.f32.mrb[9].mxu0  ;;  %2436 = vmatprep.subr.bf16.mxu1 %v6276_v1 }
 0x2f1   :  { %v1895_v51 = vadd.f32 %v7036_v0, %v1673_v46  ;;  %v1675_v12 = vpop.f32.mrb[10].mxu0  ;;  %5139 = vmatprep.mubr.msk.bf16.mxu1 %vm2130_vm6, %v7062_v45  ;;  %v6137_v46 = vld [vmem:[%s8171_s5 + $0x9c] sm:$0xff]  }
 0x2f2   :  { %v1896_v47 = vadd.f32 %v7032_v54, %v1675_v12  ;;  %v1677_v3 = vpop.f32.mrb[11].mxu0  ;;  %2224 = vmatmul.mubr.bf16.gmra.mrb[4].mxu1 %v7060_v44  ;;  %v1958_v63 = vmax.f32 %v1894_v58, 0.0 }
 0x2f3   :  { %v1897_v55 = vadd.f32 %v7036_v0, %v1677_v3  ;;  %2437 = vmatpush1.bf16.msra.mxu1 %v6130_v39  ;;  %v1959_v8 = vmax.f32 %v1895_v51, 0.0 }
 0x2f4   :  { %v1960_v15 = vmax.f32 %v1896_v47, 0.0  ;;  %2438 = vmatprep.subr.bf16.mxu1 %v6276_v1  ;;  %v6138_v47 = vld [vmem:[%s8171_s5 + $0xa4] ss:$0 sps:$4 sm:$0xff]  }
 0x2f5   :  { %v1961_v26 = vmax.f32 %v1897_v55, 0.0 }
 0x2f6   :  { %v7079_v24 = vpack.c.bf16 %v1960_v15, %v1958_v63 }
 0x2f7   :  { %v7081_v33 = vpack.c.bf16 %v1961_v26, %v1959_v8  ;;  %v1681_v17 = vpop.f32.mrb[12].mxu0  ;;  %2439 = vmatpush1.bf16.msra.mxu1 %v6131_v13 }
 0x2f8   :  { %v1898_v61 = vadd.f32 %v7032_v54, %v1681_v17  ;;  %v1683_v20 = vpop.f32.mrb[13].mxu0  ;;  %2440 = vmatprep.subr.bf16.mxu1 %v6276_v1  ;;  %v2430_v17 = vsel %vm2179_vm5, %v6138_v47, 0 }
 0x2f9   :  { %v1899_v62 = vadd.f32 %v7036_v0, %v1683_v20  ;;  %v1685_v37 = vpop.f32.mrb[14].mxu0  ;;  %5140 = vmatprep.mubr.msk.bf16.mxu1 %vm2130_vm6, %v7081_v33 }
 0x2fa   :  { %v1900_v27 = vadd.f32 %v7032_v54, %v1685_v37  ;;  %v1687_v5 = vpop.f32.mrb[15].mxu0  ;;  %2232 = vmatmul.mubr.bf16.gmra.mrb[8].mxu1 %v7079_v24  ;;  %v1962_v52 = vmax.f32 %v1898_v61, 0.0 }
 0x2fb   :  { %v1901_v18 = vadd.f32 %v7036_v0, %v1687_v5  ;;  %2441 = vmatpush1.bf16.msra.mxu1 %v6132_v48  ;;  %v1963_v53 = vmax.f32 %v1899_v62, 0.0 }
 0x2fc   :  { %v1964_v21 = vmax.f32 %v1900_v27, 0.0  ;;  %2442 = vmatprep.subr.bf16.mxu1 %v6276_v1 }
 0x2fd   :  { %v1965_v11 = vmax.f32 %v1901_v18, 0.0 }
 0x2fe   :  { %v7098_v14 = vpack.c.bf16 %v1964_v21, %v1962_v52 }
 0x2ff   :  { %v7100_v22 = vpack.c.bf16 %v1965_v11, %v1963_v53  ;;  %v1691_v4 = vpop.f32.mrb[16].mxu0  ;;  %2443 = vmatpush1.bf16.msra.mxu1 %v6133_v35 }
 0x300   :  { %v1902_v25 = vadd.f32 %v7032_v54, %v1691_v4  ;;  %v1693_v40 = vpop.f32.mrb[17].mxu0  ;;  %2444 = vmatprep.subr.bf16.mxu1 %v6276_v1 }
 0x301   :  { %v1903_v23 = vadd.f32 %v7036_v0, %v1693_v40  ;;  %v1695_v56 = vpop.f32.mrb[18].mxu0  ;;  %5141 = vmatprep.mubr.msk.bf16.mxu1 %vm2130_vm6, %v7100_v22 }
 0x302   :  { %v1904_v41 = vadd.f32 %v7032_v54, %v1695_v56  ;;  %v1697_v59 = vpop.f32.mrb[19].mxu0  ;;  %2240 = vmatmul.mubr.bf16.gmra.mrb[12].mxu1 %v7098_v14  ;;  %v1966_v28 = vmax.f32 %v1902_v25, 0.0 }
 0x303   :  { %v1905_v36 = vadd.f32 %v7036_v0, %v1697_v59  ;;  %2445 = vmatpush1.bf16.msra.mxu1 %v6134_v19  ;;  %v1967_v9 = vmax.f32 %v1903_v23, 0.0 }
 0x304   :  { %v1968_v30 = vmax.f32 %v1904_v41, 0.0  ;;  %2446 = vmatprep.subr.bf16.mxu1 %v6276_v1 }
 0x305   :  { %v1969_v10 = vmax.f32 %v1905_v36, 0.0 }
 0x306   :  { %v7117_v49 = vpack.c.bf16 %v1968_v30, %v1966_v28 }
 0x307   :  { %v7119_v42 = vpack.c.bf16 %v1969_v10, %v1967_v9  ;;  %v1701_v31 = vpop.f32.mrb[20].mxu0  ;;  %2447 = vmatpush1.bf16.msra.mxu1 %v6135_v60 }
 0x308   :  { %v1906_v34 = vadd.f32 %v7032_v54, %v1701_v31  ;;  %v1703_v57 = vpop.f32.mrb[21].mxu0  ;;  %2448 = vmatprep.subr.bf16.mxu1 %v6276_v1 }
 0x309   :  { %v1907_v50 = vadd.f32 %v7036_v0, %v1703_v57  ;;  %v1705_v29 = vpop.f32.mrb[22].mxu0  ;;  %5142 = vmatprep.mubr.msk.bf16.mxu1 %vm2130_vm6, %v7119_v42 }
 0x30a   :  { %v1908_v2 = vadd.f32 %v7032_v54, %v1705_v29  ;;  %v1707_v39 = vpop.f32.mrb[23].mxu0  ;;  %2248 = vmatmul.mubr.bf16.gmra.mrb[16].mxu1 %v7117_v49  ;;  %v1970_v51 = vmax.f32 %v1906_v34, 0.0 }
 0x30b   :  { %v1909_v58 = vadd.f32 %v7036_v0, %v1707_v39  ;;  %2449 = vmatpush1.bf16.msra.mxu1 %v6136_v16  ;;  %v1971_v3 = vmax.f32 %v1907_v50, 0.0 }
 0x30c   :  { %v1972_v12 = vmax.f32 %v1908_v2, 0.0  ;;  %2450 = vmatprep.subr.bf16.mxu1 %v6276_v1 }
 0x30d   :  { %v1973_v55 = vmax.f32 %v1909_v58, 0.0 }
 0x30e   :  { %v7139_v13 = vpack.c.bf16 %v1972_v12, %v1970_v51 }
 0x30f   :  { %v7141_v63 = vpack.c.bf16 %v1973_v55, %v1971_v3  ;;  %v1711_v15 = vpop.f32.mrb[24].mxu0  ;;  %2451 = vmatpush1.bf16.msra.mxu1 %v6137_v46 }
 0x310   :  { %v1910_v8 = vadd.f32 %v7032_v54, %v1711_v15  ;;  %v1713_v26 = vpop.f32.mrb[25].mxu0  ;;  %2452 = vmatprep.subr.bf16.mxu1 %v6276_v1 }
 0x311   :  { %v1911_v48 = vadd.f32 %v7036_v0, %v1713_v26  ;;  %v1715_v61 = vpop.f32.mrb[26].mxu0  ;;  %5143 = vmatprep.mubr.msk.bf16.mxu1 %vm2130_vm6, %v7141_v63 }
 0x312   :  { %v1912_v20 = vadd.f32 %v7032_v54, %v1715_v61  ;;  %v1717_v62 = vpop.f32.mrb[27].mxu0  ;;  %2256 = vmatmul.mubr.bf16.gmra.mrb[20].mxu1 %v7139_v13  ;;  %v1974_v27 = vmax.f32 %v1910_v8, 0.0 }
 0x313   :  { %v1913_v37 = vadd.f32 %v7036_v0, %v1717_v62  ;;  %2453 = vmatpush1.bf16.msra.mxu1 %v2430_v17  ;;  %v1975_v18 = vmax.f32 %v1911_v48, 0.0 }
 0x314   :  { %v1976_v5 = vmax.f32 %v1912_v20, 0.0 }
 0x315   :  { %v1977_v35 = vmax.f32 %v1913_v37, 0.0 }
 0x316   :  { %v7152_v52 = vpack.c.bf16 %v1976_v5, %v1974_v27 }
 0x317   :  { %v7154_v21 = vpack.c.bf16 %v1977_v35, %v1975_v18  ;;  %v1721_v53 = vpop.f32.mrb[28].mxu0 }
 0x318   :  { %v1914_v11 = vadd.f32 %v7032_v54, %v1721_v53  ;;  %v1723_v4 = vpop.f32.mrb[29].mxu0 }
 0x319   :  { %v1915_v19 = vadd.f32 %v7036_v0, %v1723_v4  ;;  %v1725_v25 = vpop.f32.mrb[30].mxu0  ;;  %5144 = vmatprep.mubr.msk.bf16.mxu1 %vm2130_vm6, %v7154_v21 }
 0x31a   :  { %v1916_v40 = vadd.f32 %v7032_v54, %v1725_v25  ;;  %v1727_v23 = vpop.f32.mrb[31].mxu0  ;;  %2264 = vmatmul.mubr.bf16.gmra.mrb[24].mxu1 %v7152_v52  ;;  %v1978_v41 = vmax.f32 %v1914_v11, 0.0 }
 0x31b   :  { %v1917_v56 = vadd.f32 %v7036_v0, %v1727_v23  ;;  %v1979_v36 = vmax.f32 %v1915_v19, 0.0 }
 0x31c   :  { %v1980_v59 = vmax.f32 %v1916_v40, 0.0 }
 0x31d   :  { %v1981_v60 = vmax.f32 %v1917_v56, 0.0 }
 0x31e   :  { %v7163_v28 = vpack.c.bf16 %v1980_v59, %v1978_v41 }
 0x31f   :  { %v7165_v30 = vpack.c.bf16 %v1981_v60, %v1979_v36  ;;  %v1731_v9 = vpop.f32.mrb[32].mxu0 }
 0x320   :  { %v1918_v10 = vadd.f32 %v7032_v54, %v1731_v9  ;;  %v1733_v31 = vpop.f32.mrb[33].mxu0 }
 0x321   :  { %v1919_v16 = vadd.f32 %v7036_v0, %v1733_v31  ;;  %v1735_v34 = vpop.f32.mrb[34].mxu0  ;;  %5145 = vmatprep.mubr.msk.bf16.mxu1 %vm2130_vm6, %v7165_v30 }
 0x322   :  { %v1920_v57 = vadd.f32 %v7032_v54, %v1735_v34  ;;  %v1737_v50 = vpop.f32.mrb[35].mxu0  ;;  %2272 = vmatmul.mubr.bf16.gmra.mrb[28].mxu1 %v7163_v28  ;;  %v1982_v2 = vmax.f32 %v1918_v10, 0.0 }
 0x323   :  { %v1921_v29 = vadd.f32 %v7036_v0, %v1737_v50  ;;  %v1983_v58 = vmax.f32 %v1919_v16, 0.0 }
 0x324   :  { %v1984_v39 = vmax.f32 %v1920_v57, 0.0 }
 0x325   :  { %v1985_v46 = vmax.f32 %v1921_v29, 0.0 }
 0x326   :  { %v7174_v51 = vpack.c.bf16 %v1984_v39, %v1982_v2 }
 0x327   :  { %v7176_v12 = vpack.c.bf16 %v1985_v46, %v1983_v58  ;;  %v1741_v47 = vpop.f32.mrb[36].mxu0 }
 0x328   :  { %v1922_v3 = vadd.f32 %v7032_v54, %v1741_v47  ;;  %v1743_v55 = vpop.f32.mrb[37].mxu0 }
 0x329   :  { %v1923_v15 = vadd.f32 %v7036_v0, %v1743_v55  ;;  %v1745_v8 = vpop.f32.mrb[38].mxu0  ;;  %5146 = vmatprep.mubr.msk.bf16.mxu1 %vm2130_vm6, %v7176_v12 }
 0x32a   :  { %v1924_v26 = vadd.f32 %v7032_v54, %v1745_v8  ;;  %v1747_v17 = vpop.f32.mrb[39].mxu0  ;;  %2280 = vmatmul.mubr.bf16.gmra.mrb[32].mxu1 %v7174_v51  ;;  %v1986_v61 = vmax.f32 %v1922_v3, 0.0 }
 0x32b   :  { %v1925_v48 = vadd.f32 %v7036_v0, %v1747_v17  ;;  %v1987_v62 = vmax.f32 %v1923_v15, 0.0 }
 0x32c   :  { %v1988_v20 = vmax.f32 %v1924_v26, 0.0 }
 0x32d   :  { %v1989_v37 = vmax.f32 %v1925_v48, 0.0 }
 0x32e   :  { %v7185_v27 = vpack.c.bf16 %v1988_v20, %v1986_v61 }
 0x32f   :  { %v7187_v5 = vpack.c.bf16 %v1989_v37, %v1987_v62  ;;  %v1751_v18 = vpop.f32.mrb[40].mxu0 }
 0x330   :  { %v1926_v35 = vadd.f32 %v7032_v54, %v1751_v18  ;;  %v1753_v53 = vpop.f32.mrb[41].mxu0 }
 0x331   :  { %v1927_v11 = vadd.f32 %v7036_v0, %v1753_v53  ;;  %v1755_v4 = vpop.f32.mrb[42].mxu0  ;;  %5147 = vmatprep.mubr.msk.bf16.mxu1 %vm2130_vm6, %v7187_v5 }
 0x332   :  { %v1928_v19 = vadd.f32 %v7032_v54, %v1755_v4  ;;  %v1757_v25 = vpop.f32.mrb[43].mxu0  ;;  %2288 = vmatmul.mubr.bf16.gmra.mrb[36].mxu1 %v7185_v27  ;;  %v1990_v23 = vmax.f32 %v1926_v35, 0.0 }
 0x333   :  { %v1929_v40 = vadd.f32 %v7036_v0, %v1757_v25  ;;  %v1991_v41 = vmax.f32 %v1927_v11, 0.0 }
 0x334   :  { %v1992_v56 = vmax.f32 %v1928_v19, 0.0 }
 0x335   :  { %v1993_v59 = vmax.f32 %v1929_v40, 0.0 }
 0x336   :  { %v7196_v36 = vpack.c.bf16 %v1992_v56, %v1990_v23 }
 0x337   :  { %v7198_v60 = vpack.c.bf16 %v1993_v59, %v1991_v41  ;;  %v1761_v9 = vpop.f32.mrb[44].mxu0 }
 0x338   :  { %v1930_v10 = vadd.f32 %v7032_v54, %v1761_v9  ;;  %v1763_v31 = vpop.f32.mrb[45].mxu0 }
 0x339   :  { %v1931_v16 = vadd.f32 %v7036_v0, %v1763_v31  ;;  %v1765_v34 = vpop.f32.mrb[46].mxu0  ;;  %5148 = vmatprep.mubr.msk.bf16.mxu1 %vm2130_vm6, %v7198_v60 }
 0x33a   :  { %v1932_v57 = vadd.f32 %v7032_v54, %v1765_v34  ;;  %v1767_v50 = vpop.f32.mrb[47].mxu0  ;;  %2296 = vmatmul.mubr.bf16.gmra.mrb[40].mxu1 %v7196_v36  ;;  %v1994_v2 = vmax.f32 %v1930_v10, 0.0 }
 0x33b   :  { %v1933_v29 = vadd.f32 %v7036_v0, %v1767_v50  ;;  %v1995_v58 = vmax.f32 %v1931_v16, 0.0 }
 0x33c   :  { %v1996_v39 = vmax.f32 %v1932_v57, 0.0 }
 0x33d   :  { %v1997_v46 = vmax.f32 %v1933_v29, 0.0 }
 0x33e   :  { %v7207_v47 = vpack.c.bf16 %v1996_v39, %v1994_v2 }
 0x33f   :  { %v7209_v3 = vpack.c.bf16 %v1997_v46, %v1995_v58  ;;  %v1771_v55 = vpop.f32.mrb[48].mxu0 }
 0x340   :  { %v1934_v15 = vadd.f32 %v7032_v54, %v1771_v55  ;;  %v1773_v8 = vpop.f32.mrb[49].mxu0 }
 0x341   :  { %v1935_v26 = vadd.f32 %v7036_v0, %v1773_v8  ;;  %v1775_v17 = vpop.f32.mrb[50].mxu0  ;;  %5149 = vmatprep.mubr.msk.bf16.mxu1 %vm2130_vm6, %v7209_v3 }
 0x342   :  { %v1936_v48 = vadd.f32 %v7032_v54, %v1775_v17  ;;  %v1777_v61 = vpop.f32.mrb[51].mxu0  ;;  %2304 = vmatmul.mubr.bf16.gmra.mrb[44].mxu1 %v7207_v47  ;;  %v1998_v62 = vmax.f32 %v1934_v15, 0.0 }
 0x343   :  { %v1937_v20 = vadd.f32 %v7036_v0, %v1777_v61  ;;  %v1999_v18 = vmax.f32 %v1935_v26, 0.0 }
 0x344   :  { %v2000_v37 = vmax.f32 %v1936_v48, 0.0 }
 0x345   :  { %v2001_v35 = vmax.f32 %v1937_v20, 0.0 }
 0x346   :  { %v7218_v53 = vpack.c.bf16 %v2000_v37, %v1998_v62 }
 0x347   :  { %v7220_v11 = vpack.c.bf16 %v2001_v35, %v1999_v18  ;;  %v1781_v4 = vpop.f32.mrb[52].mxu0 }
 0x348   :  { %v1938_v19 = vadd.f32 %v7032_v54, %v1781_v4  ;;  %v1783_v25 = vpop.f32.mrb[53].mxu0 }
 0x349   :  { %v1939_v40 = vadd.f32 %v7036_v0, %v1783_v25  ;;  %v1785_v23 = vpop.f32.mrb[54].mxu0  ;;  %5150 = vmatprep.mubr.msk.bf16.mxu1 %vm2130_vm6, %v7220_v11 }
 0x34a   :  { %v1940_v56 = vadd.f32 %v7032_v54, %v1785_v23  ;;  %v1787_v41 = vpop.f32.mrb[55].mxu0  ;;  %2312 = vmatmul.mubr.bf16.gmra.mrb[48].mxu1 %v7218_v53  ;;  %v2002_v9 = vmax.f32 %v1938_v19, 0.0 }
 0x34b   :  { %v1941_v59 = vadd.f32 %v7036_v0, %v1787_v41  ;;  %v2003_v31 = vmax.f32 %v1939_v40, 0.0 }
 0x34c   :  { %v2004_v10 = vmax.f32 %v1940_v56, 0.0 }
 0x34d   :  { %v2005_v16 = vmax.f32 %v1941_v59, 0.0 }
 0x34e   :  { %v7229_v34 = vpack.c.bf16 %v2004_v10, %v2002_v9 }
 0x34f   :  { %v7231_v57 = vpack.c.bf16 %v2005_v16, %v2003_v31  ;;  %v1791_v50 = vpop.f32.mrb[56].mxu0  ;;  %v6153_v31 = vld [vmem:[%s8173_s3 + $0x9c] ss:$8 sps:$4 sm:$0xff]   ;;  %v6151_v16 = vld [vmem:[%s8173_s3 + $0x98] ss:$8 sps:$4 sm:$0xff]  }
 0x350   :  { %v1942_v29 = vadd.f32 %v7032_v54, %v1791_v50  ;;  %v1793_v2 = vpop.f32.mrb[57].mxu0 }
 0x351   :  { %v1943_v39 = vadd.f32 %v7036_v0, %v1793_v2  ;;  %v1795_v58 = vpop.f32.mrb[58].mxu0  ;;  %5151 = vmatprep.mubr.msk.bf16.mxu1 %vm2130_vm6, %v7231_v57 }
 0x352   :  { %v1944_v46 = vadd.f32 %v7032_v54, %v1795_v58  ;;  %v1797_v55 = vpop.f32.mrb[59].mxu0  ;;  %2320 = vmatmul.mubr.bf16.gmra.mrb[52].mxu1 %v7229_v34  ;;  %v2006_v8 = vmax.f32 %v1942_v29, 0.0 }
 0x353   :  { %v1945_v15 = vadd.f32 %v7036_v0, %v1797_v55  ;;  %v2007_v17 = vmax.f32 %v1943_v39, 0.0 }
 0x354   :  { %v2008_v26 = vmax.f32 %v1944_v46, 0.0 }
 0x355   :  { %v2009_v48 = vmax.f32 %v1945_v15, 0.0 }
 0x356   :  { %v7240_v61 = vpack.c.bf16 %v2008_v26, %v2006_v8 }
 0x357   :  { %v2064_v20 = vpack.c.bf16 %v2009_v48, %v2007_v17  ;;  %v1801_v62 = vpop.f32.mrb[60].mxu0 }
 0x358   :  { %v1946_v37 = vadd.f32 %v7032_v54, %v1801_v62  ;;  %v1803_v18 = vpop.f32.mrb[61].mxu0 }
 0x359   :  { %v1947_v35 = vadd.f32 %v7036_v0, %v1803_v18  ;;  %v1805_v4 = vpop.f32.mrb[62].mxu0  ;;  %5152 = vmatprep.mubr.msk.bf16.mxu1 %vm2130_vm6, %v2064_v20 }
 0x35a   :  { %v1948_v19 = vadd.f32 %v7032_v54, %v1805_v4  ;;  %v1807_v25 = vpop.f32.mrb[63].mxu0  ;;  %2328 = vmatmul.mubr.bf16.gmra.mrb[56].mxu1 %v7240_v61  ;;  %v2010_v23 = vmax.f32 %v1946_v37, 0.0 }
 0x35b   :  { %v1949_v40 = vadd.f32 %v7036_v0, %v1807_v25  ;;  %v2011_v41 = vmax.f32 %v1947_v35, 0.0 }
 0x35c   :  { %v2012_v56 = vmax.f32 %v1948_v19, 0.0 }
 0x35d   :  { %v2013_v59 = vmax.f32 %v1949_v40, 0.0 }
 0x35e   :  { %v7248_v9 = vpack.c.bf16 %v2012_v56, %v2010_v23 }
 0x35f   :  { %v2066_v10 = vpack.c.bf16 %v2013_v59, %v2011_v41 }
 0x361   :  { %5153 = vmatprep.mubr.msk.bf16.mxu1 %vm2130_vm6, %v2066_v10 }
 0x362   :  { %2336 = vmatmul.mubr.bf16.gmra.mrb[60].mxu1 %v7248_v9 }
 0x363   :  { %5186 = vmatprep.mubr.msk.bf16.mxu1 %vm2130_vm6, %v7044_v7 }
 0x36a   :  { %2465 = vmatmul.mubr.bf16.vlgmr.msra.gmra.mrb[64].mxu1 %v7042_v43 }
 0x36b   :  { %5187 = vmatprep.mubr.msk.bf16.mxu1 %vm2130_vm6, %v7062_v45 }
 0x372   :  { %2473 = vmatmul.mubr.bf16.gmra.mrb[68].mxu1 %v7060_v44 }
 0x373   :  { %5188 = vmatprep.mubr.msk.bf16.mxu1 %vm2130_vm6, %v7081_v33 }
 0x37a   :  { %2481 = vmatmul.mubr.bf16.gmra.mrb[72].mxu1 %v7079_v24 }
 0x37b   :  { %5189 = vmatprep.mubr.msk.bf16.mxu1 %vm2130_vm6, %v7100_v22 }
 0x382   :  { %2489 = vmatmul.mubr.bf16.gmra.mrb[76].mxu1 %v7098_v14 }
 0x383   :  { %5190 = vmatprep.mubr.msk.bf16.mxu1 %vm2130_vm6, %v7119_v42 }
 0x38a   :  { %2497 = vmatmul.mubr.bf16.gmra.mrb[80].mxu1 %v7117_v49 }
 0x38b   :  { %5191 = vmatprep.mubr.msk.bf16.mxu1 %vm2130_vm6, %v7141_v63  ;;  %v6139_v63 = vld [vmem:[%s8173_s3 + $0x58] ss:$8 sps:$4 sm:$0xff]  }
 0x392   :  { %2505 = vmatmul.mubr.bf16.gmra.mrb[84].mxu1 %v7139_v13  ;;  %v6141_v13 = vld [vmem:[%s8173_s3 + $0x5c] ss:$8 sps:$4 sm:$0xff]  }
 0x393   :  { %5192 = vmatprep.mubr.msk.bf16.mxu1 %vm2130_vm6, %v7154_v21  ;;  %2919 = vmatprep.subr.bf16.mxu1 %v6141_v13  ;;  %v6144_v21 = vld [vmem:[%s8173_s3 + $0x6c] ss:$8 sps:$4 sm:$0xff]  }
 0x394   :  { %2920 = vmatpush1.bf16.msra.mxu1 %v6139_v63 }
 0x395   :  { %2921 = vmatprep.subr.bf16.mxu1 %v6144_v21 }
 0x39a   :  { %2513 = vmatmul.mubr.bf16.gmra.mrb[88].mxu1 %v7152_v52 }
 0x39b   :  { %5193 = vmatprep.mubr.msk.bf16.mxu1 %vm2130_vm6, %v7165_v30  ;;  %v6142_v30 = vld [vmem:[%s8173_s3 + $0x68] ss:$8 sps:$4 sm:$0xff]  }
 0x39c   :  { %2922 = vmatpush1.bf16.msra.mxu1 %v6142_v30 }
 0x3a2   :  { %2521 = vmatmul.mubr.bf16.gmra.mrb[92].mxu1 %v7163_v28 }
 0x3a3   :  { %5194 = vmatprep.mubr.msk.bf16.mxu1 %vm2130_vm6, %v7176_v12 }
 0x3aa   :  { %2529 = vmatmul.mubr.bf16.gmra.mrb[96].mxu1 %v7174_v51 }
 0x3ab   :  { %5195 = vmatprep.mubr.msk.bf16.mxu1 %vm2130_vm6, %v7187_v5  ;;  %v6145_v5 = vld [vmem:[%s8173_s3 + $0x78] ss:$8 sps:$4 sm:$0xff]  }
 0x3b2   :  { %2537 = vmatmul.mubr.bf16.gmra.mrb[100].mxu1 %v7185_v27  ;;  %v6147_v27 = vld [vmem:[%s8173_s3 + $0x7c] ss:$8 sps:$4 sm:$0xff]  }
 0x3b3   :  { %5196 = vmatprep.mubr.msk.bf16.mxu1 %vm2130_vm6, %v7198_v60  ;;  %2923 = vmatprep.subr.bf16.mxu1 %v6147_v27  ;;  %v6150_v60 = vld [vmem:[%s8173_s3 + $0x8c] ss:$8 sps:$4 sm:$0xff]  }
 0x3b4   :  { %2924 = vmatpush1.bf16.msra.mxu1 %v6145_v5 }
 0x3b5   :  { %2925 = vmatprep.subr.bf16.mxu1 %v6150_v60 }
 0x3ba   :  { %2545 = vmatmul.mubr.bf16.gmra.mrb[104].mxu1 %v7196_v36 }
 0x3bb   :  { %5197 = vmatprep.mubr.msk.bf16.mxu1 %vm2130_vm6, %v7209_v3  ;;  %v6148_v3 = vld [vmem:[%s8173_s3 + $0x88] ss:$8 sps:$4 sm:$0xff]  }
 0x3bc   :  { %2926 = vmatpush1.bf16.msra.mxu1 %v6148_v3 }
 0x3bd   :  { %v7287_v54 = vpop.f32.mrb[0].mxu1  ;;  %2927 = vmatprep.subr.bf16.mxu1 %v6153_v31  ;;  %v6277_v31 = vmov 0.0  }
 0x3be   :  { %v2219_v0 = vpop.f32.mrb[1].mxu1  ;;  %2659 = vst.msk [vmem:[#allocation2 + $0xfc] sm:$0xf] %vm2657_vm8, %v6277_v31  ;;  %5600 = vmatprep.subr.bf16.mxu0 %v6277_v31  ;;  %5616 = vmatprep.mubr.msk.bf16.mxu0 %vm6278_vm11, %v6277_v31 }
 0x3bf   :  { %v7289_v43 = vpop.f32.mrb[2].mxu1 }
 0x3c0   :  { %v2222_v7 = vpop.f32.mrb[3].mxu1  ;;  %2928 = vmatpush1.bf16.msra.mxu1 %v6151_v16  ;;  %v6158_v16 = vld [vmem:[%s8173_s3 + $0x4] ss:$8 sps:$4 sm:$0xff]  }
 0x3c2   :  { %2553 = vmatmul.mubr.bf16.gmra.mrb[108].mxu1 %v7207_v47 }
 0x3c3   :  { %5198 = vmatprep.mubr.msk.bf16.mxu1 %vm2130_vm6, %v7220_v11 }
 0x3c5   :  { %v7294_v44 = vpop.f32.mrb[4].mxu1 }
 0x3c6   :  { %v2227_v45 = vpop.f32.mrb[5].mxu1 }
 0x3c7   :  { %v7296_v24 = vpop.f32.mrb[6].mxu1 }
 0x3c8   :  { %v2230_v33 = vpop.f32.mrb[7].mxu1 }
 0x3ca   :  { %2561 = vmatmul.mubr.bf16.gmra.mrb[112].mxu1 %v7218_v53 }
 0x3cb   :  { %5199 = vmatprep.mubr.msk.bf16.mxu1 %vm2130_vm6, %v7231_v57 }
 0x3cd   :  { %v7301_v14 = vpop.f32.mrb[8].mxu1 }
 0x3ce   :  { %v2235_v22 = vpop.f32.mrb[9].mxu1 }
 0x3cf   :  { %v7303_v49 = vpop.f32.mrb[10].mxu1 }
 0x3d0   :  { %v2238_v42 = vpop.f32.mrb[11].mxu1 }
 0x3d2   :  { %2569 = vmatmul.mubr.bf16.gmra.mrb[116].mxu1 %v7229_v34  ;;  %v5212_v34 = vld [vmem:[%s8173_s3 + $0xa8] sm:$0x33] }
 0x3d3   :  { %5200 = vmatprep.mubr.msk.bf16.mxu1 %vm2130_vm6, %v2064_v20  ;;  %v5224_v50 = vcombine.high %v5212_v34, %v5212_v34  ;;  %v5223_v29 = vcombine.low %v5212_v34, %v5212_v34 }
 0x3d5   :  { %v7313_v52 = vpop.f32.mrb[12].mxu1  ;;  %5225 = vmatprep.subr.msk.bf16.mxu1 %vm2912_vm7, %v5224_v50  ;;  %v2914_v58 = vsel %vm2912_vm7, %v5223_v29, 0 }
 0x3d6   :  { %v2243_v28 = vpop.f32.mrb[13].mxu1  ;;  %2930 = vmatpush1.bf16.msra.mxu1 %v2914_v58 }
 0x3d7   :  { %v7321_v51 = vpop.f32.mrb[14].mxu1  ;;  %3109 = vmatprep.subr.bf16.mxu1 %v6158_v16 }
 0x3d8   :  { %v2246_v12 = vpop.f32.mrb[15].mxu1 }
 0x3da   :  { %2577 = vmatmul.mubr.bf16.gmra.mrb[120].mxu1 %v7240_v61 }
 0x3db   :  { %5201 = vmatprep.mubr.msk.bf16.mxu1 %vm2130_vm6, %v2066_v10 }
 0x3dd   :  { %v7331_v36 = vpop.f32.mrb[16].mxu1 }
 0x3de   :  { %v2251_v47 = vpop.f32.mrb[17].mxu1 }
 0x3df   :  { %v7339_v53 = vpop.f32.mrb[18].mxu1 }
 0x3e0   :  { %v2254_v11 = vpop.f32.mrb[19].mxu1 }
 0x3e2   :  { %2585 = vmatmul.mubr.bf16.gmra.mrb[124].mxu1 %v7248_v9 }
 0x3e3   :  { %2951 = vmatprep.mubr.bf16.mxu1 %v6276_v1 }
 0x3e5   :  { %v7352_v57 = vpop.f32.mrb[20].mxu1 }
 0x3e6   :  { %v2259_v2 = vpop.f32.mrb[21].mxu1 }
 0x3e7   :  { %v7354_v39 = vpop.f32.mrb[22].mxu1 }
 0x3e8   :  { %v2262_v46 = vpop.f32.mrb[23].mxu1 }
 0x3ed   :  { %v7358_v55 = vpop.f32.mrb[24].mxu1 }
 0x3ee   :  { %v2267_v15 = vpop.f32.mrb[25].mxu1 }
 0x3ef   :  { %v7360_v8 = vpop.f32.mrb[26].mxu1 }
 0x3f0   :  { %v2270_v26 = vpop.f32.mrb[27].mxu1 }
 0x3f5   :  { %v7362_v17 = vpop.f32.mrb[28].mxu1 }
 0x3f6   :  { %v2275_v48 = vpop.f32.mrb[29].mxu1 }
 0x3f7   :  { %v7364_v61 = vpop.f32.mrb[30].mxu1 }
 0x3f8   :  { %v2278_v20 = vpop.f32.mrb[31].mxu1 }
 0x3fd   :  { %v7366_v62 = vpop.f32.mrb[32].mxu1 }
 0x3fe   :  { %v2283_v37 = vpop.f32.mrb[33].mxu1 }
 0x3ff   :  { %v7368_v18 = vpop.f32.mrb[34].mxu1 }
 0x400   :  { %v2286_v35 = vpop.f32.mrb[35].mxu1 }
 0x405   :  { %v7370_v4 = vpop.f32.mrb[36].mxu1 }
 0x406   :  { %v2291_v19 = vpop.f32.mrb[37].mxu1 }
 0x407   :  { %v7372_v25 = vpop.f32.mrb[38].mxu1 }
 0x408   :  { %v2294_v40 = vpop.f32.mrb[39].mxu1 }
 0x40d   :  { %v7374_v23 = vpop.f32.mrb[40].mxu1 }
 0x40e   :  { %v2299_v56 = vpop.f32.mrb[41].mxu1 }
 0x40f   :  { %v7376_v41 = vpop.f32.mrb[42].mxu1 }
 0x410   :  { %v2302_v59 = vpop.f32.mrb[43].mxu1 }
 0x415   :  { %v7378_v9 = vpop.f32.mrb[44].mxu1 }
 0x416   :  { %v2307_v10 = vpop.f32.mrb[45].mxu1 }
 0x417   :  { %v7380_v0 = vpop.f32.mrb[46].mxu1 }
 0x418   :  { %v2310_v7 = vpop.f32.mrb[47].mxu1 }
 0x41d   :  { %v7382_v45 = vpop.f32.mrb[48].mxu1 }
 0x41e   :  { %v2315_v33 = vpop.f32.mrb[49].mxu1 }
 0x41f   :  { %v7384_v22 = vpop.f32.mrb[50].mxu1 }
 0x420   :  { %v2318_v42 = vpop.f32.mrb[51].mxu1 }
 0x425   :  { %v7386_v13 = vpop.f32.mrb[52].mxu1 }
 0x426   :  { %v2323_v63 = vpop.f32.mrb[53].mxu1 }
 0x427   :  { %v7388_v21 = vpop.f32.mrb[54].mxu1 }
 0x428   :  { %v2326_v28 = vpop.f32.mrb[55].mxu1 }
 0x42d   :  { %v7390_v30 = vpop.f32.mrb[56].mxu1 }
 0x42e   :  { %v2331_v12 = vpop.f32.mrb[57].mxu1 }
 0x42f   :  { %v7392_v27 = vpop.f32.mrb[58].mxu1 }
 0x430   :  { %v2334_v5 = vpop.f32.mrb[59].mxu1 }
 0x435   :  { %v7394_v60 = vpop.f32.mrb[60].mxu1 }
 0x436   :  { %v2339_v47 = vpop.f32.mrb[61].mxu1 }
 0x437   :  { %v7396_v3 = vpop.f32.mrb[62].mxu1 }
 0x438   :  { %v2342_v11 = vpop.f32.mrb[63].mxu1 }
 0x43d   :  { %v2466_v34 = vpop.f32.mrb[64].mxu1 }
 0x43e   :  { %v2593_v50 = vmax.f32 %v7287_v54, %v2466_v34  ;;  %v2468_v29 = vpop.f32.mrb[65].mxu1 }
 0x43f   :  { %v2469_v2 = vpop.f32.mrb[66].mxu1 }
 0x440   :  { %2626 = vst.msk [vmem:[#allocation2] sm:$0xff] %vm2625_vm9, %v2593_v50  ;;  %v2594_v58 = vmax.f32 %v7289_v43, %v2469_v2  ;;  %v2471_v46 = vpop.f32.mrb[67].mxu1 }
 0x442   :  { %2627 = vst.msk [vmem:[#allocation2 + $0x8] sm:$0xff] %vm2625_vm9, %v2594_v58 }
 0x445   :  { %v2474_v15 = vpop.f32.mrb[68].mxu1 }
 0x446   :  { %v2595_v26 = vmax.f32 %v7294_v44, %v2474_v15  ;;  %v2476_v48 = vpop.f32.mrb[69].mxu1 }
 0x447   :  { %v2477_v20 = vpop.f32.mrb[70].mxu1 }
 0x448   :  { %2628 = vst.msk [vmem:[#allocation2 + $0x10] sm:$0xff] %vm2625_vm9, %v2595_v26  ;;  %v2596_v37 = vmax.f32 %v7296_v24, %v2477_v20  ;;  %v2479_v35 = vpop.f32.mrb[71].mxu1 }
 0x449   :  { %v2660_v63 = vld [vmem:[#allocation2] ss:$2 sm:$0xff]  ;;  %v2692_v28 = vld [vmem:[#allocation2 + $0x1] ss:$2 sm:$0xff] }
 0x44a   :  { %2629 = vst.msk [vmem:[#allocation2 + $0x18] sm:$0xff] %vm2625_vm9, %v2596_v37 }
 0x44d   :  { %v2482_v54 = vpop.f32.mrb[72].mxu1 }
 0x44e   :  { %v2597_v19 = vmax.f32 %v7301_v14, %v2482_v54  ;;  %v2484_v40 = vpop.f32.mrb[73].mxu1 }
 0x44f   :  { %v2485_v43 = vpop.f32.mrb[74].mxu1 }
 0x450   :  { %2630 = vst.msk [vmem:[#allocation2 + $0x20] sm:$0xff] %vm2625_vm9, %v2597_v19  ;;  %v2598_v56 = vmax.f32 %v7303_v49, %v2485_v43  ;;  %v2487_v59 = vpop.f32.mrb[75].mxu1  ;;  %v2723_v49 = vmax.f32 %v2660_v63, %v2692_v28 }
 0x451   :  { %v2662_v10 = vld [vmem:[#allocation2 + $0x10] ss:$2 sm:$0xff]  ;;  %v2694_v7 = vld [vmem:[#allocation2 + $0x11] ss:$2 sm:$0xff] }
 0x452   :  { %2631 = vst.msk [vmem:[#allocation2 + $0x28] sm:$0xff] %vm2625_vm9, %v2598_v56  ;;  %v2724_v5 = vmax.f32 %v2662_v10, %v2694_v7  ;;  %v6156_v10 = vld [vmem:[%s8173_s3] ss:$8 sps:$4 sm:$0xff]  }
 0x454   :  { %v7420_v47 = vpack.c.bf16 %v2724_v5, %v2723_v49 }
 0x455   :  { %v2490_v44 = vpop.f32.mrb[76].mxu1 }
 0x456   :  { %v2599_v24 = vmax.f32 %v7313_v52, %v2490_v44  ;;  %v2492_v33 = vpop.f32.mrb[77].mxu1  ;;  %v2771_v19 = vshrl.u32 %v7420_v47, 16 }
 0x457   :  { %v2493_v42 = vpop.f32.mrb[78].mxu1  ;;  %v6164_v33 = vld [vmem:[%s8173_s3 + $0x24] ss:$8 sps:$4 sm:$0xff]  }
 0x458   :  { %2632 = vst.msk [vmem:[#allocation2 + $0x30] sm:$0xff] %vm2625_vm9, %v2599_v24  ;;  %v2600_v14 = vmax.f32 %v7321_v51, %v2493_v42  ;;  %v2495_v12 = vpop.f32.mrb[79].mxu1  ;;  %v2773_v51 = vshll.u32 %v7420_v47, 16 }
 0x459   :  { %v2664_v50 = vld [vmem:[#allocation2 + $0x20] ss:$2 sm:$0xff]  ;;  %v2696_v29 = vld [vmem:[#allocation2 + $0x21] ss:$2 sm:$0xff] }
 0x45a   :  { %2633 = vst.msk [vmem:[#allocation2 + $0x38] sm:$0xff] %vm2625_vm9, %v2600_v14  ;;  %v2725_v26 = vmax.f32 %v2664_v50, %v2696_v29 }
 0x45d   :  { %v2498_v11 = vpop.f32.mrb[80].mxu1 }
 0x45e   :  { %v2601_v16 = vmax.f32 %v7331_v36, %v2498_v11  ;;  %v2500_v34 = vpop.f32.mrb[81].mxu1  ;;  %v2775_v36 = vrot.slane %v2773_v51, 1  ;;  %v6162_v11 = vld [vmem:[%s8173_s3 + $0x20] ss:$8 sps:$4 sm:$0xff]  }
 0x45f   :  { %v2501_v52 = vpop.f32.mrb[82].mxu1 }
 0x460   :  { %2634 = vst.msk [vmem:[#allocation2 + $0x40] sm:$0xff] %vm2625_vm9, %v2601_v16  ;;  %v2602_v2 = vmax.f32 %v7339_v53, %v2501_v52  ;;  %v2503_v58 = vpop.f32.mrb[83].mxu1  ;;  %v2776_v59 = vor.u32 %v2775_v36, %v2771_v19 }
 0x461   :  { %v2666_v46 = vld [vmem:[#allocation2 + $0x30] ss:$2 sm:$0xff]  ;;  %v2698_v15 = vld [vmem:[#allocation2 + $0x31] ss:$2 sm:$0xff]  ;;  %v6170_v58 = vld [vmem:[%s8173_s3 + $0x44] ss:$8 sps:$4 sm:$0xff]  }
 0x462   :  { %2635 = vst.msk [vmem:[#allocation2 + $0x48] sm:$0xff] %vm2625_vm9, %v2602_v2  ;;  %v2726_v48 = vmax.f32 %v2666_v46, %v2698_v15 }
 0x464   :  { %v7427_v20 = vpack.c.bf16 %v2726_v48, %v2725_v26  ;;  %v2749_v48 = vld [vmem:[%s8173_s3 + $0x50] sm:$0x33] }
 0x465   :  { %v2506_v37 = vpop.f32.mrb[84].mxu1 }
 0x466   :  { %v2603_v35 = vmax.f32 %v7352_v57, %v2506_v37  ;;  %v2508_v54 = vpop.f32.mrb[85].mxu1  ;;  %v2778_v53 = vshll.u32 %v7427_v20, 16  ;;  %v6161_v57 = vld [vmem:[%s8173_s3 + $0x14] ss:$8 sps:$4 sm:$0xff]   ;;  %v2782_v15 = vshrl.u32 %v7427_v20, 16 }
 0x467   :  { %v2509_v40 = vpop.f32.mrb[86].mxu1 }
 0x468   :  { %2636 = vst.msk [vmem:[#allocation2 + $0x50] sm:$0xff] %vm2625_vm9, %v2603_v35  ;;  %v2604_v43 = vmax.f32 %v7354_v39, %v2509_v40  ;;  %v2511_v56 = vpop.f32.mrb[87].mxu1  ;;  %v2780_v44 = vrot.slane %v2778_v53, 1  ;;  %v6159_v39 = vld [vmem:[%s8173_s3 + $0x10] ss:$8 sps:$4 sm:$0xff]   ;;  %v5245_v53 = vcombine.high %v2749_v48, %v2749_v48  ;;  %v5244_v40 = vcombine.low %v2749_v48, %v2749_v48 }
 0x469   :  { %v2668_v14 = vld [vmem:[#allocation2 + $0x40] ss:$2 sm:$0xff]  ;;  %v2700_v12 = vld [vmem:[#allocation2 + $0x41] ss:$2 sm:$0xff] }
 0x46a   :  { %2637 = vst.msk [vmem:[#allocation2 + $0x58] sm:$0xff] %vm2625_vm9, %v2604_v43  ;;  %v2781_v7 = vsel %vm105_vm0, %v2776_v59, %v2780_v44  ;;  %v2727_v52 = vmax.f32 %v2668_v14, %v2700_v12  ;;  %v2784_v54 = vor.u32 %v2782_v15, %v2780_v44  ;;  %v3104_v56 = vsel %vm2912_vm7, %v5244_v40, 0 }
 0x46b   :  { %5226 = vmatmul.mubr.msk.bf16.vlgmr.msra.gmra.mrb[128].mxu1 %vm2625_vm9, %v2781_v7 }
 0x46c   :  { %2961 = vmatprep.mubr.bf16.mxu1 %v6276_v1  ;;  %3110 = vmatpush1.bf16.msra.mxu1 %v6156_v10 }
 0x46d   :  { %v2514_v24 = vpop.f32.mrb[88].mxu1  ;;  %3111 = vmatprep.subr.bf16.mxu1 %v6161_v57 }
 0x46e   :  { %v2605_v42 = vmax.f32 %v7358_v55, %v2514_v24  ;;  %v2516_v63 = vpop.f32.mrb[89].mxu1  ;;  %v6167_v55 = vld [vmem:[%s8173_s3 + $0x34] ss:$8 sps:$4 sm:$0xff]  }
 0x46f   :  { %v2517_v28 = vpop.f32.mrb[90].mxu1  ;;  %v6175_v63 = vld [vmem:[%s8173_s3 + $0xb4] ss:$8 sps:$4 sm:$0xff]  }
 0x470   :  { %2638 = vst.msk [vmem:[#allocation2 + $0x60] sm:$0xff] %vm2625_vm9, %v2605_v42  ;;  %v2606_v5 = vmax.f32 %v7360_v8, %v2517_v28  ;;  %v2519_v49 = vpop.f32.mrb[91].mxu1  ;;  %3112 = vmatpush1.bf16.msra.mxu1 %v6159_v39  ;;  %v6165_v8 = vld [vmem:[%s8173_s3 + $0x30] ss:$8 sps:$4 sm:$0xff]  }
 0x471   :  { %v2670_v16 = vld [vmem:[#allocation2 + $0x50] ss:$2 sm:$0xff]  ;;  %v2702_v34 = vld [vmem:[#allocation2 + $0x51] ss:$2 sm:$0xff]  ;;  %3113 = vmatprep.subr.bf16.mxu1 %v6164_v33 }
 0x472   :  { %2639 = vst.msk [vmem:[#allocation2 + $0x68] sm:$0xff] %vm2625_vm9, %v2606_v5  ;;  %v2728_v50 = vmax.f32 %v2670_v16, %v2702_v34 }
 0x474   :  { %v7460_v29 = vpack.c.bf16 %v2728_v50, %v2727_v52  ;;  %3114 = vmatpush1.bf16.msra.mxu1 %v6162_v11 }
 0x475   :  { %v2522_v2 = vpop.f32.mrb[92].mxu1  ;;  %3115 = vmatprep.subr.bf16.mxu1 %v6167_v55 }
 0x476   :  { %v2607_v51 = vmax.f32 %v7362_v17, %v2522_v2  ;;  %v2524_v46 = vpop.f32.mrb[93].mxu1  ;;  %v2786_v26 = vshll.u32 %v7460_v29, 16  ;;  %v6168_v17 = vld [vmem:[%s8173_s3 + $0x40] ss:$8 sps:$4 sm:$0xff]  }
 0x477   :  { %v2525_v36 = vpop.f32.mrb[94].mxu1 }
 0x478   :  { %2640 = vst.msk [vmem:[#allocation2 + $0x70] sm:$0xff] %vm2625_vm9, %v2607_v51  ;;  %v2608_v37 = vmax.f32 %v7364_v61, %v2525_v36  ;;  %v2527_v35 = vpop.f32.mrb[95].mxu1  ;;  %v2788_v19 = vrot.slane %v2786_v26, 1  ;;  %3116 = vmatpush1.bf16.msra.mxu1 %v6165_v8 }
 0x479   :  { %3117 = vmatprep.subr.bf16.mxu1 %v6170_v58  ;;  %v2672_v57 = vld [vmem:[#allocation2 + $0x60] ss:$2 sm:$0xff]  ;;  %v2704_v7 = vld [vmem:[#allocation2 + $0x61] ss:$2 sm:$0xff] }
 0x47a   :  { %2641 = vst.msk [vmem:[#allocation2 + $0x78] sm:$0xff] %vm2625_vm9, %v2608_v37  ;;  %v2789_v43 = vsel %vm105_vm0, %v2784_v54, %v2788_v19  ;;  %v2729_v28 = vmax.f32 %v2672_v57, %v2704_v7 }
 0x47b   :  { %5227 = vmatmul.mubr.msk.bf16.gmra.mrb[132].mxu1 %vm2625_vm9, %v2789_v43 }
 0x47c   :  { %2971 = vmatprep.mubr.bf16.mxu1 %v6276_v1  ;;  %3118 = vmatpush1.bf16.msra.mxu1 %v6168_v17 }
 0x47d   :  { %v2530_v61 = vpop.f32.mrb[96].mxu1  ;;  %5246 = vmatprep.subr.msk.bf16.mxu1 %vm2912_vm7, %v5245_v53 }
 0x47e   :  { %v2609_v59 = vmax.f32 %v7366_v62, %v2530_v61  ;;  %v2532_v44 = vpop.f32.mrb[97].mxu1 }
 0x47f   :  { %v2533_v10 = vpop.f32.mrb[98].mxu1 }
 0x480   :  { %2642 = vst.msk [vmem:[#allocation2 + $0x80] sm:$0xff] %vm2625_vm9, %v2609_v59  ;;  %v2610_v39 = vmax.f32 %v7368_v18, %v2533_v10  ;;  %v2535_v24 = vpop.f32.mrb[99].mxu1  ;;  %3120 = vmatpush1.bf16.msra.mxu1 %v3104_v56  ;;  %v2790_v18 = vshrl.u32 %v7460_v29, 16 }
 0x481   :  { %v2674_v33 = vld [vmem:[#allocation2 + $0x70] ss:$2 sm:$0xff]  ;;  %v2706_v42 = vld [vmem:[#allocation2 + $0x71] ss:$2 sm:$0xff]  ;;  %3342 = vmatprep.subr.bf16.mxu1 %v6175_v63 }
 0x482   :  { %2643 = vst.msk [vmem:[#allocation2 + $0x88] sm:$0xff] %vm2625_vm9, %v2610_v39  ;;  %v2730_v62 = vmax.f32 %v2674_v33, %v2706_v42  ;;  %v2792_v52 = vor.u32 %v2790_v18, %v2788_v19 }
 0x484   :  { %v7492_v14 = vpack.c.bf16 %v2730_v62, %v2729_v28 }
 0x485   :  { %v2538_v12 = vpop.f32.mrb[100].mxu1 }
 0x486   :  { %v2611_v5 = vmax.f32 %v7370_v4, %v2538_v12  ;;  %v2540_v49 = vpop.f32.mrb[101].mxu1  ;;  %v2794_v11 = vshll.u32 %v7492_v14, 16  ;;  %v2798_v53 = vshrl.u32 %v7492_v14, 16 }
 0x487   :  { %v2541_v16 = vpop.f32.mrb[102].mxu1 }
 0x488   :  { %2644 = vst.msk [vmem:[#allocation2 + $0x90] sm:$0xff] %vm2625_vm9, %v2611_v5  ;;  %v2612_v34 = vmax.f32 %v7372_v25, %v2541_v16  ;;  %v2543_v55 = vpop.f32.mrb[103].mxu1  ;;  %v2796_v50 = vrot.slane %v2794_v11, 1 }
 0x489   :  { %v2676_v46 = vld [vmem:[#allocation2 + $0x80] ss:$2 sm:$0xff]  ;;  %v2708_v15 = vld [vmem:[#allocation2 + $0x81] ss:$2 sm:$0xff] }
 0x48a   :  { %2645 = vst.msk [vmem:[#allocation2 + $0x98] sm:$0xff] %vm2625_vm9, %v2612_v34  ;;  %v2797_v8 = vsel %vm105_vm0, %v2792_v52, %v2796_v50  ;;  %v2731_v37 = vmax.f32 %v2676_v46, %v2708_v15  ;;  %v2800_v56 = vor.u32 %v2798_v53, %v2796_v50 }
 0x48b   :  { %5228 = vmatmul.mubr.msk.bf16.gmra.mrb[136].mxu1 %vm2625_vm9, %v2797_v8 }
 0x48c   :  { %2981 = vmatprep.mubr.bf16.mxu1 %v6276_v1 }
 0x48d   :  { %v2546_v4 = vpop.f32.mrb[104].mxu1 }
 0x48e   :  { %v2613_v2 = vmax.f32 %v7374_v23, %v2546_v4  ;;  %v2548_v58 = vpop.f32.mrb[105].mxu1 }
 0x48f   :  { %v2549_v51 = vpop.f32.mrb[106].mxu1 }
 0x490   :  { %2646 = vst.msk [vmem:[#allocation2 + $0xa0] sm:$0xff] %vm2625_vm9, %v2613_v2  ;;  %v2614_v25 = vmax.f32 %v7376_v41, %v2549_v51  ;;  %v2551_v26 = vpop.f32.mrb[107].mxu1 }
 0x491   :  { %v2678_v48 = vld [vmem:[#allocation2 + $0x90] ss:$2 sm:$0xff]  ;;  %v2710_v36 = vld [vmem:[#allocation2 + $0x91] ss:$2 sm:$0xff] }
 0x492   :  { %2647 = vst.msk [vmem:[#allocation2 + $0xa8] sm:$0xff] %vm2625_vm9, %v2614_v25  ;;  %v2732_v35 = vmax.f32 %v2678_v48, %v2710_v36 }
 0x494   :  { %v7507_v54 = vpack.c.bf16 %v2732_v35, %v2731_v37 }
 0x495   :  { %v2554_v19 = vpop.f32.mrb[108].mxu1 }
 0x496   :  { %v2615_v23 = vmax.f32 %v7378_v9, %v2554_v19  ;;  %v2556_v17 = vpop.f32.mrb[109].mxu1  ;;  %v2802_v40 = vshll.u32 %v7507_v54, 16  ;;  %v2806_v18 = vshrl.u32 %v7507_v54, 16 }
 0x497   :  { %v2557_v43 = vpop.f32.mrb[110].mxu1 }
 0x498   :  { %2648 = vst.msk [vmem:[#allocation2 + $0xb0] sm:$0xff] %vm2625_vm9, %v2615_v23  ;;  %v2616_v41 = vmax.f32 %v7380_v0, %v2557_v43  ;;  %v2559_v61 = vpop.f32.mrb[111].mxu1  ;;  %v2804_v59 = vrot.slane %v2802_v40, 1 }
 0x499   :  { %v2680_v39 = vld [vmem:[#allocation2 + $0xa0] ss:$2 sm:$0xff]  ;;  %v2712_v24 = vld [vmem:[#allocation2 + $0xa1] ss:$2 sm:$0xff] }
 0x49a   :  { %2649 = vst.msk [vmem:[#allocation2 + $0xb8] sm:$0xff] %vm2625_vm9, %v2616_v41  ;;  %v2805_v44 = vsel %vm105_vm0, %v2800_v56, %v2804_v59  ;;  %v2733_v28 = vmax.f32 %v2680_v39, %v2712_v24  ;;  %v2808_v55 = vor.u32 %v2806_v18, %v2804_v59  ;;  %v6187_v18 = vld [vmem:[%s8173_s3 + $0xf4] ss:$8 sps:$4 sm:$0xff]  }
 0x49b   :  { %5229 = vmatmul.mubr.msk.bf16.gmra.mrb[140].mxu1 %vm2625_vm9, %v2805_v44 }
 0x49c   :  { %2991 = vmatprep.mubr.bf16.mxu1 %v6276_v1 }
 0x49d   :  { %v2562_v9 = vpop.f32.mrb[112].mxu1 }
 0x49e   :  { %v2617_v10 = vmax.f32 %v7382_v45, %v2562_v9  ;;  %v2564_v57 = vpop.f32.mrb[113].mxu1 }
 0x49f   :  { %v2565_v7 = vpop.f32.mrb[114].mxu1 }
 0x4a0   :  { %2650 = vst.msk [vmem:[#allocation2 + $0xc0] sm:$0xff] %vm2625_vm9, %v2617_v10  ;;  %v2618_v0 = vmax.f32 %v7384_v22, %v2565_v7  ;;  %v2567_v33 = vpop.f32.mrb[115].mxu1 }
 0x4a1   :  { %v2682_v42 = vld [vmem:[#allocation2 + $0xb0] ss:$2 sm:$0xff]  ;;  %v2714_v63 = vld [vmem:[#allocation2 + $0xb1] ss:$2 sm:$0xff] }
 0x4a2   :  { %2651 = vst.msk [vmem:[#allocation2 + $0xc8] sm:$0xff] %vm2625_vm9, %v2618_v0  ;;  %v2734_v62 = vmax.f32 %v2682_v42, %v2714_v63  ;;  %v6173_v42 = vld [vmem:[%s8173_s3 + $0xb0] ss:$8 sps:$4 sm:$0xff]   ;;  %v6178_v63 = vld [vmem:[%s8173_s3 + $0xc4] ss:$8 sps:$4 sm:$0xff]  }
 0x4a4   :  { %v7522_v12 = vpack.c.bf16 %v2734_v62, %v2733_v28  ;;  %v6176_v28 = vld [vmem:[%s8173_s3 + $0xc0] ss:$8 sps:$4 sm:$0xff]   ;;  %v6181_v62 = vld [vmem:[%s8173_s3 + $0xd4] ss:$8 sps:$4 sm:$0xff]  }
 0x4a5   :  { %v2570_v5 = vpop.f32.mrb[116].mxu1 }
 0x4a6   :  { %v2619_v45 = vmax.f32 %v7386_v13, %v2570_v5  ;;  %v2572_v49 = vpop.f32.mrb[117].mxu1  ;;  %v2810_v11 = vshll.u32 %v7522_v12, 16  ;;  %v2814_v19 = vshrl.u32 %v7522_v12, 16  ;;  %v6179_v5 = vld [vmem:[%s8173_s3 + $0xd0] ss:$8 sps:$4 sm:$0xff]  }
 0x4a7   :  { %v2573_v16 = vpop.f32.mrb[118].mxu1  ;;  %v6182_v49 = vld [vmem:[%s8173_s3 + $0xe0] ss:$8 sps:$4 sm:$0xff]  }
 0x4a8   :  { %2652 = vst.msk [vmem:[#allocation2 + $0xd0] sm:$0xff] %vm2625_vm9, %v2619_v45  ;;  %v2620_v22 = vmax.f32 %v7388_v21, %v2573_v16  ;;  %v2575_v34 = vpop.f32.mrb[119].mxu1  ;;  %v2812_v52 = vrot.slane %v2810_v11, 1  ;;  %v6184_v45 = vld [vmem:[%s8173_s3 + $0xe4] ss:$8 sps:$4 sm:$0xff]  }
 0x4a9   :  { %v2684_v58 = vld [vmem:[#allocation2 + $0xc0] ss:$2 sm:$0xff]  ;;  %v2716_v51 = vld [vmem:[#allocation2 + $0xc1] ss:$2 sm:$0xff]  ;;  %v6185_v16 = vld [vmem:[%s8173_s3 + $0xf0] ss:$8 sps:$4 sm:$0xff]  }
 0x4aa   :  { %2653 = vst.msk [vmem:[#allocation2 + $0xd8] sm:$0xff] %vm2625_vm9, %v2620_v22  ;;  %v2813_v50 = vsel %vm105_vm0, %v2808_v55, %v2812_v52  ;;  %v2735_v26 = vmax.f32 %v2684_v58, %v2716_v51  ;;  %v2816_v40 = vor.u32 %v2814_v19, %v2812_v52  ;;  %v5265_v11 = vld [vmem:[%s8173_s3 + $0x100] sm:$0x33]  ;;  %v3243_v52 = vrot.slane %v7427_v20, 1  ;;  %v6193_v58 = vld [vmem:[%s8174_s6 + $0x18] sm:$0xff]  }
 0x4ab   :  { %5230 = vmatmul.mubr.msk.bf16.gmra.mrb[144].mxu1 %vm2625_vm9, %v2813_v50  ;;  %v5277_v22 = vcombine.high %v5265_v11, %v5265_v11  ;;  %v5276_v34 = vcombine.low %v5265_v11, %v5265_v11  ;;  %v3242_v50 = vrot.slane %v7420_v47, 1  ;;  %v6194_v51 = vld [vmem:[%s8174_s6 + $0x20] sm:$0xff]  }
 0x4ac   :  { %3001 = vmatprep.mubr.bf16.mxu1 %v6276_v1 }
 0x4ad   :  { %v2578_v13 = vpop.f32.mrb[120].mxu1  ;;  %v3337_v55 = vsel %vm2912_vm7, %v5276_v34, 0 }
 0x4ae   :  { %v2621_v8 = vmax.f32 %v7390_v30, %v2578_v13  ;;  %v2580_v4 = vpop.f32.mrb[121].mxu1  ;;  %v6190_v13 = vld [vmem:[%s8174_s6] sm:$0xff]  }
 0x4af   :  { %v2581_v2 = vpop.f32.mrb[122].mxu1  ;;  %v6191_v4 = vld [vmem:[%s8174_s6 + $0x8] sm:$0xff]  }
 0x4b0   :  { %2654 = vst.msk [vmem:[#allocation2 + $0xe0] sm:$0xff] %vm2625_vm9, %v2621_v8  ;;  %v2622_v21 = vmax.f32 %v7392_v27, %v2581_v2  ;;  %v2583_v46 = vpop.f32.mrb[123].mxu1  ;;  %v3244_v8 = vsel %vm761_vm3, %v3242_v50, %v3243_v52 }
 0x4b1   :  { %v2686_v15 = vld [vmem:[#allocation2 + $0xd0] ss:$2 sm:$0xff]  ;;  %v2718_v25 = vld [vmem:[#allocation2 + $0xd1] ss:$2 sm:$0xff]  ;;  %v6195_v46 = vld [vmem:[%s8174_s6 + $0x28] sm:$0xff]  }
 0x4b2   :  { %2655 = vst.msk [vmem:[#allocation2 + $0xe8] sm:$0xff] %vm2625_vm9, %v2622_v21  ;;  %v2736_v48 = vmax.f32 %v2686_v15, %v2718_v25  ;;  %v6196_v15 = vld [vmem:[%s8174_s6 + $0x30] sm:$0xff]  }
 0x4b4   :  { %v7537_v36 = vpack.c.bf16 %v2736_v48, %v2735_v26  ;;  %v6197_v26 = vld [vmem:[%s8174_s6 + $0x38] sm:$0xff]   ;;  %v6198_v48 = vld [vmem:[%s8174_s6 + $0x40] sm:$0xff]  }
 0x4b5   :  { %v2586_v37 = vpop.f32.mrb[124].mxu1 }
 0x4b6   :  { %v2623_v30 = vmax.f32 %v7394_v60, %v2586_v37  ;;  %v2588_v35 = vpop.f32.mrb[125].mxu1  ;;  %v2818_v23 = vshll.u32 %v7537_v36, 16 }
 0x4b7   :  { %v2589_v17 = vpop.f32.mrb[126].mxu1 }
 0x4b8   :  { %2656 = vst.msk [vmem:[#allocation2 + $0xf0] sm:$0xff] %vm2625_vm9, %v2623_v30  ;;  %v2624_v27 = vmax.f32 %v7396_v3, %v2589_v17  ;;  %v2591_v53 = vpop.f32.mrb[127].mxu1  ;;  %v2820_v43 = vrot.slane %v2818_v23, 1  ;;  %v2822_v3 = vshrl.u32 %v7537_v36, 16  ;;  %v3253_v30 = vrot.slane %v7537_v36, 1  ;;  %v6200_v23 = vld [vmem:[%s8174_s6 + $0x50] sm:$0xff]  }
 0x4b9   :  { %v2688_v60 = vld [vmem:[#allocation2 + $0xe0] ss:$2 sm:$0xff]  ;;  %v2720_v61 = vld [vmem:[#allocation2 + $0xe1] ss:$2 sm:$0xff]  ;;  %v6201_v17 = vld [vmem:[%s8174_s6 + $0x58] sm:$0xff]  }
 0x4ba   :  { %2658 = vst.msk [vmem:[#allocation2 + $0xf8] sm:$0xf] %vm2657_vm8, %v2624_v27  ;;  %v2821_v41 = vsel %vm105_vm0, %v2816_v40, %v2820_v43  ;;  %v2737_v44 = vmax.f32 %v2688_v60, %v2720_v61  ;;  %v2824_v7 = vor.u32 %v2822_v3, %v2820_v43  ;;  %v3487_v27 = vld [vmem:[%s8175_s4] sm:$0x3] }
 0x4bb   :  { %5231 = vmatmul.mubr.msk.bf16.gmra.mrb[148].mxu1 %vm2625_vm9, %v2821_v41  ;;  %v7698_v53 = vrot.slane %v3487_v27, %v1878_v32  ;;  %v7702_v40 = vrot.slane %v3487_v27, %v1882_v6 }
 0x4bc   :  { %3011 = vmatprep.mubr.bf16.mxu1 %v6276_v1 }
 0x4c1   :  { %v2690_v56 = vld [vmem:[#allocation2 + $0xf0] ss:$2 sm:$0xff]  ;;  %v2722_v59 = vld [vmem:[#allocation2 + $0xf1] ss:$2 sm:$0xff] }
 0x4c2   :  { %v2738_v9 = vmax.f32 %v2690_v56, %v2722_v59 }
 0x4c4   :  { %v7548_v10 = vpack.c.bf16 %v2738_v9, %v2737_v44 }
 0x4c6   :  { %v2826_v57 = vshll.u32 %v7548_v10, 16  ;;  %v2830_v0 = vshrl.u32 %v7548_v10, 16  ;;  %v3255_v35 = vrot.slane %v7548_v10, 1 }
 0x4c8   :  { %v2828_v39 = vrot.slane %v2826_v57, 1  ;;  %v3256_v19 = vsel %vm761_vm3, %v3253_v30, %v3255_v35 }
 0x4ca   :  { %v2829_v24 = vsel %vm105_vm0, %v2824_v7, %v2828_v39  ;;  %v2832_v33 = vor.u32 %v2830_v0, %v2828_v39  ;;  %v6202_v39 = vld [vmem:[%s8174_s6 + $0x60] sm:$0xff]  }
 0x4cb   :  { %5232 = vmatmul.mubr.msk.bf16.gmra.mrb[152].mxu1 %vm2625_vm9, %v2829_v24 }
 0x4cc   :  { %3021 = vmatprep.mubr.bf16.mxu1 %v6276_v1 }
 0x4d3   :  { %5233 = vmatmul.mubr.msk.bf16.gmra.mrb[156].mxu1 %vm2625_vm9, %v2832_v33 }
 0x4d4   :  { %3141 = vmatprep.mubr.bf16.mxu1 %v6276_v1 }
 0x4db   :  { %5247 = vmatmul.mubr.msk.bf16.vlgmr.msra.gmra.mrb[128].mxu1 %vm2625_vm9, %v7420_v47  ;;  %v6192_v47 = vld [vmem:[%s8174_s6 + $0x10] sm:$0xff]  }
 0x4dc   :  { %3151 = vmatprep.mubr.bf16.mxu1 %v6276_v1  ;;  %3343 = vmatpush1.bf16.msra.mxu1 %v6173_v42 }
 0x4dd   :  { %3344 = vmatprep.subr.bf16.mxu1 %v6178_v63 }
 0x4e0   :  { %3345 = vmatpush1.bf16.msra.mxu1 %v6176_v28 }
 0x4e1   :  { %3346 = vmatprep.subr.bf16.mxu1 %v6181_v62 }
 0x4e3   :  { %5248 = vmatmul.mubr.msk.bf16.gmra.mrb[132].mxu1 %vm2625_vm9, %v7427_v20  ;;  %v3245_v20 = vrot.slane %v7460_v29, 1 }
 0x4e4   :  { %3161 = vmatprep.mubr.bf16.mxu1 %v6276_v1  ;;  %3347 = vmatpush1.bf16.msra.mxu1 %v6179_v5  ;;  %v6203_v5 = vld [vmem:[%s8174_s6 + $0x68] sm:$0xff]  }
 0x4e5   :  { %3348 = vmatprep.subr.bf16.mxu1 %v6184_v45  ;;  %v3246_v2 = vsel %vm761_vm3, %v3243_v52, %v3245_v20 }
 0x4e8   :  { %3349 = vmatpush1.bf16.msra.mxu1 %v6182_v49 }
 0x4e9   :  { %3350 = vmatprep.subr.bf16.mxu1 %v6187_v18 }
 0x4eb   :  { %5249 = vmatmul.mubr.msk.bf16.gmra.mrb[136].mxu1 %vm2625_vm9, %v7460_v29  ;;  %v3247_v29 = vrot.slane %v7492_v14, 1 }
 0x4ec   :  { %3171 = vmatprep.mubr.bf16.mxu1 %v6276_v1  ;;  %3351 = vmatpush1.bf16.msra.mxu1 %v6185_v16 }
 0x4ed   :  { %5278 = vmatprep.subr.msk.bf16.mxu1 %vm2912_vm7, %v5277_v22  ;;  %v3248_v21 = vsel %vm761_vm3, %v3245_v20, %v3247_v29 }
 0x4f0   :  { %3353 = vmatpush1.bf16.msra.mxu1 %v3337_v55  ;;  %v6204_v55 = vld [vmem:[%s8174_s6 + $0x70] sm:$0xff]  }
 0x4f1   :  { %3700 = vmatprep.subr.bf16.mxu1 %v6276_v1 }
 0x4f3   :  { %5250 = vmatmul.mubr.msk.bf16.gmra.mrb[140].mxu1 %vm2625_vm9, %v7492_v14  ;;  %v3249_v14 = vrot.slane %v7507_v54, 1 }
 0x4f4   :  { %3181 = vmatprep.mubr.bf16.mxu1 %v6276_v1 }
 0x4f5   :  { %v3250_v25 = vsel %vm761_vm3, %v3247_v29, %v3249_v14 }
 0x4fb   :  { %5251 = vmatmul.mubr.msk.bf16.gmra.mrb[144].mxu1 %vm2625_vm9, %v7507_v54  ;;  %v3251_v54 = vrot.slane %v7522_v12, 1 }
 0x4fc   :  { %3191 = vmatprep.mubr.bf16.mxu1 %v6276_v1 }
 0x4fd   :  { %v3252_v37 = vsel %vm761_vm3, %v3249_v14, %v3251_v54 }
 0x503   :  { %5252 = vmatmul.mubr.msk.bf16.gmra.mrb[148].mxu1 %vm2625_vm9, %v7522_v12  ;;  %v3254_v12 = vsel %vm761_vm3, %v3251_v54, %v3253_v30 }
 0x504   :  { %3201 = vmatprep.mubr.bf16.mxu1 %v6276_v1 }
 0x50b   :  { %5253 = vmatmul.mubr.msk.bf16.gmra.mrb[152].mxu1 %vm2625_vm9, %v7537_v36  ;;  %v6199_v36 = vld [vmem:[%s8174_s6 + $0x48] sm:$0xff]  }
 0x50c   :  { %3211 = vmatprep.mubr.bf16.mxu1 %v6276_v1 }
 0x513   :  { %5254 = vmatmul.mubr.msk.bf16.gmra.mrb[156].mxu1 %vm2625_vm9, %v7548_v10 }
 0x514   :  { %3374 = vmatprep.mubr.bf16.mxu1 %v6276_v1 }
 0x51b   :  { %5279 = vmatmul.mubr.msk.bf16.vlgmr.msra.gmra.mrb[128].mxu1 %vm2625_vm9, %v3244_v8 }
 0x51c   :  { %3384 = vmatprep.mubr.bf16.mxu1 %v6276_v1  ;;  %3701 = vmatpush1.bf16.msra.mxu1 %v6190_v13 }
 0x51d   :  { %3702 = vmatprep.subr.bf16.mxu1 %v6276_v1 }
 0x520   :  { %3703 = vmatpush1.bf16.msra.mxu1 %v6191_v4 }
 0x521   :  { %3704 = vmatprep.subr.bf16.mxu1 %v6276_v1 }
 0x523   :  { %5280 = vmatmul.mubr.msk.bf16.gmra.mrb[132].mxu1 %vm2625_vm9, %v3246_v2  ;;  %v6205_v2 = vld [vmem:[%s8174_s6 + $0x78] sm:$0xff]  }
 0x524   :  { %3394 = vmatprep.mubr.bf16.mxu1 %v6276_v1  ;;  %3705 = vmatpush1.bf16.msra.mxu1 %v6192_v47 }
 0x525   :  { %3706 = vmatprep.subr.bf16.mxu1 %v6276_v1 }
 0x528   :  { %3707 = vmatpush1.bf16.msra.mxu1 %v6193_v58 }
 0x529   :  { %3708 = vmatprep.subr.bf16.mxu1 %v6276_v1 }
 0x52b   :  { %5281 = vmatmul.mubr.msk.bf16.gmra.mrb[136].mxu1 %vm2625_vm9, %v3248_v21 }
 0x52c   :  { %3404 = vmatprep.mubr.bf16.mxu1 %v6276_v1  ;;  %3709 = vmatpush1.bf16.msra.mxu1 %v6194_v51 }
 0x52d   :  { %3710 = vmatprep.subr.bf16.mxu1 %v6276_v1 }
 0x530   :  { %3711 = vmatpush1.bf16.msra.mxu1 %v6195_v46 }
 0x531   :  { %3712 = vmatprep.subr.bf16.mxu1 %v6276_v1 }
 0x533   :  { %5282 = vmatmul.mubr.msk.bf16.gmra.mrb[140].mxu1 %vm2625_vm9, %v3250_v25  ;;  %v6206_v25 = vld [vmem:[%s8174_s6 + $0x80] sm:$0xff]  }
 0x534   :  { %3414 = vmatprep.mubr.bf16.mxu1 %v6276_v1  ;;  %3713 = vmatpush1.bf16.msra.mxu1 %v6196_v15 }
 0x535   :  { %3714 = vmatprep.subr.bf16.mxu1 %v6276_v1 }
 0x538   :  { %3715 = vmatpush1.bf16.msra.mxu1 %v6197_v26 }
 0x539   :  { %3716 = vmatprep.subr.bf16.mxu1 %v6276_v1 }
 0x53b   :  { %5283 = vmatmul.mubr.msk.bf16.gmra.mrb[144].mxu1 %vm2625_vm9, %v3252_v37 }
 0x53c   :  { %3424 = vmatprep.mubr.bf16.mxu1 %v6276_v1  ;;  %3717 = vmatpush1.bf16.msra.mxu1 %v6198_v48 }
 0x53d   :  { %3718 = vmatprep.subr.bf16.mxu1 %v6276_v1 }
 0x540   :  { %3719 = vmatpush1.bf16.msra.mxu1 %v6199_v36 }
 0x541   :  { %3720 = vmatprep.subr.bf16.mxu1 %v6276_v1 }
 0x543   :  { %5284 = vmatmul.mubr.msk.bf16.gmra.mrb[148].mxu1 %vm2625_vm9, %v3254_v12 }
 0x544   :  { %3434 = vmatprep.mubr.bf16.mxu1 %v6276_v1  ;;  %3721 = vmatpush1.bf16.msra.mxu1 %v6200_v23 }
 0x545   :  { %3722 = vmatprep.subr.bf16.mxu1 %v6276_v1 }
 0x548   :  { %3723 = vmatpush1.bf16.msra.mxu1 %v6201_v17 }
 0x549   :  { %3894 = vmatprep.subr.bf16.mxu1 %v6276_v1 }
 0x54b   :  { %5285 = vmatmul.mubr.msk.bf16.gmra.mrb[152].mxu1 %vm2625_vm9, %v3256_v19  ;;  %v6207_v19 = vld [vmem:[%s8174_s6 + $0x88] sm:$0xff]  }
 0x54c   :  { %3444 = vmatprep.mubr.bf16.mxu1 %v6276_v1 }
 0x553   :  { %5286 = vmatmul.mubr.msk.bf16.gmra.mrb[156].mxu1 %vm2625_vm9, %v3255_v35 }
 0x5ee   :  { %v3376_v43 = vpop.f32.mrb[128].mxu1 }
 0x5ef   :  { %v3499_v41 = vadd.f32 %v7698_v53, %v3376_v43  ;;  %v3378_v60 = vpop.f32.mrb[129].mxu1 }
 0x5f0   :  { %v3500_v61 = vadd.f32 %v7702_v40, %v3378_v60  ;;  %v3380_v56 = vpop.f32.mrb[130].mxu1 }
 0x5f1   :  { %v3501_v59 = vadd.f32 %v7698_v53, %v3380_v56  ;;  %v3382_v44 = vpop.f32.mrb[131].mxu1  ;;  %v3531_v10 = vmax.f32 %v3499_v41, 0.0 }
 0x5f2   :  { %v3502_v9 = vadd.f32 %v7702_v40, %v3382_v44  ;;  %v3532_v32 = vmax.f32 %v3500_v61, 0.0  ;;  %v6208_v61 = vld [vmem:[%s8174_s6 + $0x90] sm:$0xff]  }
 0x5f3   :  { %v3533_v3 = vmax.f32 %v3501_v59, 0.0 }
 0x5f4   :  { %v3534_v57 = vmax.f32 %v3502_v9, 0.0 }
 0x5f5   :  { %v7708_v7 = vpack.c.bf16 %v3533_v3, %v3531_v10 }
 0x5f6   :  { %v7710_v38 = vpack.c.bf16 %v3534_v57, %v3532_v32  ;;  %v3386_v6 = vpop.f32.mrb[132].mxu1  ;;  %v6209_v57 = vld [vmem:[%s8174_s6 + $0x98] sm:$0xff]  }
 0x5f7   :  { %v3503_v24 = vadd.f32 %v7698_v53, %v3386_v6  ;;  %v3388_v0 = vpop.f32.mrb[133].mxu1 }
 0x5f8   :  { %v3504_v33 = vadd.f32 %v7702_v40, %v3388_v0  ;;  %v3390_v42 = vpop.f32.mrb[134].mxu1  ;;  %5299 = vmatprep.mubr.msk.bf16.mxu1 %vm3675_vm10, %v7710_v38 }
 0x5f9   :  { %v3505_v63 = vadd.f32 %v7698_v53, %v3390_v42  ;;  %v3392_v28 = vpop.f32.mrb[135].mxu1  ;;  %3733 = vmatmul.mubr.bf16.vlgmr.msra.gmra.mrb[160].mxu1 %v7708_v7  ;;  %v3535_v45 = vmax.f32 %v3503_v24, 0.0 }
 0x5fa   :  { %v3506_v62 = vadd.f32 %v7702_v40, %v3392_v28  ;;  %3895 = vmatpush1.bf16.msra.mxu1 %v6202_v39  ;;  %v3536_v18 = vmax.f32 %v3504_v33, 0.0  ;;  %v6210_v28 = vld [vmem:[%s8174_s6 + $0xa0] sm:$0xff]  }
 0x5fb   :  { %v3537_v49 = vmax.f32 %v3505_v63, 0.0  ;;  %3896 = vmatprep.subr.bf16.mxu1 %v6276_v1 }
 0x5fc   :  { %v3538_v11 = vmax.f32 %v3506_v62, 0.0 }
 0x5fd   :  { %v7726_v16 = vpack.c.bf16 %v3537_v49, %v3535_v45 }
 0x5fe   :  { %v7728_v22 = vpack.c.bf16 %v3538_v11, %v3536_v18  ;;  %v3396_v34 = vpop.f32.mrb[136].mxu1  ;;  %3897 = vmatpush1.bf16.msra.mxu1 %v6203_v5 }
 0x5ff   :  { %v3507_v52 = vadd.f32 %v7698_v53, %v3396_v34  ;;  %v3398_v50 = vpop.f32.mrb[137].mxu1  ;;  %3898 = vmatprep.subr.bf16.mxu1 %v6276_v1 }
 0x600   :  { %v3508_v13 = vadd.f32 %v7702_v40, %v3398_v50  ;;  %v3400_v8 = vpop.f32.mrb[138].mxu1  ;;  %5300 = vmatprep.mubr.msk.bf16.mxu1 %vm3675_vm10, %v7728_v22 }
 0x601   :  { %v3509_v4 = vadd.f32 %v7698_v53, %v3400_v8  ;;  %v3402_v20 = vpop.f32.mrb[139].mxu1  ;;  %3741 = vmatmul.mubr.bf16.gmra.mrb[164].mxu1 %v7726_v16  ;;  %v3539_v58 = vmax.f32 %v3507_v52, 0.0 }
 0x602   :  { %v3510_v47 = vadd.f32 %v7702_v40, %v3402_v20  ;;  %3899 = vmatpush1.bf16.msra.mxu1 %v6204_v55  ;;  %v3540_v51 = vmax.f32 %v3508_v13, 0.0  ;;  %v6211_v55 = vld [vmem:[%s8174_s6 + $0xa8] sm:$0xff]  }
 0x603   :  { %v3541_v29 = vmax.f32 %v3509_v4, 0.0  ;;  %3900 = vmatprep.subr.bf16.mxu1 %v6276_v1 }
 0x604   :  { %v3542_v21 = vmax.f32 %v3510_v47, 0.0 }
 0x605   :  { %v7745_v46 = vpack.c.bf16 %v3541_v29, %v3539_v58 }
 0x606   :  { %v7747_v14 = vpack.c.bf16 %v3542_v21, %v3540_v51  ;;  %v3406_v15 = vpop.f32.mrb[140].mxu1  ;;  %3901 = vmatpush1.bf16.msra.mxu1 %v6205_v2  ;;  %v6212_v2 = vld [vmem:[%s8174_s6 + $0xb0] sm:$0xff]  }
 0x607   :  { %v3511_v26 = vadd.f32 %v7698_v53, %v3406_v15  ;;  %v3408_v54 = vpop.f32.mrb[141].mxu1  ;;  %3902 = vmatprep.subr.bf16.mxu1 %v6276_v1 }
 0x608   :  { %v3512_v48 = vadd.f32 %v7702_v40, %v3408_v54  ;;  %v3410_v37 = vpop.f32.mrb[142].mxu1  ;;  %5301 = vmatprep.mubr.msk.bf16.mxu1 %vm3675_vm10, %v7747_v14  ;;  %v6213_v54 = vld [vmem:[%s8174_s6 + $0xb8] sm:$0xff]  }
 0x609   :  { %v3513_v30 = vadd.f32 %v7698_v53, %v3410_v37  ;;  %v3412_v12 = vpop.f32.mrb[143].mxu1  ;;  %3749 = vmatmul.mubr.bf16.gmra.mrb[168].mxu1 %v7745_v46  ;;  %v3543_v36 = vmax.f32 %v3511_v26, 0.0 }
 0x60a   :  { %v3514_v35 = vadd.f32 %v7702_v40, %v3412_v12  ;;  %3903 = vmatpush1.bf16.msra.mxu1 %v6206_v25  ;;  %v3544_v17 = vmax.f32 %v3512_v48, 0.0 }
 0x60b   :  { %v3545_v23 = vmax.f32 %v3513_v30, 0.0  ;;  %3904 = vmatprep.subr.bf16.mxu1 %v6276_v1 }
 0x60c   :  { %v3546_v27 = vmax.f32 %v3514_v35, 0.0 }
 0x60d   :  { %v7764_v43 = vpack.c.bf16 %v3545_v23, %v3543_v36 }
 0x60e   :  { %v7766_v41 = vpack.c.bf16 %v3546_v27, %v3544_v17  ;;  %v3416_v60 = vpop.f32.mrb[144].mxu1  ;;  %3905 = vmatpush1.bf16.msra.mxu1 %v6207_v19 }
 0x60f   :  { %v3515_v56 = vadd.f32 %v7698_v53, %v3416_v60  ;;  %v3418_v59 = vpop.f32.mrb[145].mxu1  ;;  %3906 = vmatprep.subr.bf16.mxu1 %v6276_v1 }
 0x610   :  { %v3516_v44 = vadd.f32 %v7702_v40, %v3418_v59  ;;  %v3420_v9 = vpop.f32.mrb[146].mxu1  ;;  %5302 = vmatprep.mubr.msk.bf16.mxu1 %vm3675_vm10, %v7766_v41 }
 0x611   :  { %v3517_v10 = vadd.f32 %v7698_v53, %v3420_v9  ;;  %v3422_v3 = vpop.f32.mrb[147].mxu1  ;;  %3757 = vmatmul.mubr.bf16.gmra.mrb[172].mxu1 %v7764_v43  ;;  %v3547_v6 = vmax.f32 %v3515_v56, 0.0 }
 0x612   :  { %v3518_v32 = vadd.f32 %v7702_v40, %v3422_v3  ;;  %3907 = vmatpush1.bf16.msra.mxu1 %v6208_v61  ;;  %v3548_v24 = vmax.f32 %v3516_v44, 0.0 }
 0x613   :  { %v3549_v39 = vmax.f32 %v3517_v10, 0.0  ;;  %3908 = vmatprep.subr.bf16.mxu1 %v6276_v1 }
 0x614   :  { %v3550_v0 = vmax.f32 %v3518_v32, 0.0 }
 0x615   :  { %v7783_v33 = vpack.c.bf16 %v3549_v39, %v3547_v6 }
 0x616   :  { %v7785_v42 = vpack.c.bf16 %v3550_v0, %v3548_v24  ;;  %v3426_v63 = vpop.f32.mrb[148].mxu1  ;;  %3909 = vmatpush1.bf16.msra.mxu1 %v6209_v57 }
 0x617   :  { %v3519_v62 = vadd.f32 %v7698_v53, %v3426_v63  ;;  %v3428_v5 = vpop.f32.mrb[149].mxu1  ;;  %3910 = vmatprep.subr.bf16.mxu1 %v6276_v1 }
 0x618   :  { %v3520_v45 = vadd.f32 %v7702_v40, %v3428_v5  ;;  %v3430_v49 = vpop.f32.mrb[150].mxu1  ;;  %5303 = vmatprep.mubr.msk.bf16.mxu1 %vm3675_vm10, %v7785_v42 }
 0x619   :  { %v3521_v18 = vadd.f32 %v7698_v53, %v3430_v49  ;;  %v3432_v11 = vpop.f32.mrb[151].mxu1  ;;  %3765 = vmatmul.mubr.bf16.gmra.mrb[176].mxu1 %v7783_v33  ;;  %v3551_v52 = vmax.f32 %v3519_v62, 0.0 }
 0x61a   :  { %v3522_v34 = vadd.f32 %v7702_v40, %v3432_v11  ;;  %3911 = vmatpush1.bf16.msra.mxu1 %v6210_v28  ;;  %v3552_v13 = vmax.f32 %v3520_v45, 0.0 }
 0x61b   :  { %v3553_v50 = vmax.f32 %v3521_v18, 0.0  ;;  %3912 = vmatprep.subr.bf16.mxu1 %v6276_v1 }
 0x61c   :  { %v3554_v8 = vmax.f32 %v3522_v34, 0.0 }
 0x61d   :  { %v3597_v4 = vpack.c.bf16 %v3553_v50, %v3551_v52 }
 0x61e   :  { %v3598_v20 = vpack.c.bf16 %v3554_v8, %v3552_v13  ;;  %v3436_v47 = vpop.f32.mrb[152].mxu1  ;;  %3913 = vmatpush1.bf16.msra.mxu1 %v6211_v55 }
 0x61f   :  { %v3523_v58 = vadd.f32 %v7698_v53, %v3436_v47  ;;  %v3438_v29 = vpop.f32.mrb[153].mxu1  ;;  %3914 = vmatprep.subr.bf16.mxu1 %v6276_v1 }
 0x620   :  { %v3524_v51 = vadd.f32 %v7702_v40, %v3438_v29  ;;  %v3440_v21 = vpop.f32.mrb[154].mxu1  ;;  %5304 = vmatprep.mubr.msk.bf16.mxu1 %vm3675_vm10, %v3598_v20 }
 0x621   :  { %v3525_v15 = vadd.f32 %v7698_v53, %v3440_v21  ;;  %v3442_v25 = vpop.f32.mrb[155].mxu1  ;;  %3773 = vmatmul.mubr.bf16.gmra.mrb[180].mxu1 %v3597_v4  ;;  %v3555_v48 = vmax.f32 %v3523_v58, 0.0 }
 0x622   :  { %v3526_v26 = vadd.f32 %v7702_v40, %v3442_v25  ;;  %3915 = vmatpush1.bf16.msra.mxu1 %v6212_v2  ;;  %v3556_v30 = vmax.f32 %v3524_v51, 0.0 }
 0x623   :  { %v3557_v37 = vmax.f32 %v3525_v15, 0.0  ;;  %3916 = vmatprep.subr.bf16.mxu1 %v6276_v1 }
 0x624   :  { %v3558_v12 = vmax.f32 %v3526_v26, 0.0 }
 0x625   :  { %v3599_v35 = vpack.c.bf16 %v3557_v37, %v3555_v48 }
 0x626   :  { %v3600_v19 = vpack.c.bf16 %v3558_v12, %v3556_v30  ;;  %v3446_v36 = vpop.f32.mrb[156].mxu1  ;;  %3917 = vmatpush1.bf16.msra.mxu1 %v6213_v54 }
 0x627   :  { %v3527_v23 = vadd.f32 %v7698_v53, %v3446_v36  ;;  %v3448_v17 = vpop.f32.mrb[157].mxu1  ;;  %5572 = vmatprep.subr.bf16.mxu1 %v6277_v31 }
 0x628   :  { %v3528_v27 = vadd.f32 %v7702_v40, %v3448_v17  ;;  %v3450_v60 = vpop.f32.mrb[158].mxu1  ;;  %5305 = vmatprep.mubr.msk.bf16.mxu1 %vm3675_vm10, %v3600_v19 }
 0x629   :  { %v3529_v61 = vadd.f32 %v7698_v53, %v3450_v60  ;;  %v3452_v56 = vpop.f32.mrb[159].mxu1  ;;  %3781 = vmatmul.mubr.bf16.gmra.mrb[184].mxu1 %v3599_v35  ;;  %v3559_v59 = vmax.f32 %v3527_v23, 0.0 }
 0x62a   :  { %v3530_v1 = vadd.f32 %v7702_v40, %v3452_v56  ;;  %v3560_v9 = vmax.f32 %v3528_v27, 0.0 }
 0x62b   :  { %v3561_v44 = vmax.f32 %v3529_v61, 0.0 }
 0x62c   :  { %v3562_v10 = vmax.f32 %v3530_v1, 0.0 }
 0x62d   :  { %v3601_v3 = vpack.c.bf16 %v3561_v44, %v3559_v59 }
 0x62e   :  { %v3602_v32 = vpack.c.bf16 %v3562_v10, %v3560_v9 }
 0x630   :  { %5306 = vmatprep.mubr.msk.bf16.mxu1 %vm3675_vm10, %v3602_v32 }
 0x631   :  { %3789 = vmatmul.mubr.bf16.gmra.mrb[188].mxu1 %v3601_v3 }
 0x632   :  { %5343 = vmatprep.mubr.msk.bf16.mxu1 %vm3675_vm10, %v7710_v38 }
 0x639   :  { %3927 = vmatmul.mubr.bf16.vlgmr.msra.gmra.mrb[192].mxu1 %v7708_v7 }
 0x63a   :  { %5344 = vmatprep.mubr.msk.bf16.mxu1 %vm3675_vm10, %v7728_v22 }
 0x641   :  { %3935 = vmatmul.mubr.bf16.gmra.mrb[196].mxu1 %v7726_v16 }
 0x642   :  { %5345 = vmatprep.mubr.msk.bf16.mxu1 %vm3675_vm10, %v7747_v14 }
 0x649   :  { %3943 = vmatmul.mubr.bf16.gmra.mrb[200].mxu1 %v7745_v46 }
 0x64a   :  { %5346 = vmatprep.mubr.msk.bf16.mxu1 %vm3675_vm10, %v7766_v41 }
 0x651   :  { %3951 = vmatmul.mubr.bf16.gmra.mrb[204].mxu1 %v7764_v43 }
 0x652   :  { %5347 = vmatprep.mubr.msk.bf16.mxu1 %vm3675_vm10, %v7785_v42 }
 0x659   :  { %3959 = vmatmul.mubr.bf16.gmra.mrb[208].mxu1 %v7783_v33 }
 0x65a   :  { %5348 = vmatprep.mubr.msk.bf16.mxu1 %vm3675_vm10, %v3598_v20 }
 0x661   :  { %3967 = vmatmul.mubr.bf16.gmra.mrb[212].mxu1 %v3597_v4 }
 0x662   :  { %5349 = vmatprep.mubr.msk.bf16.mxu1 %vm3675_vm10, %v3600_v19 }
 0x669   :  { %3975 = vmatmul.mubr.bf16.gmra.mrb[216].mxu1 %v3599_v35 }
 0x66a   :  { %5350 = vmatprep.mubr.msk.bf16.mxu1 %vm3675_vm10, %v3602_v32 }
 0x671   :  { %3983 = vmatmul.mubr.bf16.gmra.mrb[220].mxu1 %v3601_v3 }
 0x672   :  { %5588 = vmatprep.mubr.msk.bf16.mxu1 %vm6278_vm11, %v6277_v31 }
 0x6cc   :  { %v3734_v53 = vpop.f32.mrb[160].mxu1 }
 0x6cd   :  { %v3736_v40 = vpop.f32.mrb[161].mxu1 }
 0x6ce   :  { %v3737_v7 = vpop.f32.mrb[162].mxu1 }
 0x6cf   :  { %v3739_v38 = vpop.f32.mrb[163].mxu1 }
 0x6d4   :  { %v3742_v16 = vpop.f32.mrb[164].mxu1 }
 0x6d5   :  { %v3744_v22 = vpop.f32.mrb[165].mxu1 }
 0x6d6   :  { %v3745_v46 = vpop.f32.mrb[166].mxu1 }
 0x6d7   :  { %v3747_v14 = vpop.f32.mrb[167].mxu1 }
 0x6dc   :  { %v3750_v43 = vpop.f32.mrb[168].mxu1 }
 0x6dd   :  { %v3752_v41 = vpop.f32.mrb[169].mxu1 }
 0x6de   :  { %v3753_v57 = vpop.f32.mrb[170].mxu1 }
 0x6df   :  { %v3755_v6 = vpop.f32.mrb[171].mxu1 }
 0x6e4   :  { %v3758_v39 = vpop.f32.mrb[172].mxu1 }
 0x6e5   :  { %v3760_v24 = vpop.f32.mrb[173].mxu1 }
 0x6e6   :  { %v3761_v0 = vpop.f32.mrb[174].mxu1 }
 0x6e7   :  { %v3763_v33 = vpop.f32.mrb[175].mxu1 }
 0x6ec   :  { %v7844_v42 = vpop.f32.mrb[176].mxu1 }
 0x6ed   :  { %v3768_v63 = vpop.f32.mrb[177].mxu1 }
 0x6ee   :  { %v7846_v28 = vpop.f32.mrb[178].mxu1 }
 0x6ef   :  { %v3771_v62 = vpop.f32.mrb[179].mxu1 }
 0x6f4   :  { %v7848_v5 = vpop.f32.mrb[180].mxu1 }
 0x6f5   :  { %v3776_v45 = vpop.f32.mrb[181].mxu1 }
 0x6f6   :  { %v7850_v49 = vpop.f32.mrb[182].mxu1 }
 0x6f7   :  { %v3779_v18 = vpop.f32.mrb[183].mxu1 }
 0x6fc   :  { %v7852_v11 = vpop.f32.mrb[184].mxu1 }
 0x6fd   :  { %v3784_v34 = vpop.f32.mrb[185].mxu1 }
 0x6fe   :  { %v7854_v55 = vpop.f32.mrb[186].mxu1 }
 0x6ff   :  { %v3787_v52 = vpop.f32.mrb[187].mxu1 }
 0x700   :  { %v6215_v52 = vld [vmem:[%s8176_s7 + $0x18] sm:$0xff]  }
 0x704   :  { %v7856_v50 = vpop.f32.mrb[188].mxu1 }
 0x705   :  { %v3792_v13 = vpop.f32.mrb[189].mxu1 }
 0x706   :  { %v7858_v8 = vpop.f32.mrb[190].mxu1  ;;  %v6221_v13 = vld [vmem:[%s8177_s8 + $0x38] sm:$0xff]  }
 0x707   :  { %v3795_v4 = vpop.f32.mrb[191].mxu1 }
 0x708   :  { %v6217_v4 = vld [vmem:[%s8176_s7 + $0x20] sm:$0xff]  }
 0x70c   :  { %v3928_v20 = vpop.f32.mrb[192].mxu1 }
 0x70d   :  { %v3991_v47 = vmax.f32 %v3734_v53, %v3928_v20  ;;  %v3930_v2 = vpop.f32.mrb[193].mxu1  ;;  %v6222_v20 = vld [vmem:[%s8177_s8 + $0x40] sm:$0xff]  }
 0x70e   :  { %v3931_v58 = vpop.f32.mrb[194].mxu1  ;;  %v6218_v2 = vld [vmem:[%s8176_s7 + $0x10] sm:$0xff]  }
 0x70f   :  { %v3992_v29 = vmax.f32 %v3737_v7, %v3931_v58  ;;  %v3933_v51 = vpop.f32.mrb[195].mxu1  ;;  %v6219_v58 = vld [vmem:[%s8176_s7 + $0x28] sm:$0xff]  }
 0x710   :  { %v6225_v51 = vld [vmem:[%s8177_s8 + $0x58] sm:$0xff]  }
 0x711   :  { %v4013_v21 = vpack.c.bf16 %v3992_v29, %v3991_v47  ;;  %v6223_v47 = vld [vmem:[%s8177_s8 + $0x48] sm:$0xff]   ;;  %v6224_v29 = vld [vmem:[%s8177_s8 + $0x50] sm:$0xff]  }
 0x713   :  { %5573 = vmatpush3.bf16.msra.mxu1 %v4013_v21  ;;  %5601 = vmatpush3.bf16.msra.mxu0 %v4013_v21  ;;  %v6232_v21 = vld [vmem:[%s8177_s8 + $0x60] sm:$0xff]  }
 0x714   :  { %v3936_v15 = vpop.f32.mrb[196].mxu1  ;;  %5574 = vmatprep.subr.bf16.mxu1 %v6277_v31  ;;  %5602 = vmatprep.subr.bf16.mxu0 %v6277_v31 }
 0x715   :  { %v3993_v25 = vmax.f32 %v3742_v16, %v3936_v15  ;;  %v3938_v26 = vpop.f32.mrb[197].mxu1  ;;  %v6234_v15 = vld [vmem:[%s8177_s8 + $0x68] sm:$0xff]  }
 0x716   :  { %v3939_v54 = vpop.f32.mrb[198].mxu1  ;;  %v6238_v26 = vld [vmem:[%s8177_s8 + $0x78] sm:$0xff]  }
 0x717   :  { %v3994_v48 = vmax.f32 %v3745_v46, %v3939_v54  ;;  %v3941_v37 = vpop.f32.mrb[199].mxu1  ;;  %v6240_v54 = vld [vmem:[%s8177_s8 + $0x80] sm:$0xff]  }
 0x719   :  { %v4014_v30 = vpack.c.bf16 %v3994_v48, %v3993_v25  ;;  %v6236_v25 = vld [vmem:[%s8177_s8 + $0x70] sm:$0xff]   ;;  %v6242_v48 = vld [vmem:[%s8177_s8 + $0x88] sm:$0xff]  }
 0x71b   :  { %5575 = vmatpush3.bf16.msra.mxu1 %v4014_v30  ;;  %5603 = vmatpush3.bf16.msra.mxu0 %v4014_v30 }
 0x71c   :  { %v3944_v12 = vpop.f32.mrb[200].mxu1  ;;  %5576 = vmatprep.subr.bf16.mxu1 %v6277_v31  ;;  %5604 = vmatprep.subr.bf16.mxu0 %v6277_v31 }
 0x71d   :  { %v3995_v35 = vmax.f32 %v3750_v43, %v3944_v12  ;;  %v3946_v19 = vpop.f32.mrb[201].mxu1 }
 0x71e   :  { %v3947_v36 = vpop.f32.mrb[202].mxu1 }
 0x71f   :  { %v3996_v23 = vmax.f32 %v3753_v57, %v3947_v36  ;;  %v3949_v17 = vpop.f32.mrb[203].mxu1 }
 0x721   :  { %v4015_v27 = vpack.c.bf16 %v3996_v23, %v3995_v35 }
 0x723   :  { %5577 = vmatpush3.bf16.msra.mxu1 %v4015_v27  ;;  %5605 = vmatpush3.bf16.msra.mxu0 %v4015_v27 }
 0x724   :  { %v3952_v60 = vpop.f32.mrb[204].mxu1  ;;  %5578 = vmatprep.subr.bf16.mxu1 %v6277_v31  ;;  %5606 = vmatprep.subr.bf16.mxu0 %v6277_v31 }
 0x725   :  { %v3997_v61 = vmax.f32 %v3758_v39, %v3952_v60  ;;  %v3954_v56 = vpop.f32.mrb[205].mxu1 }
 0x726   :  { %v3955_v1 = vpop.f32.mrb[206].mxu1 }
 0x727   :  { %v3998_v59 = vmax.f32 %v3761_v0, %v3955_v1  ;;  %v3957_v44 = vpop.f32.mrb[207].mxu1  ;;  %v6227_v1 = vld [vmem:[%s8177_s8 + $0x8] sm:$0xff]  }
 0x729   :  { %v4016_v9 = vpack.c.bf16 %v3998_v59, %v3997_v61  ;;  %v6226_v61 = vld [vmem:[%s8177_s8] sm:$0xff]  }
 0x72b   :  { %5579 = vmatpush3.bf16.msra.mxu1 %v4016_v9  ;;  %5607 = vmatpush3.bf16.msra.mxu0 %v4016_v9 }
 0x72c   :  { %v3960_v10 = vpop.f32.mrb[208].mxu1  ;;  %5580 = vmatprep.subr.bf16.mxu1 %v6277_v31  ;;  %5608 = vmatprep.subr.bf16.mxu0 %v6277_v31 }
 0x72d   :  { %v3999_v3 = vmax.f32 %v7844_v42, %v3960_v10  ;;  %v3962_v32 = vpop.f32.mrb[209].mxu1 }
 0x72e   :  { %v3963_v53 = vpop.f32.mrb[210].mxu1 }
 0x72f   :  { %v4000_v40 = vmax.f32 %v7846_v28, %v3963_v53  ;;  %v3965_v7 = vpop.f32.mrb[211].mxu1 }
 0x731   :  { %v4017_v38 = vpack.c.bf16 %v4000_v40, %v3999_v3  ;;  %v6244_v40 = vld [vmem:[%s8177_s8 + $0xc0] sm:$0xff]  }
 0x733   :  { %5581 = vmatpush3.bf16.msra.mxu1 %v4017_v38  ;;  %5609 = vmatpush3.bf16.msra.mxu0 %v4017_v38 }
 0x734   :  { %v3968_v16 = vpop.f32.mrb[212].mxu1  ;;  %5582 = vmatprep.subr.bf16.mxu1 %v6277_v31  ;;  %5610 = vmatprep.subr.bf16.mxu0 %v6277_v31 }
 0x735   :  { %v4001_v22 = vmax.f32 %v7848_v5, %v3968_v16  ;;  %v3970_v46 = vpop.f32.mrb[213].mxu1 }
 0x736   :  { %v3971_v14 = vpop.f32.mrb[214].mxu1  ;;  %v6228_v46 = vld [vmem:[%s8177_s8 + $0x10] sm:$0xff]  }
 0x737   :  { %v4002_v43 = vmax.f32 %v7850_v49, %v3971_v14  ;;  %v3973_v41 = vpop.f32.mrb[215].mxu1  ;;  %v6246_v14 = vld [vmem:[%s8177_s8 + $0xc8] sm:$0xff]  }
 0x739   :  { %v4018_v57 = vpack.c.bf16 %v4002_v43, %v4001_v22  ;;  %v6229_v43 = vld [vmem:[%s8177_s8 + $0x18] sm:$0xff]  }
 0x73b   :  { %5583 = vmatpush3.bf16.msra.mxu1 %v4018_v57  ;;  %5611 = vmatpush3.bf16.msra.mxu0 %v4018_v57 }
 0x73c   :  { %v3976_v6 = vpop.f32.mrb[216].mxu1  ;;  %5584 = vmatprep.subr.bf16.mxu1 %v6277_v31  ;;  %5612 = vmatprep.subr.bf16.mxu0 %v6277_v31 }
 0x73d   :  { %v4003_v39 = vmax.f32 %v7852_v11, %v3976_v6  ;;  %v3978_v24 = vpop.f32.mrb[217].mxu1 }
 0x73e   :  { %v3979_v0 = vpop.f32.mrb[218].mxu1 }
 0x73f   :  { %v4004_v33 = vmax.f32 %v7854_v55, %v3979_v0  ;;  %v3981_v42 = vpop.f32.mrb[219].mxu1  ;;  %v6214_v55 = vld [vmem:[%s8176_s7] sm:$0xff]   ;;  %v6248_v0 = vld [vmem:[%s8177_s8 + $0xd0] sm:$0xff]  }
 0x741   :  { %v4019_v63 = vpack.c.bf16 %v4004_v33, %v4003_v39 }
 0x743   :  { %5585 = vmatpush3.bf16.msra.mxu1 %v4019_v63  ;;  %5613 = vmatpush3.bf16.msra.mxu0 %v4019_v63 }
 0x744   :  { %v3984_v28 = vpop.f32.mrb[220].mxu1  ;;  %5586 = vmatprep.subr.bf16.mxu1 %v6277_v31  ;;  %5614 = vmatprep.subr.bf16.mxu0 %v6277_v31 }
 0x745   :  { %v4005_v62 = vmax.f32 %v7856_v50, %v3984_v28  ;;  %v3986_v5 = vpop.f32.mrb[221].mxu1  ;;  %v6220_v50 = vld [vmem:[%s8177_s8 + $0x30] sm:$0xff]  }
 0x746   :  { %v3987_v45 = vpop.f32.mrb[222].mxu1  ;;  %v6230_v5 = vld [vmem:[%s8177_s8 + $0x20] sm:$0xff]  }
 0x747   :  { %v4006_v49 = vmax.f32 %v7858_v8, %v3987_v45  ;;  %v3989_v18 = vpop.f32.mrb[223].mxu1  ;;  %v6216_v8 = vld [vmem:[%s8176_s7 + $0x8] sm:$0xff]   ;;  %v6250_v45 = vld [vmem:[%s8177_s8 + $0xd8] sm:$0xff]  }
 0x748   :  { %v6252_v18 = vld [vmem:[%s8177_s8 + $0xe0] sm:$0xff]  }
 0x749   :  { %v4020_v11 = vpack.c.bf16 %v4006_v49, %v4005_v62  ;;  %v6231_v49 = vld [vmem:[%s8177_s8 + $0x28] sm:$0xff]  }
 0x74b   :  { %v4048_v34 = vsel %vm761_vm3, %v4020_v11, 0  ;;  %v6233_v11 = vld [vmem:[%s8177_s8 + $0x90] sm:$0xff]  }
 0x74c   :  { %5587 = vmatpush3.bf16.msra.mxu1 %v4048_v34  ;;  %5615 = vmatpush3.bf16.msra.mxu0 %v4048_v34 }
 0x74d   :  { %5628 = vmatprep.subr.bf16.mxu1 %v6277_v31  ;;  %5660 = vmatprep.subr.bf16.mxu0 %v6277_v31 }
 0x74f   :  { %5589 = vmatmul.mubr.msk.bf16.vlgmr.msra.gmra.mrb[224].mxu1 %vm4036_vm12, %v6214_v55  ;;  %5617 = vmatmul.mubr.msk.bf16.vlgmr.msra.gmra.mrb[64].mxu0 %vm4036_vm12, %v6215_v52  ;;  %v6254_v55 = vld [vmem:[%s8177_s8 + $0xe8] sm:$0xff]   ;;  %v6235_v52 = vld [vmem:[%s8177_s8 + $0x98] sm:$0xff]  }
 0x750   :  { %5592 = vmatprep.mubr.msk.bf16.mxu1 %vm6278_vm11, %v6277_v31  ;;  %5620 = vmatprep.mubr.msk.bf16.mxu0 %vm6278_vm11, %v6277_v31 }
 0x751   :  { %5629 = vmatpush3.bf16.msra.mxu1 %v6220_v50  ;;  %5661 = vmatpush3.bf16.msra.mxu0 %v6232_v21  ;;  %v6247_v21 = vld [vmem:[%s8177_s8 + $0xf8] sm:$0xff]  }
 0x752   :  { %5630 = vmatprep.subr.bf16.mxu1 %v6277_v31  ;;  %5662 = vmatprep.subr.bf16.mxu0 %v6277_v31 }
 0x755   :  { %5631 = vmatpush3.bf16.msra.mxu1 %v6221_v13  ;;  %5663 = vmatpush3.bf16.msra.mxu0 %v6234_v15  ;;  %v6256_v13 = vld [vmem:[%s8178_s10] sm:$0xff]  }
 0x756   :  { %5632 = vmatprep.subr.bf16.mxu1 %v6277_v31  ;;  %5664 = vmatprep.subr.bf16.mxu0 %v6277_v31  ;;  %v6249_v15 = vld [vmem:[%s8177_s8 + $0x100] sm:$0xff]  }
 0x757   :  { %5593 = vmatmul.mubr.msk.bf16.gmra.mrb[228].mxu1 %vm4036_vm12, %v6216_v8  ;;  %5621 = vmatmul.mubr.msk.bf16.gmra.mrb[68].mxu0 %vm4036_vm12, %v6217_v4  ;;  %v6237_v8 = vld [vmem:[%s8177_s8 + $0xa0] sm:$0xff]   ;;  %v6257_v4 = vld [vmem:[%s8178_s10 + $0x8] sm:$0xff]  }
 0x758   :  { %5596 = vmatprep.mubr.msk.bf16.mxu1 %vm6278_vm11, %v6277_v31  ;;  %5624 = vmatprep.mubr.msk.bf16.mxu0 %vm6278_vm11, %v6277_v31 }
 0x759   :  { %5633 = vmatpush3.bf16.msra.mxu1 %v6222_v20  ;;  %5665 = vmatpush3.bf16.msra.mxu0 %v6236_v25  ;;  %v6239_v20 = vld [vmem:[%s8177_s8 + $0xa8] sm:$0xff]  }
 0x75a   :  { %5634 = vmatprep.subr.bf16.mxu1 %v6277_v31  ;;  %5666 = vmatprep.subr.bf16.mxu0 %v6277_v31  ;;  %v6251_v25 = vld [vmem:[%s8177_s8 + $0x108] sm:$0xff]  }
 0x75d   :  { %5635 = vmatpush3.bf16.msra.mxu1 %v6223_v47  ;;  %5667 = vmatpush3.bf16.msra.mxu0 %v6238_v26  ;;  %v6258_v47 = vld [vmem:[%s8178_s10 + $0x10] sm:$0xff]  }
 0x75e   :  { %5636 = vmatprep.subr.bf16.mxu1 %v6277_v31  ;;  %5668 = vmatprep.subr.bf16.mxu0 %v6277_v31  ;;  %v6253_v26 = vld [vmem:[%s8177_s8 + $0x110] sm:$0xff]  }
 0x75f   :  { %5597 = vmatmul.mubr.msk.bf16.gmra.mrb[232].mxu1 %vm4036_vm12, %v6218_v2  ;;  %5625 = vmatmul.mubr.msk.bf16.gmra.mrb[72].mxu0 %vm4036_vm12, %v6219_v58  ;;  %v6241_v2 = vld [vmem:[%s8177_s8 + $0xb0] sm:$0xff]   ;;  %v6243_v58 = vld [vmem:[%s8177_s8 + $0xb8] sm:$0xff]  }
 0x760   :  { %5640 = vmatprep.mubr.msk.bf16.mxu1 %vm6278_vm11, %v6277_v31  ;;  %5672 = vmatprep.mubr.msk.bf16.mxu0 %vm6278_vm11, %v6277_v31 }
 0x761   :  { %5637 = vmatpush3.bf16.msra.mxu1 %v6224_v29  ;;  %5669 = vmatpush3.bf16.msra.mxu0 %v6240_v54  ;;  %v6255_v54 = vld [vmem:[%s8177_s8 + $0x118] sm:$0xff]  }
 0x762   :  { %5638 = vmatprep.subr.bf16.mxu1 %v6277_v31  ;;  %5670 = vmatprep.subr.bf16.mxu0 %v6277_v31 }
 0x765   :  { %5639 = vmatpush3.bf16.msra.mxu1 %v6225_v51  ;;  %5671 = vmatpush3.bf16.msra.mxu0 %v6242_v48  ;;  %v6245_v51 = vld [vmem:[%s8177_s8 + $0xf0] sm:$0xff]  }
 0x766   :  { %5644 = vmatprep.subr.bf16.mxu1 %v6277_v31  ;;  %5692 = vmatprep.subr.bf16.mxu0 %v6277_v31 }
 0x822   :  { %v4084_v37 = vpop.f32.mrb[224].mxu1  ;;  %v4172_v30 = vpop.f32.mrb[64].mxu0 }
 0x823   :  { %v7969_v12 = vmax.f32 %v4084_v37, %v4172_v30  ;;  %v5590_v35 = vpop.f32.mrb[225].mxu1  ;;  %v5618_v19 = vpop.f32.mrb[65].mxu0  ;;  %v6259_v37 = vld [vmem:[%s8178_s10 + $0x18] sm:$0xff]   ;;  %v6260_v30 = vld [vmem:[%s8178_s10 + $0x20] sm:$0xff]  }
 0x824   :  { %v4087_v36 = vpop.f32.mrb[226].mxu1  ;;  %v4175_v23 = vpop.f32.mrb[66].mxu0  ;;  %v6262_v35 = vld [vmem:[%s8178_s10 + $0x30] sm:$0xff]   ;;  %v6263_v19 = vld [vmem:[%s8178_s10 + $0x38] sm:$0xff]  }
 0x825   :  { %v4196_v17 = vmax.f32 %v4087_v36, %v4175_v23  ;;  %v5591_v27 = vpop.f32.mrb[227].mxu1  ;;  %v5619_v60 = vpop.f32.mrb[67].mxu0  ;;  %v4213_v34 = vpack.c.bf16 %v7969_v12, %v7969_v12  ;;  %v6261_v12 = vld [vmem:[%s8178_s10 + $0x28] sm:$0xff]   ;;  %v6264_v36 = vld [vmem:[%s8179_s12] sm:$0xff]  }
 0x826   :  { %v6265_v23 = vld [vmem:[%s8179_s12 + $0x8] sm:$0xff]   ;;  %v6267_v27 = vld [vmem:[%s8179_s12 + $0x18] sm:$0xff]   ;;  %v6268_v60 = vld [vmem:[%s8179_s12 + $0x20] sm:$0xff]  }
 0x827   :  { %v4227_v56 = vpack.c.bf16 %v4196_v17, %v4196_v17  ;;  %v6266_v17 = vld [vmem:[%s8179_s12 + $0x10] sm:$0xff]  }
 0x829   :  { %5641 = vmatmul.mubr.msk.bf16.vlgmr.msra.gmra.mrb[236].mxu1 %vm4264_vm13, %v4227_v56 }
 0x82a   :  { %5645 = vmatpush3.bf16.msra.mxu1 %v6226_v61  ;;  %5656 = vmatprep.mubr.msk.bf16.mxu1 %vm6278_vm11, %v6277_v31  ;;  %v4092_v59 = vpop.f32.mrb[228].mxu1  ;;  %v4180_v44 = vpop.f32.mrb[68].mxu0  ;;  %v6269_v61 = vld [vmem:[%s8179_s12 + $0x28] sm:$0xff]  }
 0x82b   :  { %5646 = vmatprep.subr.bf16.mxu1 %v6277_v31  ;;  %v4197_v9 = vmax.f32 %v4092_v59, %v4180_v44  ;;  %v5594_v10 = vpop.f32.mrb[229].mxu1  ;;  %v5622_v3 = vpop.f32.mrb[69].mxu0 }
 0x82c   :  { %v4095_v32 = vpop.f32.mrb[230].mxu1  ;;  %v4183_v53 = vpop.f32.mrb[70].mxu0 }
 0x82d   :  { %v4400_v7 = vpack.c.bf16 %v4197_v9, %v4197_v9  ;;  %v7984_v38 = vmax.f32 %v4095_v32, %v4183_v53  ;;  %v5595_v16 = vpop.f32.mrb[231].mxu1  ;;  %v5623_v22 = vpop.f32.mrb[71].mxu0 }
 0x82e   :  { %5647 = vmatpush3.bf16.msra.mxu1 %v6227_v1 }
 0x82f   :  { %5648 = vmatprep.subr.bf16.mxu1 %v6277_v31  ;;  %5673 = vmatmul.mubr.msk.bf16.vlgmr.msra.gmra.mrb[76].mxu0 %vm4264_vm13, %v4400_v7  ;;  %v4494_v29 = vpack.c.bf16 %v7984_v38, %v7984_v38 }
 0x830   :  { %5693 = vmatpush3.bf16.msra.mxu0 %v6244_v40  ;;  %5704 = vmatprep.mubr.msk.bf16.mxu0 %vm6278_vm11, %v6277_v31 }
 0x831   :  { %5694 = vmatprep.subr.bf16.mxu0 %v6277_v31 }
 0x832   :  { %5649 = vmatpush3.bf16.msra.mxu1 %v6228_v46  ;;  %v4100_v41 = vpop.f32.mrb[232].mxu1  ;;  %v4188_v57 = vpop.f32.mrb[72].mxu0 }
 0x833   :  { %5650 = vmatprep.subr.bf16.mxu1 %v6277_v31  ;;  %v4199_v6 = vmax.f32 %v4100_v41, %v4188_v57  ;;  %v5598_v39 = vpop.f32.mrb[233].mxu1  ;;  %v5626_v24 = vpop.f32.mrb[73].mxu0 }
 0x834   :  { %5695 = vmatpush3.bf16.msra.mxu0 %v6246_v14  ;;  %v4103_v33 = vpop.f32.mrb[234].mxu1  ;;  %v4191_v42 = vpop.f32.mrb[74].mxu0 }
 0x835   :  { %5696 = vmatprep.subr.bf16.mxu0 %v6277_v31  ;;  %v8005_v63 = vmax.f32 %v4103_v33, %v4191_v42  ;;  %v5599_v28 = vpop.f32.mrb[235].mxu1  ;;  %v5627_v62 = vpop.f32.mrb[75].mxu0  ;;  %v4588_v50 = vpack.c.bf16 %v4199_v6, %v4199_v6 }
 0x836   :  { %5651 = vmatpush3.bf16.msra.mxu1 %v6229_v43 }
 0x837   :  { %5652 = vmatprep.subr.bf16.mxu1 %v6277_v31  ;;  %v4682_v48 = vpack.c.bf16 %v8005_v63, %v8005_v63  ;;  %v5471_v63 = vld [vmem:[%s8180_s9] ss:$0 sm:$0xff] }
 0x838   :  { %5697 = vmatpush3.bf16.msra.mxu0 %v6248_v0 }
 0x839   :  { %5698 = vmatprep.subr.bf16.mxu0 %v6277_v31 }
 0x83a   :  { %5653 = vmatpush3.bf16.msra.mxu1 %v6230_v5 }
 0x83b   :  { %5654 = vmatprep.subr.bf16.mxu1 %v6277_v31 }
 0x83c   :  { %5699 = vmatpush3.bf16.msra.mxu0 %v6250_v45 }
 0x83d   :  { %5700 = vmatprep.subr.bf16.mxu0 %v6277_v31 }
 0x83e   :  { %5655 = vmatpush3.bf16.msra.mxu1 %v6231_v49 }
 0x83f   :  { %5676 = vmatprep.subr.bf16.mxu1 %v6277_v31 }
 0x840   :  { %5701 = vmatpush3.bf16.msra.mxu0 %v6252_v18 }
 0x841   :  { %5657 = vmatmul.mubr.msk.bf16.vlgmr.msra.gmra.mrb[240].mxu1 %vm4264_vm13, %v4213_v34  ;;  %5702 = vmatprep.subr.bf16.mxu0 %v6277_v31  ;;  %v6270_v34 = vld [vmem:[%s8179_s12 + $0x30] sm:$0xff]  }
 0x842   :  { %5677 = vmatpush3.bf16.msra.mxu1 %v6233_v11  ;;  %5688 = vmatprep.mubr.msk.bf16.mxu1 %vm6278_vm11, %v6277_v31 }
 0x843   :  { %5678 = vmatprep.subr.bf16.mxu1 %v6277_v31 }
 0x844   :  { %5703 = vmatpush3.bf16.msra.mxu0 %v6254_v55  ;;  %v6271_v55 = vld [vmem:[%s8179_s12 + $0x38] sm:$0xff]  }
 0x845   :  { %5724 = vmatprep.subr.bf16.mxu0 %v6277_v31 }
 0x846   :  { %5679 = vmatpush3.bf16.msra.mxu1 %v6235_v52  ;;  %v5472_v52 = vld [vmem:[%s8181_s11] ss:$0 sm:$0xff] }
 0x847   :  { %5680 = vmatprep.subr.bf16.mxu1 %v6277_v31  ;;  %5705 = vmatmul.mubr.msk.bf16.vlgmr.msra.gmra.mrb[80].mxu0 %vm4264_vm13, %v4588_v50 }
 0x848   :  { %5725 = vmatpush3.bf16.msra.mxu0 %v6256_v13  ;;  %5740 = vmatprep.mubr.msk.bf16.mxu0 %vm6278_vm11, %v6277_v31 }
 0x849   :  { %5726 = vmatprep.subr.bf16.mxu0 %v6277_v31 }
 0x84a   :  { %5681 = vmatpush3.bf16.msra.mxu1 %v6237_v8 }
 0x84b   :  { %5682 = vmatprep.subr.bf16.mxu1 %v6277_v31 }
 0x84c   :  { %5727 = vmatpush3.bf16.msra.mxu0 %v6257_v4 }
 0x84d   :  { %5728 = vmatprep.subr.bf16.mxu0 %v6277_v31 }
 0x84e   :  { %5683 = vmatpush3.bf16.msra.mxu1 %v6239_v20 }
 0x84f   :  { %5684 = vmatprep.subr.bf16.mxu1 %v6277_v31 }
 0x850   :  { %5729 = vmatpush3.bf16.msra.mxu0 %v6258_v47 }
 0x851   :  { %5730 = vmatprep.subr.bf16.mxu0 %v6277_v31 }
 0x852   :  { %5685 = vmatpush3.bf16.msra.mxu1 %v6241_v2 }
 0x853   :  { %5686 = vmatprep.subr.bf16.mxu1 %v6277_v31 }
 0x854   :  { %5731 = vmatpush3.bf16.msra.mxu0 %v6259_v37 }
 0x855   :  { %5732 = vmatprep.subr.bf16.mxu0 %v6277_v31 }
 0x856   :  { %5687 = vmatpush3.bf16.msra.mxu1 %v6243_v58 }
 0x857   :  { %5708 = vmatprep.subr.bf16.mxu1 %v6277_v31 }
 0x858   :  { %5733 = vmatpush3.bf16.msra.mxu0 %v6260_v30 }
 0x859   :  { %5689 = vmatmul.mubr.msk.bf16.vlgmr.msra.gmra.mrb[244].mxu1 %vm4264_vm13, %v4494_v29  ;;  %5734 = vmatprep.subr.bf16.mxu0 %v6277_v31 }
 0x85a   :  { %5709 = vmatpush3.bf16.msra.mxu1 %v6245_v51  ;;  %5720 = vmatprep.mubr.msk.bf16.mxu1 %vm6278_vm11, %v6277_v31 }
 0x85b   :  { %5710 = vmatprep.subr.bf16.mxu1 %v6277_v31 }
 0x85c   :  { %5735 = vmatpush3.bf16.msra.mxu0 %v6261_v12 }
 0x85d   :  { %5736 = vmatprep.subr.bf16.mxu0 %v6277_v31 }
 0x85e   :  { %5711 = vmatpush3.bf16.msra.mxu1 %v6247_v21 }
 0x85f   :  { %5712 = vmatprep.subr.bf16.mxu1 %v6277_v31 }
 0x860   :  { %5737 = vmatpush3.bf16.msra.mxu0 %v6262_v35 }
 0x861   :  { %5738 = vmatprep.subr.bf16.mxu0 %v6277_v31 }
 0x862   :  { %5713 = vmatpush3.bf16.msra.mxu1 %v6249_v15 }
 0x863   :  { %5714 = vmatprep.subr.bf16.mxu1 %v6277_v31 }
 0x864   :  { %5739 = vmatpush3.bf16.msra.mxu0 %v6263_v19 }
 0x866   :  { %5715 = vmatpush3.bf16.msra.mxu1 %v6251_v25 }
 0x867   :  { %5716 = vmatprep.subr.bf16.mxu1 %v6277_v31 }
 0x86a   :  { %5717 = vmatpush3.bf16.msra.mxu1 %v6253_v26 }
 0x86b   :  { %5718 = vmatprep.subr.bf16.mxu1 %v6277_v31 }
 0x86e   :  { %5719 = vmatpush3.bf16.msra.mxu1 %v6255_v54 }
 0x86f   :  { %5744 = vmatprep.subr.bf16.mxu1 %v6277_v31 }
 0x871   :  { %5721 = vmatmul.mubr.msk.bf16.vlgmr.msra.gmra.mrb[248].mxu1 %vm4264_vm13, %v4682_v48 }
 0x872   :  { %5760 = vmatprep.mubr.msk.bf16.mxu1 %vm6278_vm11, %v6277_v31  ;;  %5745 = vmatpush3.bf16.msra.mxu1 %v6264_v36 }
 0x873   :  { %5746 = vmatprep.subr.bf16.mxu1 %v6277_v31 }
 0x876   :  { %5747 = vmatpush3.bf16.msra.mxu1 %v6265_v23 }
 0x877   :  { %5748 = vmatprep.subr.bf16.mxu1 %v6277_v31 }
 0x87a   :  { %5749 = vmatpush3.bf16.msra.mxu1 %v6266_v17 }
 0x87b   :  { %5750 = vmatprep.subr.bf16.mxu1 %v6277_v31 }
 0x87e   :  { %5751 = vmatpush3.bf16.msra.mxu1 %v6267_v27 }
 0x87f   :  { %5752 = vmatprep.subr.bf16.mxu1 %v6277_v31 }
 0x882   :  { %5753 = vmatpush3.bf16.msra.mxu1 %v6268_v60 }
 0x883   :  { %5754 = vmatprep.subr.bf16.mxu1 %v6277_v31 }
 0x886   :  { %5755 = vmatpush3.bf16.msra.mxu1 %v6269_v61 }
 0x887   :  { %5756 = vmatprep.subr.bf16.mxu1 %v6277_v31 }
 0x88a   :  { %5757 = vmatpush3.bf16.msra.mxu1 %v6270_v34 }
 0x88b   :  { %5758 = vmatprep.subr.bf16.mxu1 %v6277_v31  ;;  %v5481_v31 = vld [vmem:[%s8182_s13] ss:$0 sm:$0xff] }
 0x88e   :  { %5759 = vmatpush3.bf16.msra.mxu1 %v6271_v55 }
 0x8fc   :  { %v4302_v56 = vpop.f32.mrb[236].mxu1 }
 0x8fd   :  { %v5642_v1 = vpop.f32.mrb[237].mxu1 }
 0x8fe   :  { %v4305_v59 = vpop.f32.mrb[238].mxu1 }
 0x8ff   :  { %v5643_v44 = vpop.f32.mrb[239].mxu1 }
 0x902   :  { %v4474_v9 = vpop.f32.mrb[76].mxu0 }
 0x903   :  { %v5674_v10 = vpop.f32.mrb[77].mxu0 }
 0x904   :  { %v4477_v3 = vpop.f32.mrb[78].mxu0 }
 0x905   :  { %v5675_v32 = vpop.f32.mrb[79].mxu0 }
 0x914   :  { %v4381_v53 = vpop.f32.mrb[240].mxu1 }
 0x915   :  { %v4382_v40 = vadd.f32 %v4381_v53, %v4302_v56  ;;  %v5658_v7 = vpop.f32.mrb[241].mxu1 }
 0x916   :  { %v4384_v38 = vpop.f32.mrb[242].mxu1 }
 0x917   :  { %v4480_v16 = vadd.f32 %v4474_v9, %v4382_v40  ;;  %v5659_v22 = vpop.f32.mrb[243].mxu1 }
 0x91a   :  { %v4662_v46 = vpop.f32.mrb[80].mxu0 }
 0x91b   :  { %v5706_v14 = vpop.f32.mrb[81].mxu0 }
 0x91c   :  { %v4665_v43 = vpop.f32.mrb[82].mxu0 }
 0x91d   :  { %v5707_v41 = vpop.f32.mrb[83].mxu0 }
 0x92c   :  { %v4568_v57 = vpop.f32.mrb[244].mxu1 }
 0x92d   :  { %v4574_v6 = vadd.f32 %v4568_v57, %v4480_v16  ;;  %v5690_v39 = vpop.f32.mrb[245].mxu1 }
 0x92e   :  { %v4571_v24 = vpop.f32.mrb[246].mxu1 }
 0x92f   :  { %v4668_v0 = vadd.f32 %v4662_v46, %v4574_v6  ;;  %v5691_v33 = vpop.f32.mrb[247].mxu1 }
 0x944   :  { %v4756_v42 = vpop.f32.mrb[248].mxu1 }
 0x945   :  { %v4762_v28 = vadd.f32 %v4756_v42, %v4668_v0  ;;  %v5722_v62 = vpop.f32.mrb[249].mxu1 }
 0x946   :  { %v4759_v5 = vpop.f32.mrb[250].mxu1 }
 0x947   :  { %v4770_v45 = vadd.f32 %v5471_v63, %v4762_v28  ;;  %v5723_v49 = vpop.f32.mrb[251].mxu1 }
 0x949   :  { %v4771_v18 = vmax.f32 %v4770_v45, 0.0 }
 0x94b   :  { %v4788_v11 = vpack.c.bf16 %v4771_v18, %v4771_v18 }
 0x94d   :  { %5741 = vmatmul.mubr.bf16.vlgmr.msra.gmra.mrb[84].mxu0 %v4788_v11 }
 0xa20   :  { %v4878_v50 = vpop.f32.mrb[84].mxu0 }
 0xa21   :  { %v4879_v13 = vadd.f32 %v5472_v52, %v4878_v50  ;;  %v5742_v8 = vpop.f32.mrb[85].mxu0 }
 0xa22   :  { %v4881_v4 = vpop.f32.mrb[86].mxu0 }
 0xa23   :  { %v4884_v20 = vmax.f32 %v4879_v13, 0.0  ;;  %v5743_v47 = vpop.f32.mrb[87].mxu0 }
 0xa25   :  { %v4901_v2 = vpack.c.bf16 %v4884_v20, %v4884_v20 }
 0xa27   :  { %5761 = vmatmul.mubr.bf16.vlgmr.msra.gmra.mrb[252].mxu1 %v4901_v2 }
 0xafa   :  { %v4991_v58 = vpop.f32.mrb[252].mxu1 }
 0xafb   :  { %v4992_v29 = vadd.f32 %v5481_v31, %v4991_v58  ;;  %v5762_v51 = vpop.f32.mrb[253].mxu1 }
 0xafc   :  { %v4994_v21 = vpop.f32.mrb[254].mxu1 }
 0xafd   :  { %4997 = vmax.xlane.f32.xlu0 %v4992_v29  ;;  %v5763_v15 = vpop.f32.mrb[255].mxu1 }
 0xb8a   :  { %v4998_v25 = vpop.xlane.xlu0 %4997 }
 0xb8b   :  { %v4999_v26 = vsub.f32 %v4992_v29, %v4998_v25 }
 0xb8d   :  { %v5000_v54 = vmul.f32 1.442695, %v4999_v26 }
 0xb8f   :  { %6272 = vpow2.f32 %v5000_v54 }
 0xb99   :  { %v6273_v48 = vpop.eup %6272 }
 0xb9a   :  { %5002 = vadd.xlane.f32.xlu0 %v6273_v48 }
 0xc27   :  { %v5003_v37 = vpop.xlane.xlu0 %5002 }
 0xc28   :  { %6274 = vrcp.f32 %v5003_v37 }
 0xc32   :  { %v6275_v30 = vpop.eup %6274 }
 0xc33   :  { %v5005_v12 = vmul.f32 %v6275_v30, %v6273_v48 }
 0xc35   :  { %5006 = vst [vmem:[%s8183_s14] sm:$0xff] %v5005_v12 }

</bundles_post_ra>
